<compile_context>
chip_gen: v5e
topology: v5e:2x2
jax: 0.10.0
libtpu: 0.0.40
codegen_flags: <defaults>
</compile_context>

<pallas_src>
import functools

import jax
import jax.numpy as jnp
from jax.experimental import pallas as pl
from jax.experimental.pallas import tpu as pltpu


def _rup(x, m):
    return ((x + m - 1) // m) * m


def decoder_kernel(actual_len,
                   enc_ref, hid_ref, xemb_ref,
                   w1_ref, b1_ref, w2_ref, b2_ref, vw_ref, vb_ref,
                   wctx_ref, wemb_ref, bih_ref, bhh_ref,
                   fcw_ref, fcb_ref,
                   logits_ref, state_ref, attn_ref,
                   h_sc):
    """Grid axis 0 tiles the (padded) vocab of the output projection."""
    j = pl.program_id(0)

    # Attention + GRU are vocab-independent: compute them once (first grid step),
    # keep the hidden state in a persistent VMEM scratch for the remaining tiles.
    @pl.when(j == 0)
    def _attention_and_gru():
        enc = enc_ref[...]                                    # (Bp, Lp, Ep)
        Bp, Lp, Ep = enc.shape
        Dp = w1_ref.shape[1]

        # ---------------- Bahdanau attention ----------------
        # Leading-dim merge/split only (last dim preserved, Lp % 8 == 0):
        # tile-aligned, so no relayout copy is materialized.
        s1 = jnp.dot(enc.reshape(Bp * Lp, Ep), w1_ref[...],
                     preferred_element_type=jnp.float32).reshape(Bp, Lp, Dp)
        s2 = jnp.dot(hid_ref[...], w2_ref[...],
                     preferred_element_type=jnp.float32) + b2_ref[...]      # (Bp, Dp)
        score = jnp.tanh(s1 + b1_ref[...] + s2[:, None, :])                 # (Bp, Lp, Dp)

        v_logits = jnp.sum(score * vw_ref[...], axis=-1) + vb_ref[...]      # (Bp, Lp)
        # Mask padded key positions (Lp >= real sequence length).
        valid = jax.lax.broadcasted_iota(jnp.int32, v_logits.shape, 1) < actual_len
        v_logits = jnp.where(valid, v_logits, -1e30)

        m = jnp.max(v_logits, axis=-1, keepdims=True)
        e = jnp.exp(v_logits - m)
        denom = jnp.sum(e, axis=-1, keepdims=True)
        attn = e * pl.reciprocal(denom, approx=True)                        # (Bp, Lp)
        attn_ref[...] = attn

        context = jnp.sum(attn[:, :, None] * enc, axis=1)                   # (Bp, Ep)

        # ---------------- single-step GRU, zero initial hidden ----------------
        # h0 = 0 => W_hh contributes nothing; only bias_hh survives.
        xemb = xemb_ref[...]                                                # (Bp, embp)

        def gate(g):  # gate-major weights: leading-axis index, no lane slicing
            return (jnp.dot(context, wctx_ref[g], preferred_element_type=jnp.float32)
                    + jnp.dot(xemb, wemb_ref[g], preferred_element_type=jnp.float32)
                    + bih_ref[g])

        r = jax.nn.sigmoid(gate(0) + bhh_ref[0])
        z = jax.nn.sigmoid(gate(1) + bhh_ref[1])
        n = jnp.tanh(gate(2) + r * bhh_ref[2])
        h = (1.0 - z) * n                                                   # + z*h0 (= 0)

        h_sc[...] = h
        state_ref[...] = h

    # ---------------- output projection: one vocab tile per grid step ----------------
    logits_ref[...] = (jnp.dot(h_sc[...], fcw_ref[...],
                               preferred_element_type=jnp.float32) + fcb_ref[...])


def prepare_params(params):
    """One-time wrapper-side prep: transpose, gate-split and 128-pad all weights."""
    D, E = params["w1"].shape           # (decode_units, encode_units)
    V = params["fc_w"].shape[0]
    emb = params["embedding"].shape[1]
    assert D == E, "Decoder implicitly requires decode_units == encode_units"
    Dp, Ep, embp, Vp = _rup(D, 128), _rup(E, 128), _rup(emb, 128), _rup(V, 128)

    def pad_to(a, shape):
        return jnp.pad(a, [(0, s - d) for s, d in zip(shape, a.shape)])

    # GRU input weights: (3D, E+emb) -> transpose, split [context | embedding],
    # then gate-major (3, in, D) so the kernel never slices the lane axis.
    w_ih_t = params["gru_w_ih"].T                                  # (E+emb, 3D)
    w_ctx = w_ih_t[:E].reshape(E, 3, D).transpose(1, 0, 2)         # (3, E, D)
    w_emb = w_ih_t[E:].reshape(emb, 3, D).transpose(1, 0, 2)       # (3, emb, D)
    b_ih = params["gru_b_ih"].reshape(3, 1, D)
    b_hh = params["gru_b_hh"].reshape(3, 1, D)

    return {
        "emb_table": pad_to(params["embedding"], (params["embedding"].shape[0], embp)),
        "w1_t": pad_to(params["w1"].T, (Ep, Dp)),
        "b1": pad_to(params["b1"], (1, Dp)),
        "w2_t": pad_to(params["w2"].T, (Ep, Dp)),
        "b2": pad_to(params["b2"], (1, Dp)),
        "v_row": pad_to(params["v_w"], (1, Dp)),
        "v_b": params["v_b"],                                      # (1, 1)
        "w_ctx": pad_to(w_ctx, (3, Ep, Dp)),
        "w_emb": pad_to(w_emb, (3, embp, Dp)),
        "b_ih": pad_to(b_ih, (3, 1, Dp)),
        "b_hh": pad_to(b_hh, (3, 1, Dp)),
        "fc_w_t": pad_to(params["fc_w"].T, (Dp, Vp)),
        "fc_b": pad_to(params["fc_b"], (1, Vp)),
        "dims": (D, E, emb, V),
    }


def decoder_forward(x_tokens, hidden, encode_output, prep):
    """x_tokens: (B,1) int32; hidden: (1,B,D) f32; encode_output: (B,L,E) f32."""
    B, L, E = encode_output.shape
    D, E0, emb, V = prep["dims"]
    assert E == E0
    Ep, Dp = prep["w1_t"].shape
    embp = prep["w_emb"].shape[1]
    Vp = prep["fc_w_t"].shape[1]
    Bp, Lp = _rup(B, 8), _rup(L, 128)

    # Vocab tile for the output projection (keeps fc_w VMEM footprint bounded).
    TV = 512 if Vp % 512 == 0 else (256 if Vp % 256 == 0 else 128)
    n_vt = Vp // TV

    # TODO(synk): embedding lookup is a tiny data-dependent gather; done with
    # jnp.take in the wrapper rather than a dedicated DMA-gather kernel.
    x_emb = jnp.take(prep["emb_table"], x_tokens[:, 0], axis=0)    # (B, embp)
    hid = hidden[0]                                                # (B, D)

    # Zero-pad activations so every kernel operand / store is (8,128)-aligned.
    enc_p = jnp.pad(encode_output, ((0, Bp - B), (0, Lp - L), (0, Ep - E)))
    hid_p = jnp.pad(hid, ((0, Bp - B), (0, Ep - D)))
    xemb_p = jnp.pad(x_emb, ((0, Bp - B), (0, 0)))

    kernel = functools.partial(decoder_kernel, L)

    in_specs = [
        pl.BlockSpec((Bp, Lp, Ep), lambda j: (0, 0, 0)),     # enc
        pl.BlockSpec((Bp, Ep), lambda j: (0, 0)),            # hidden
        pl.BlockSpec((Bp, embp), lambda j: (0, 0)),          # x embedding
        pl.BlockSpec((Ep, Dp), lambda j: (0, 0)),            # W1^T
        pl.BlockSpec((1, Dp), lambda j: (0, 0)),             # b1
        pl.BlockSpec((Ep, Dp), lambda j: (0, 0)),            # W2^T
        pl.BlockSpec((1, Dp), lambda j: (0, 0)),             # b2
        pl.BlockSpec((1, Dp), lambda j: (0, 0)),             # V weight row
        pl.BlockSpec((1, 1), lambda j: (0, 0)),              # V bias
        pl.BlockSpec((3, Ep, Dp), lambda j: (0, 0, 0)),      # GRU W (context part)
        pl.BlockSpec((3, embp, Dp), lambda j: (0, 0, 0)),    # GRU W (embedding part)
        pl.BlockSpec((3, 1, Dp), lambda j: (0, 0, 0)),       # GRU b_ih
        pl.BlockSpec((3, 1, Dp), lambda j: (0, 0, 0)),       # GRU b_hh
        pl.BlockSpec((Dp, TV), lambda j: (0, j)),            # fc_w^T (vocab-tiled)
        pl.BlockSpec((1, TV), lambda j: (0, j)),             # fc_b   (vocab-tiled)
    ]
    out_specs = [
        pl.BlockSpec((Bp, TV), lambda j: (0, j)),            # logits (vocab-tiled)
        pl.BlockSpec((Bp, Dp), lambda j: (0, 0)),            # new hidden state
        pl.BlockSpec((Bp, Lp), lambda j: (0, 0)),            # attention weights
    ]
    out_shape = (
        jax.ShapeDtypeStruct((Bp, Vp), jnp.float32),
        jax.ShapeDtypeStruct((Bp, Dp), jnp.float32),
        jax.ShapeDtypeStruct((Bp, Lp), jnp.float32),
    )

    grid_spec = pltpu.PrefetchScalarGridSpec(
        num_scalar_prefetch=0,
        grid=(n_vt,),
        in_specs=in_specs,
        out_specs=out_specs,
        scratch_shapes=[pltpu.VMEM((Bp, Dp), jnp.float32)],   # persistent hidden state
    )

    logits_p, state_p, attn_p = pl.pallas_call(
        kernel,
        out_shape=out_shape,
        grid_spec=grid_spec,
        compiler_params=pltpu.CompilerParams(
            dimension_semantics=("arbitrary",),               # vocab tiles reuse scratch
            vmem_limit_bytes=32 * 1024 * 1024,
        ),
    )(enc_p, hid_p, xemb_p,
      prep["w1_t"], prep["b1"], prep["w2_t"], prep["b2"],
      prep["v_row"], prep["v_b"],
      prep["w_ctx"], prep["w_emb"], prep["b_ih"], prep["b_hh"],
      prep["fc_w_t"], prep["fc_b"])

    output = logits_p[:B, :V]                 # (B, vocab)
    state = state_p[:B, :D][None]             # (1, B, D) torch GRU state layout
    attention_weights = attn_p[:B, :L, None]  # (B, L, 1)
    return output, state, attention_weights


def reference_forward(x_tokens, hidden, encode_output, params):
    """Pure-JAX reference mirroring the PyTorch forward."""
    hid = hidden[0]
    s1 = encode_output @ params["w1"].T + params["b1"]
    s2 = hid @ params["w2"].T + params["b2"]
    score = jnp.tanh(s1 + s2[:, None, :])
    v = score @ params["v_w"].T + params["v_b"]
    attn = jax.nn.softmax(v, axis=1)
    context = jnp.sum(attn * encode_output, axis=1)
    x_emb = jnp.take(params["embedding"], x_tokens[:, 0], axis=0)
    x_cat = jnp.concatenate([context, x_emb], axis=-1)
    D = params["w1"].shape[0]
    gi = x_cat @ params["gru_w_ih"].T + params["gru_b_ih"]
    gh = jnp.broadcast_to(params["gru_b_hh"], gi.shape)
    r = jax.nn.sigmoid(gi[:, :D] + gh[:, :D])
    z = jax.nn.sigmoid(gi[:, D:2 * D] + gh[:, D:2 * D])
    n = jnp.tanh(gi[:, 2 * D:] + r * gh[:, 2 * D:])
    h_new = (1.0 - z) * n
    logits = h_new @ params["fc_w"].T + params["fc_b"]
    return logits, h_new[None], attn


def init_params(key, vocab_size, embedding_dim, decode_units, encode_units):
    ks = jax.random.split(key, 12)
    D, E, emb = decode_units, encode_units, embedding_dim
    u = lambda k, shape, fan_in: jax.random.uniform(
        k, shape, jnp.float32, -1.0 / jnp.sqrt(fan_in), 1.0 / jnp.sqrt(fan_in))
    return {
        "embedding": jax.random.normal(ks[0], (vocab_size, emb), jnp.float32),
        "w1": u(ks[1], (D, E), E), "b1": u(ks[2], (1, D), E),
        "w2": u(ks[3], (D, E), E), "b2": u(ks[4], (1, D), E),
        "v_w": u(ks[5], (1, E), E), "v_b": u(ks[6], (1, 1), E),
        "gru_w_ih": u(ks[7], (3 * D, emb + E), D),
        "gru_b_ih": u(ks[8], (1, 3 * D), D),
        "gru_b_hh": u(ks[9], (1, 3 * D), D),
        "fc_w": u(ks[10], (vocab_size, E), E),
        "fc_b": u(ks[11], (1, vocab_size), E),
    }


if __name__ == "__main__":
    vocab_size, embedding_dim = 50, 16
    encode_units = decode_units = 32      # module implicitly requires equality
    batch, max_length = 2, 8

    key = jax.random.PRNGKey(0)
    kp, kx, kh, ke = jax.random.split(key, 4)
    params = init_params(kp, vocab_size, embedding_dim, decode_units, encode_units)
    prep = prepare_params(params)

    x = jax.random.randint(kx, (batch, 1), 0, vocab_size, dtype=jnp.int32)
    hidden = jax.random.normal(kh, (1, batch, decode_units), jnp.float32)
    encode_output = jax.random.normal(ke, (batch, max_length, encode_units), jnp.float32)

    out, state, attn = decoder_forward(x, hidden, encode_output, prep)
    jax.block_until_ready((out, state, attn))

    ref_out, ref_state, ref_attn = reference_forward(x, hidden, encode_output, params)
    assert out.shape == (batch, vocab_size)
    assert state.shape == (1, batch, decode_units)
    assert attn.shape == (batch, max_length, 1)
    assert jnp.allclose(out, ref_out, rtol=2e-3, atol=2e-3)
    assert jnp.allclose(state, ref_state, rtol=2e-3, atol=2e-3)
    assert jnp.allclose(attn, ref_attn, rtol=2e-3, atol=2e-3)

    print("KERNEL_OK")
</pallas_src>

<mosaic_0001>
module attributes {stable_mosaic.version = 11 : i64} {
  func.func @decoder_kernel(%arg0: i32, %arg1: memref<8x128x128xf32, #tpu.memory_space<vmem>>, %arg2: memref<8x128xf32, #tpu.memory_space<vmem>>, %arg3: memref<8x128xf32, #tpu.memory_space<vmem>>, %arg4: memref<128x128xf32, #tpu.memory_space<vmem>>, %arg5: memref<1x128xf32, #tpu.memory_space<vmem>>, %arg6: memref<128x128xf32, #tpu.memory_space<vmem>>, %arg7: memref<1x128xf32, #tpu.memory_space<vmem>>, %arg8: memref<1x128xf32, #tpu.memory_space<vmem>>, %arg9: memref<1x1xf32, #tpu.memory_space<vmem>>, %arg10: memref<3x128x128xf32, #tpu.memory_space<vmem>>, %arg11: memref<3x128x128xf32, #tpu.memory_space<vmem>>, %arg12: memref<3x1x128xf32, #tpu.memory_space<vmem>>, %arg13: memref<3x1x128xf32, #tpu.memory_space<vmem>>, %arg14: memref<128x128xf32, #tpu.memory_space<vmem>>, %arg15: memref<1x128xf32, #tpu.memory_space<vmem>>, %arg16: memref<8x128xf32, #tpu.memory_space<vmem>>, %arg17: memref<8x128xf32, #tpu.memory_space<vmem>>, %arg18: memref<8x128xf32, #tpu.memory_space<vmem>>, %arg19: memref<8x128xf32, #tpu.memory_space<vmem>>) attributes {dimension_semantics = [#tpu.dimension_semantics<arbitrary>], iteration_bounds = array<i64: 1>, scalar_prefetch = 0 : i64, scratch_operands = 1 : i64, tpu.core_type = #tpu.core_type<tc>, window_params = [{pipeline_mode = #tpu.pipeline_mode<synchronous>, transform_indices = @transform_0, window_bounds = array<i64: 8, 128, 128>}, {pipeline_mode = #tpu.pipeline_mode<synchronous>, transform_indices = @transform_1, window_bounds = array<i64: 8, 128>}, {pipeline_mode = #tpu.pipeline_mode<synchronous>, transform_indices = @transform_2, window_bounds = array<i64: 8, 128>}, {pipeline_mode = #tpu.pipeline_mode<synchronous>, transform_indices = @transform_3, window_bounds = array<i64: 128, 128>}, {pipeline_mode = #tpu.pipeline_mode<synchronous>, transform_indices = @transform_4, window_bounds = array<i64: 1, 128>}, {pipeline_mode = #tpu.pipeline_mode<synchronous>, transform_indices = @transform_5, window_bounds = array<i64: 128, 128>}, {pipeline_mode = #tpu.pipeline_mode<synchronous>, transform_indices = @transform_6, window_bounds = array<i64: 1, 128>}, {pipeline_mode = #tpu.pipeline_mode<synchronous>, transform_indices = @transform_7, window_bounds = array<i64: 1, 128>}, {pipeline_mode = #tpu.pipeline_mode<synchronous>, transform_indices = @transform_8, window_bounds = array<i64: 1, 1>}, {pipeline_mode = #tpu.pipeline_mode<synchronous>, transform_indices = @transform_9, window_bounds = array<i64: 3, 128, 128>}, {pipeline_mode = #tpu.pipeline_mode<synchronous>, transform_indices = @transform_10, window_bounds = array<i64: 3, 128, 128>}, {pipeline_mode = #tpu.pipeline_mode<synchronous>, transform_indices = @transform_11, window_bounds = array<i64: 3, 1, 128>}, {pipeline_mode = #tpu.pipeline_mode<synchronous>, transform_indices = @transform_12, window_bounds = array<i64: 3, 1, 128>}, {transform_indices = @transform_13, window_bounds = array<i64: 128, 128>}, {transform_indices = @transform_14, window_bounds = array<i64: 1, 128>}, {transform_indices = @transform_15, window_bounds = array<i64: 8, 128>}, {pipeline_mode = #tpu.pipeline_mode<synchronous>, transform_indices = @transform_16, window_bounds = array<i64: 8, 128>}, {pipeline_mode = #tpu.pipeline_mode<synchronous>, transform_indices = @transform_17, window_bounds = array<i64: 8, 128>}]} {
    %c0_i32 = arith.constant 0 : i32
    %0 = arith.cmpi eq, %arg0, %c0_i32 : i32
    %1 = arith.extui %0 : i1 to i32
    %c0_i32_0 = arith.constant 0 : i32
    %2 = arith.cmpi ne, %1, %c0_i32_0 : i32
    scf.if %2 {
      %c0_8 = arith.constant 0 : index
      %c0_9 = arith.constant 0 : index
      %c0_10 = arith.constant 0 : index
      %10 = vector.load %arg1[%c0_8, %c0_9, %c0_10] : memref<8x128x128xf32, #tpu.memory_space<vmem>>, vector<8x128x128xf32>
      %11 = vector.shape_cast %10 : vector<8x128x128xf32> to vector<1024x128xf32>
      %c0_11 = arith.constant 0 : index
      %c0_12 = arith.constant 0 : index
      %12 = vector.load %arg4[%c0_11, %c0_12] : memref<128x128xf32, #tpu.memory_space<vmem>>, vector<128x128xf32>
      %cst_13 = arith.constant dense<0.000000e+00> : vector<1024x128xf32>
      %13 = tpu.matmul %11, %12, %cst_13 {dimension_numbers = #tpu.dot_dimension_numbers<[1], [0], [0], [1], [0, 0, 1, 1], [], []>} : vector<1024x128xf32>, vector<128x128xf32>, vector<1024x128xf32> -> vector<1024x128xf32>
      %14 = vector.shape_cast %13 : vector<1024x128xf32> to vector<8x128x128xf32>
      %c0_14 = arith.constant 0 : index
      %c0_15 = arith.constant 0 : index
      %15 = vector.load %arg2[%c0_14, %c0_15] : memref<8x128xf32, #tpu.memory_space<vmem>>, vector<8x128xf32>
      %c0_16 = arith.constant 0 : index
      %c0_17 = arith.constant 0 : index
      %16 = vector.load %arg6[%c0_16, %c0_17] : memref<128x128xf32, #tpu.memory_space<vmem>>, vector<128x128xf32>
      %cst_18 = arith.constant dense<0.000000e+00> : vector<8x128xf32>
      %17 = tpu.matmul %15, %16, %cst_18 {dimension_numbers = #tpu.dot_dimension_numbers<[1], [0], [0], [1], [0, 0, 1, 1], [], []>} : vector<8x128xf32>, vector<128x128xf32>, vector<8x128xf32> -> vector<8x128xf32>
      %c0_19 = arith.constant 0 : index
      %c0_20 = arith.constant 0 : index
      %18 = vector.load %arg7[%c0_19, %c0_20] : memref<1x128xf32, #tpu.memory_space<vmem>>, vector<1x128xf32>
      %19 = vector.broadcast %18 : vector<1x128xf32> to vector<8x128xf32>
      %20 = arith.addf %17, %19 : vector<8x128xf32>
      %c0_21 = arith.constant 0 : index
      %c0_22 = arith.constant 0 : index
      %21 = vector.load %arg5[%c0_21, %c0_22] : memref<1x128xf32, #tpu.memory_space<vmem>>, vector<1x128xf32>
      %22 = vector.shape_cast %21 : vector<1x128xf32> to vector<1x1x128xf32>
      %23 = vector.broadcast %22 : vector<1x1x128xf32> to vector<8x128x128xf32>
      %24 = arith.addf %14, %23 : vector<8x128x128xf32>
      %25 = vector.shape_cast %20 : vector<8x128xf32> to vector<8x1x128xf32>
      %26 = vector.broadcast %25 : vector<8x1x128xf32> to vector<8x128x128xf32>
      %27 = arith.addf %24, %26 : vector<8x128x128xf32>
      %28 = math.tanh %27 : vector<8x128x128xf32>
      %c0_23 = arith.constant 0 : index
      %c0_24 = arith.constant 0 : index
      %29 = vector.load %arg8[%c0_23, %c0_24] : memref<1x128xf32, #tpu.memory_space<vmem>>, vector<1x128xf32>
      %30 = vector.shape_cast %29 : vector<1x128xf32> to vector<1x1x128xf32>
      %31 = vector.broadcast %30 : vector<1x1x128xf32> to vector<8x128x128xf32>
      %32 = arith.mulf %28, %31 : vector<8x128x128xf32>
      %cst_25 = arith.constant dense<0.000000e+00> : vector<8x128xf32>
      %33 = vector.multi_reduction <add>, %32, %cst_25 [2] : vector<8x128x128xf32> to vector<8x128xf32>
      %c0_26 = arith.constant 0 : index
      %c0_27 = arith.constant 0 : index
      %34 = vector.load %arg9[%c0_26, %c0_27] : memref<1x1xf32, #tpu.memory_space<vmem>>, vector<1x1xf32>
      %35 = vector.broadcast %34 : vector<1x1xf32> to vector<8x128xf32>
      %36 = arith.addf %33, %35 : vector<8x128xf32>
      %37 = tpu.iota {dimensions = array<i32: 1>} : vector<8x128xi32>
      %c8_i32 = arith.constant 8 : i32
      %38 = vector.broadcast %c8_i32 : i32 to vector<8x128xi32>
      %39 = arith.cmpi slt, %37, %38 : vector<8x128xi32>
      %cst_28 = arith.constant -1.000000e+30 : f32
      %40 = vector.broadcast %cst_28 : f32 to vector<8x128xf32>
      %41 = arith.select %39, %36, %40 : vector<8x128xi1>, vector<8x128xf32>
      %cst_29 = arith.constant dense<0xFF800000> : vector<8xf32>
      %42 = vector.multi_reduction <maximumf>, %41, %cst_29 [1] : vector<8x128xf32> to vector<8xf32>
      %43 = vector.shape_cast %42 : vector<8xf32> to vector<8x1xf32>
      %44 = vector.broadcast %43 : vector<8x1xf32> to vector<8x128xf32>
      %45 = arith.subf %41, %44 : vector<8x128xf32>
      %46 = math.exp %45 : vector<8x128xf32>
      %cst_30 = arith.constant dense<0.000000e+00> : vector<8xf32>
      %47 = vector.multi_reduction <add>, %46, %cst_30 [1] : vector<8x128xf32> to vector<8xf32>
      %48 = vector.shape_cast %47 : vector<8xf32> to vector<8x1xf32>
      %49 = tpu.reciprocal %48 {approx = true} : vector<8x1xf32> -> vector<8x1xf32>
      %50 = vector.broadcast %49 : vector<8x1xf32> to vector<8x128xf32>
      %51 = arith.mulf %46, %50 : vector<8x128xf32>
      %c0_31 = arith.constant 0 : index
      %c0_32 = arith.constant 0 : index
      %52 = vector.load %arg18[%c0_31, %c0_32] : memref<8x128xf32, #tpu.memory_space<vmem>>, vector<8x128xf32>
      tpu.vector_store %arg18[%c0_31, %c0_32], %51 {strides = array<i32>} : memref<8x128xf32, #tpu.memory_space<vmem>>, vector<8x128xf32>,
      %53 = vector.shape_cast %51 : vector<8x128xf32> to vector<8x128x1xf32>
      %54 = vector.broadcast %53 : vector<8x128x1xf32> to vector<8x128x128xf32>
      %55 = arith.mulf %54, %10 : vector<8x128x128xf32>
      %cst_33 = arith.constant dense<0.000000e+00> : vector<8x128xf32>
      %56 = vector.multi_reduction <add>, %55, %cst_33 [1] : vector<8x128x128xf32> to vector<8x128xf32>
      %c0_34 = arith.constant 0 : index
      %c0_35 = arith.constant 0 : index
      %57 = vector.load %arg3[%c0_34, %c0_35] : memref<8x128xf32, #tpu.memory_space<vmem>>, vector<8x128xf32>
      %c0_36 = arith.constant 0 : index
      %c0_37 = arith.constant 0 : index
      %c0_38 = arith.constant 0 : index
      %58 = vector.load %arg10[%c0_36, %c0_37, %c0_38] : memref<3x128x128xf32, #tpu.memory_space<vmem>>, vector<1x128x128xf32>
      %59 = vector.shape_cast %58 : vector<1x128x128xf32> to vector<128x128xf32>
      %cst_39 = arith.constant dense<0.000000e+00> : vector<8x128xf32>
      %60 = tpu.matmul %56, %59, %cst_39 {dimension_numbers = #tpu.dot_dimension_numbers<[1], [0], [0], [1], [0, 0, 1, 1], [], []>} : vector<8x128xf32>, vector<128x128xf32>, vector<8x128xf32> -> vector<8x128xf32>
      %c0_40 = arith.constant 0 : index
      %c0_41 = arith.constant 0 : index
      %c0_42 = arith.constant 0 : index
      %61 = vector.load %arg11[%c0_40, %c0_41, %c0_42] : memref<3x128x128xf32, #tpu.memory_space<vmem>>, vector<1x128x128xf32>
      %62 = vector.shape_cast %61 : vector<1x128x128xf32> to vector<128x128xf32>
      %cst_43 = arith.constant dense<0.000000e+00> : vector<8x128xf32>
      %63 = tpu.matmul %57, %62, %cst_43 {dimension_numbers = #tpu.dot_dimension_numbers<[1], [0], [0], [1], [0, 0, 1, 1], [], []>} : vector<8x128xf32>, vector<128x128xf32>, vector<8x128xf32> -> vector<8x128xf32>
      %64 = arith.addf %60, %63 : vector<8x128xf32>
      %c0_44 = arith.constant 0 : index
      %c0_45 = arith.constant 0 : index
      %c0_46 = arith.constant 0 : index
      %65 = vector.load %arg12[%c0_44, %c0_45, %c0_46] : memref<3x1x128xf32, #tpu.memory_space<vmem>>, vector<1x1x128xf32>
      %66 = vector.shape_cast %65 : vector<1x1x128xf32> to vector<1x128xf32>
      %67 = vector.broadcast %66 : vector<1x128xf32> to vector<8x128xf32>
      %68 = arith.addf %64, %67 : vector<8x128xf32>
      %c0_47 = arith.constant 0 : index
      %c0_48 = arith.constant 0 : index
      %c0_49 = arith.constant 0 : index
      %69 = vector.load %arg13[%c0_47, %c0_48, %c0_49] : memref<3x1x128xf32, #tpu.memory_space<vmem>>, vector<1x1x128xf32>
      %70 = vector.shape_cast %69 : vector<1x1x128xf32> to vector<1x128xf32>
      %71 = vector.broadcast %70 : vector<1x128xf32> to vector<8x128xf32>
      %72 = arith.addf %68, %71 : vector<8x128xf32>
      %73 = arith.negf %72 : vector<8x128xf32>
      %74 = math.exp %73 : vector<8x128xf32>
      %cst_50 = arith.constant 1.000000e+00 : f32
      %75 = vector.broadcast %cst_50 : f32 to vector<8x128xf32>
      %76 = arith.addf %75, %74 : vector<8x128xf32>
      %77 = arith.divf %75, %76 : vector<8x128xf32>
      %c1 = arith.constant 1 : index
      %c0_51 = arith.constant 0 : index
      %c0_52 = arith.constant 0 : index
      %78 = vector.load %arg10[%c1, %c0_51, %c0_52] : memref<3x128x128xf32, #tpu.memory_space<vmem>>, vector<1x128x128xf32>
      %79 = vector.shape_cast %78 : vector<1x128x128xf32> to vector<128x128xf32>
      %cst_53 = arith.constant dense<0.000000e+00> : vector<8x128xf32>
      %80 = tpu.matmul %56, %79, %cst_53 {dimension_numbers = #tpu.dot_dimension_numbers<[1], [0], [0], [1], [0, 0, 1, 1], [], []>} : vector<8x128xf32>, vector<128x128xf32>, vector<8x128xf32> -> vector<8x128xf32>
      %c1_54 = arith.constant 1 : index
      %c0_55 = arith.constant 0 : index
      %c0_56 = arith.constant 0 : index
      %81 = vector.load %arg11[%c1_54, %c0_55, %c0_56] : memref<3x128x128xf32, #tpu.memory_space<vmem>>, vector<1x128x128xf32>
      %82 = vector.shape_cast %81 : vector<1x128x128xf32> to vector<128x128xf32>
      %cst_57 = arith.constant dense<0.000000e+00> : vector<8x128xf32>
      %83 = tpu.matmul %57, %82, %cst_57 {dimension_numbers = #tpu.dot_dimension_numbers<[1], [0], [0], [1], [0, 0, 1, 1], [], []>} : vector<8x128xf32>, vector<128x128xf32>, vector<8x128xf32> -> vector<8x128xf32>
      %84 = arith.addf %80, %83 : vector<8x128xf32>
      %c1_58 = arith.constant 1 : index
      %c0_59 = arith.constant 0 : index
      %c0_60 = arith.constant 0 : index
      %85 = vector.load %arg12[%c1_58, %c0_59, %c0_60] : memref<3x1x128xf32, #tpu.memory_space<vmem>>, vector<1x1x128xf32>
      %86 = vector.shape_cast %85 : vector<1x1x128xf32> to vector<1x128xf32>
      %87 = vector.broadcast %86 : vector<1x128xf32> to vector<8x128xf32>
      %88 = arith.addf %84, %87 : vector<8x128xf32>
      %c1_61 = arith.constant 1 : index
      %c0_62 = arith.constant 0 : index
      %c0_63 = arith.constant 0 : index
      %89 = vector.load %arg13[%c1_61, %c0_62, %c0_63] : memref<3x1x128xf32, #tpu.memory_space<vmem>>, vector<1x1x128xf32>
      %90 = vector.shape_cast %89 : vector<1x1x128xf32> to vector<1x128xf32>
      %91 = vector.broadcast %90 : vector<1x128xf32> to vector<8x128xf32>
      %92 = arith.addf %88, %91 : vector<8x128xf32>
      %93 = arith.negf %92 : vector<8x128xf32>
      %94 = math.exp %93 : vector<8x128xf32>
      %cst_64 = arith.constant 1.000000e+00 : f32
      %95 = vector.broadcast %cst_64 : f32 to vector<8x128xf32>
      %96 = arith.addf %95, %94 : vector<8x128xf32>
      %97 = arith.divf %95, %96 : vector<8x128xf32>
      %c2 = arith.constant 2 : index
      %c0_65 = arith.constant 0 : index
      %c0_66 = arith.constant 0 : index
      %98 = vector.load %arg10[%c2, %c0_65, %c0_66] : memref<3x128x128xf32, #tpu.memory_space<vmem>>, vector<1x128x128xf32>
      %99 = vector.shape_cast %98 : vector<1x128x128xf32> to vector<128x128xf32>
      %cst_67 = arith.constant dense<0.000000e+00> : vector<8x128xf32>
      %100 = tpu.matmul %56, %99, %cst_67 {dimension_numbers = #tpu.dot_dimension_numbers<[1], [0], [0], [1], [0, 0, 1, 1], [], []>} : vector<8x128xf32>, vector<128x128xf32>, vector<8x128xf32> -> vector<8x128xf32>
      %c2_68 = arith.constant 2 : index
      %c0_69 = arith.constant 0 : index
      %c0_70 = arith.constant 0 : index
      %101 = vector.load %arg11[%c2_68, %c0_69, %c0_70] : memref<3x128x128xf32, #tpu.memory_space<vmem>>, vector<1x128x128xf32>
      %102 = vector.shape_cast %101 : vector<1x128x128xf32> to vector<128x128xf32>
      %cst_71 = arith.constant dense<0.000000e+00> : vector<8x128xf32>
      %103 = tpu.matmul %57, %102, %cst_71 {dimension_numbers = #tpu.dot_dimension_numbers<[1], [0], [0], [1], [0, 0, 1, 1], [], []>} : vector<8x128xf32>, vector<128x128xf32>, vector<8x128xf32> -> vector<8x128xf32>
      %104 = arith.addf %100, %103 : vector<8x128xf32>
      %c2_72 = arith.constant 2 : index
      %c0_73 = arith.constant 0 : index
      %c0_74 = arith.constant 0 : index
      %105 = vector.load %arg12[%c2_72, %c0_73, %c0_74] : memref<3x1x128xf32, #tpu.memory_space<vmem>>, vector<1x1x128xf32>
      %106 = vector.shape_cast %105 : vector<1x1x128xf32> to vector<1x128xf32>
      %107 = vector.broadcast %106 : vector<1x128xf32> to vector<8x128xf32>
      %108 = arith.addf %104, %107 : vector<8x128xf32>
      %c2_75 = arith.constant 2 : index
      %c0_76 = arith.constant 0 : index
      %c0_77 = arith.constant 0 : index
      %109 = vector.load %arg13[%c2_75, %c0_76, %c0_77] : memref<3x1x128xf32, #tpu.memory_space<vmem>>, vector<1x1x128xf32>
      %110 = vector.shape_cast %109 : vector<1x1x128xf32> to vector<1x128xf32>
      %111 = vector.broadcast %110 : vector<1x128xf32> to vector<8x128xf32>
      %112 = arith.mulf %77, %111 : vector<8x128xf32>
      %113 = arith.addf %108, %112 : vector<8x128xf32>
      %114 = math.tanh %113 : vector<8x128xf32>
      %cst_78 = arith.constant 1.000000e+00 : f32
      %115 = vector.broadcast %cst_78 : f32 to vector<8x128xf32>
      %116 = arith.subf %115, %97 : vector<8x128xf32>
      %117 = arith.mulf %116, %114 : vector<8x128xf32>
      %c0_79 = arith.constant 0 : index
      %c0_80 = arith.constant 0 : index
      %118 = vector.load %arg19[%c0_79, %c0_80] : memref<8x128xf32, #tpu.memory_space<vmem>>, vector<8x128xf32>
      tpu.vector_store %arg19[%c0_79, %c0_80], %117 {strides = array<i32>} : memref<8x128xf32, #tpu.memory_space<vmem>>, vector<8x128xf32>,
      %c0_81 = arith.constant 0 : index
      %c0_82 = arith.constant 0 : index
      %119 = vector.load %arg17[%c0_81, %c0_82] : memref<8x128xf32, #tpu.memory_space<vmem>>, vector<8x128xf32>
      tpu.vector_store %arg17[%c0_81, %c0_82], %117 {strides = array<i32>} : memref<8x128xf32, #tpu.memory_space<vmem>>, vector<8x128xf32>,
    } else {
    }
    %c0 = arith.constant 0 : index
    %c0_1 = arith.constant 0 : index
    %3 = vector.load %arg19[%c0, %c0_1] : memref<8x128xf32, #tpu.memory_space<vmem>>, vector<8x128xf32>
    %c0_2 = arith.constant 0 : index
    %c0_3 = arith.constant 0 : index
    %4 = vector.load %arg14[%c0_2, %c0_3] : memref<128x128xf32, #tpu.memory_space<vmem>>, vector<128x128xf32>
    %cst = arith.constant dense<0.000000e+00> : vector<8x128xf32>
    %5 = tpu.matmul %3, %4, %cst {dimension_numbers = #tpu.dot_dimension_numbers<[1], [0], [0], [1], [0, 0, 1, 1], [], []>} : vector<8x128xf32>, vector<128x128xf32>, vector<8x128xf32> -> vector<8x128xf32>
    %c0_4 = arith.constant 0 : index
    %c0_5 = arith.constant 0 : index
    %6 = vector.load %arg15[%c0_4, %c0_5] : memref<1x128xf32, #tpu.memory_space<vmem>>, vector<1x128xf32>
    %7 = vector.broadcast %6 : vector<1x128xf32> to vector<8x128xf32>
    %8 = arith.addf %5, %7 : vector<8x128xf32>
    %c0_6 = arith.constant 0 : index
    %c0_7 = arith.constant 0 : index
    %9 = vector.load %arg16[%c0_6, %c0_7] : memref<8x128xf32, #tpu.memory_space<vmem>>, vector<8x128xf32>
    tpu.vector_store %arg16[%c0_6, %c0_7], %8 {strides = array<i32>} : memref<8x128xf32, #tpu.memory_space<vmem>>, vector<8x128xf32>,
    return
  }
  func.func @transform_0(%arg0: i32) -> (i32, i32, i32) {
    %c0_i32 = arith.constant 0 : i32
    %c0_i32_0 = arith.constant 0 : i32
    %c0_i32_1 = arith.constant 0 : i32
    %c0_i32_2 = arith.constant 0 : i32
    return %c0_i32, %c0_i32_0, %c0_i32_1 : i32, i32, i32
  }
  func.func @transform_1(%arg0: i32) -> (i32, i32) {
    %c0_i32 = arith.constant 0 : i32
    %c0_i32_0 = arith.constant 0 : i32
    %c0_i32_1 = arith.constant 0 : i32
    return %c0_i32, %c0_i32_0 : i32, i32
  }
  func.func @transform_2(%arg0: i32) -> (i32, i32) {
    %c0_i32 = arith.constant 0 : i32
    %c0_i32_0 = arith.constant 0 : i32
    %c0_i32_1 = arith.constant 0 : i32
    return %c0_i32, %c0_i32_0 : i32, i32
  }
  func.func @transform_3(%arg0: i32) -> (i32, i32) {
    %c0_i32 = arith.constant 0 : i32
    %c0_i32_0 = arith.constant 0 : i32
    %c0_i32_1 = arith.constant 0 : i32
    return %c0_i32, %c0_i32_0 : i32, i32
  }
  func.func @transform_4(%arg0: i32) -> (i32, i32) {
    %c0_i32 = arith.constant 0 : i32
    %c0_i32_0 = arith.constant 0 : i32
    %c0_i32_1 = arith.constant 0 : i32
    return %c0_i32, %c0_i32_0 : i32, i32
  }
  func.func @transform_5(%arg0: i32) -> (i32, i32) {
    %c0_i32 = arith.constant 0 : i32
    %c0_i32_0 = arith.constant 0 : i32
    %c0_i32_1 = arith.constant 0 : i32
    return %c0_i32, %c0_i32_0 : i32, i32
  }
  func.func @transform_6(%arg0: i32) -> (i32, i32) {
    %c0_i32 = arith.constant 0 : i32
    %c0_i32_0 = arith.constant 0 : i32
    %c0_i32_1 = arith.constant 0 : i32
    return %c0_i32, %c0_i32_0 : i32, i32
  }
  func.func @transform_7(%arg0: i32) -> (i32, i32) {
    %c0_i32 = arith.constant 0 : i32
    %c0_i32_0 = arith.constant 0 : i32
    %c0_i32_1 = arith.constant 0 : i32
    return %c0_i32, %c0_i32_0 : i32, i32
  }
  func.func @transform_8(%arg0: i32) -> (i32, i32) {
    %c0_i32 = arith.constant 0 : i32
    %c0_i32_0 = arith.constant 0 : i32
    %c0_i32_1 = arith.constant 0 : i32
    return %c0_i32, %c0_i32_0 : i32, i32
  }
  func.func @transform_9(%arg0: i32) -> (i32, i32, i32) {
    %c0_i32 = arith.constant 0 : i32
    %c0_i32_0 = arith.constant 0 : i32
    %c0_i32_1 = arith.constant 0 : i32
    %c0_i32_2 = arith.constant 0 : i32
    return %c0_i32, %c0_i32_0, %c0_i32_1 : i32, i32, i32
  }
  func.func @transform_10(%arg0: i32) -> (i32, i32, i32) {
    %c0_i32 = arith.constant 0 : i32
    %c0_i32_0 = arith.constant 0 : i32
    %c0_i32_1 = arith.constant 0 : i32
    %c0_i32_2 = arith.constant 0 : i32
    return %c0_i32, %c0_i32_0, %c0_i32_1 : i32, i32, i32
  }
  func.func @transform_11(%arg0: i32) -> (i32, i32, i32) {
    %c0_i32 = arith.constant 0 : i32
    %c0_i32_0 = arith.constant 0 : i32
    %c0_i32_1 = arith.constant 0 : i32
    %c0_i32_2 = arith.constant 0 : i32
    return %c0_i32, %c0_i32_0, %c0_i32_1 : i32, i32, i32
  }
  func.func @transform_12(%arg0: i32) -> (i32, i32, i32) {
    %c0_i32 = arith.constant 0 : i32
    %c0_i32_0 = arith.constant 0 : i32
    %c0_i32_1 = arith.constant 0 : i32
    %c0_i32_2 = arith.constant 0 : i32
    return %c0_i32, %c0_i32_0, %c0_i32_1 : i32, i32, i32
  }
  func.func @transform_13(%arg0: i32) -> (i32, i32) {
    %c0_i32 = arith.constant 0 : i32
    %c0_i32_0 = arith.constant 0 : i32
    return %c0_i32, %arg0 : i32, i32
  }
  func.func @transform_14(%arg0: i32) -> (i32, i32) {
    %c0_i32 = arith.constant 0 : i32
    %c0_i32_0 = arith.constant 0 : i32
    return %c0_i32, %arg0 : i32, i32
  }
  func.func @transform_15(%arg0: i32) -> (i32, i32) {
    %c0_i32 = arith.constant 0 : i32
    %c0_i32_0 = arith.constant 0 : i32
    return %c0_i32, %arg0 : i32, i32
  }
  func.func @transform_16(%arg0: i32) -> (i32, i32) {
    %c0_i32 = arith.constant 0 : i32
    %c0_i32_0 = arith.constant 0 : i32
    %c0_i32_1 = arith.constant 0 : i32
    return %c0_i32, %c0_i32_0 : i32, i32
  }
  func.func @transform_17(%arg0: i32) -> (i32, i32) {
    %c0_i32 = arith.constant 0 : i32
    %c0_i32_0 = arith.constant 0 : i32
    %c0_i32_1 = arith.constant 0 : i32
    return %c0_i32, %c0_i32_0 : i32, i32
  }
}

</mosaic_0001>

<bundles_post_ra>
// kernel: tpu_custom_call.1
= control target key start
LH: loop header
LB: loop body
LE: loop exit
PB: predicated region body
PF: predicated region fallthrough
CT: control target
= control target key end

     0   :  { %s6811_s0 = inlined_call_operand.hbm [shape: f32[8,128,128], index: 0, kind: input, shape index: {}]   ;;  %s6812_s1 = inlined_call_operand.hbm [shape: f32[8,128], index: 1, kind: input, shape index: {}]   ;;  %s6813_s2 = inlined_call_operand.hbm [shape: f32[8,128], index: 2, kind: input, shape index: {}]   ;;  %s6814_s3 = inlined_call_operand.hbm [shape: f32[128,128], index: 3, kind: input, shape index: {}]   ;;  %s6815_s4 = inlined_call_operand.hbm [shape: f32[1,128], index: 4, kind: input, shape index: {}]   ;;  %s6816_s5 = inlined_call_operand.hbm [shape: f32[128,128], index: 5, kind: input, shape index: {}]   ;;  %s6817_s6 = inlined_call_operand.vmem [shape: f32[1,128], index: 6, kind: input, shape index: {}]   ;;  %s6818_s7 = inlined_call_operand.vmem [shape: f32[1,128], index: 7, kind: input, shape index: {}]   ;;  %s6819_s8 = inlined_call_operand.<no memory space> [shape: f32[1,1], index: 8, kind: input, shape index: {}]   ;;  %s6820_s9 = inlined_call_operand.hbm [shape: f32[3,128,128], index: 9, kind: input, shape index: {}]   ;;  %s6821_s10 = inlined_call_operand.hbm [shape: f32[3,128,128], index: 10, kind: input, shape index: {}]   ;;  %s6822_s11 = inlined_call_operand.vmem [shape: f32[3,1,128], index: 11, kind: input, shape index: {}]   ;;  %s6823_s12 = inlined_call_operand.vmem [shape: f32[3,1,128], index: 12, kind: input, shape index: {}]   ;;  %s6824_s13 = inlined_call_operand.hbm [shape: f32[128,128], index: 13, kind: input, shape index: {}]   ;;  %s6825_s14 = inlined_call_operand.vmem [shape: f32[1,128], index: 14, kind: input, shape index: {}]   ;;  %s6826_s15 = inlined_call_operand.hbm [shape: f32[8,128], index: 15, kind: output, shape index: {0}]   ;;  %s6827_s16 = inlined_call_operand.hbm [shape: f32[8,128], index: 16, kind: output, shape index: {1}]   ;;  %s6828_s17 = inlined_call_operand.hbm [shape: f32[8,128], index: 17, kind: output, shape index: {2}]  }
   0x1   :  { %6836 = sst [smem:[#allocation74_spill]] %s6811_s0  ;;  %v23_v0 = vstv %s6819_s8 }
   0x2   :  { %6837 = sst [smem:[#allocation75_spill]] %s6812_s1  ;;  %24 = vst [vmem:[#allocation3] sm:$0x1] %v23_v0 }
   0x3   :  { %25 = vsyncpa [#allocation5], 0 }
   0x4   :  { %26 = vsyncpa [#allocation8], 0 }
   0x5   :  { %27 = vsyncpa [#allocation11], 0 }
   0x6   :  { %28 = vsyncpa [#allocation14], 0 }
   0x7   :  { %29 = vsyncpa [#allocation17], 0 }
   0x8   :  { %30 = vsyncpa [#allocation6], 0  ;;  %s6838_s28 = sld [smem:[#allocation75_spill]] }
   0xe   :  { %s50_s29 = sshll.u32 %s6838_s28, 4  ;;  %s51_s29 = int_to_ptr.hbm [resolvable:$true] %s50_s29 }
   0xf   :  { %31 = vsyncpa [#allocation21], 0  ;;  %s4518_s0 = smov [#allocation7]   ;;  %s71_s8 = sshll.u32 %s6814_s3, 4  ;;  %s72_s8 = int_to_ptr.hbm [resolvable:$true] %s71_s8 }
  0x10   :  { %s52_s30 = sshll.u32 %s4518_s0, 4  ;;  %s4519_s1 = smov [#allocation10]   ;;  %s53_s30 = int_to_ptr.vmem [resolvable:$true] %s52_s30 }
  0x11   :  { %55 = dma.hbm_to_vmem [thread:$0]  %s51_s29, 128, %s53_s30, [#allocation8]  }
  0x12   :  { %s73_s20 = sshll.u32 %s4519_s1, 4  ;;  %s95_s23 = sshll.u32 %s6816_s5, 4  ;;  %s74_s20 = int_to_ptr.vmem [resolvable:$true] %s73_s20  ;;  %s96_s23 = int_to_ptr.hbm [resolvable:$true] %s95_s23 }
  0x13   :  { %s4520_s24 = smov 128   ;;  %s4521_s25 = smov 8  }
  0x14   :  { %79 = dma.hbm_to_vmem [thread:$0]  %s72_s8, 2048, %s74_s20, [#allocation11], %s4520_s24, %s4520_s24, %s4521_s25  }
  0x15   :  { %s127_s28 = sshll.u32 %s6821_s10, 4  ;;  %s4522_s3 = smov [#allocation13]   ;;  %s128_s28 = int_to_ptr.hbm [resolvable:$true] %s127_s28 }
  0x16   :  { %s97_s29 = sshll.u32 %s4522_s3, 4  ;;  %s4523_s5 = smov [#allocation16]   ;;  %s98_s29 = int_to_ptr.vmem [resolvable:$true] %s97_s29 }
  0x17   :  { %103 = dma.hbm_to_vmem [thread:$0]  %s96_s23, 2048, %s98_s29, [#allocation14], %s4520_s24, %s4520_s24, %s4521_s25  }
  0x18   :  { %s129_s0 = sshll.u32 %s4523_s5, 4  ;;  %s6839_s19 = sld [smem:[#allocation74_spill]]  ;;  %s130_s0 = int_to_ptr.vmem [resolvable:$true] %s129_s0 }
  0x19   :  { %135 = dma.hbm_to_vmem [thread:$0]  %s128_s28, 6144, %s130_s0, [#allocation17], %s4520_s24, %s4520_s24, %s4521_s25  }
  0x1a   :  { %s61_s20 = sshll.u32 %s6813_s2, 4  ;;  %s4524_s21 = smov [#allocation4]   ;;  %s62_s20 = int_to_ptr.hbm [resolvable:$true] %s61_s20 }
  0x1b   :  { %s38_s22 = sshll.u32 %s4524_s21, 4  ;;  %s4525_s23 = smov [#allocation9]   ;;  %s39_s22 = int_to_ptr.vmem [resolvable:$true] %s38_s22 }
  0x1c   :  { %s63_s26 = sshll.u32 %s4525_s23, 4  ;;  %s85_s29 = sshll.u32 %s6815_s4, 4  ;;  %s64_s26 = int_to_ptr.vmem [resolvable:$true] %s63_s26  ;;  %s86_s29 = int_to_ptr.hbm [resolvable:$true] %s85_s29 }
  0x1d   :  { %66 = dma.hbm_to_vmem [thread:$0]  %s62_s20, 128, %s64_s26, [#allocation8]  }
  0x1e   :  { %s36_s1 = sshll.u32 %s6839_s19, 4  ;;  %s114_s2 = sshll.u32 %s6820_s9, 4  ;;  %s37_s1 = int_to_ptr.hbm [resolvable:$true] %s36_s1  ;;  %s115_s2 = int_to_ptr.hbm [resolvable:$true] %s114_s2 }
  0x1f   :  { %44 = dma.hbm_to_vmem [thread:$0]  %s37_s1, 16384, %s39_s22, [#allocation5], %s4520_s24, %s4520_s24, %s4521_s25  }
  0x20   :  { %s4526_s0 = smov [#allocation12]   ;;  %s4527_s18 = smov [#allocation15]  }
  0x21   :  { %s87_s30 = sshll.u32 %s4526_s0, 4  ;;  %s116_s19 = sshll.u32 %s4527_s18, 4  ;;  %s88_s30 = int_to_ptr.vmem [resolvable:$true] %s87_s30  ;;  %s117_s19 = int_to_ptr.vmem [resolvable:$true] %s116_s19 }
  0x22   :  { %90 = dma.hbm_to_vmem [thread:$0]  %s86_s29, 16, %s88_s30, [#allocation11]  }
  0x23   :  { %s144_s8 = sshll.u32 %s6824_s13, 4  ;;  %s4528_s4 = smov [#allocation18]   ;;  %s145_s8 = int_to_ptr.hbm [resolvable:$true] %s144_s8 }
  0x24   :  { %122 = dma.hbm_to_vmem [thread:$0]  %s115_s2, 6144, %s117_s19, [#allocation14], %s4520_s24, %s4520_s24, %s4521_s25  }
  0x25   :  { %s146_s20 = sshll.u32 %s4528_s4, 4  ;;  %s147_s20 = int_to_ptr.vmem [resolvable:$true] %s146_s20 }
  0x26   :  { %152 = dma.hbm_to_vmem [thread:$0]  %s145_s8, 2048, %s147_s20, [#allocation17], %s4520_s24, %s4520_s24, %s4521_s25  }
  0x27   :  { %4504 = dma.done.wait [#allocation5], 16384  }
  0x28   :  { %4505 = vsyncadd [#allocation5], 4294950912 }
  0x29   :  { %4506 = dma.done.wait [#allocation8], 256  }
  0x2a   :  { %4507 = vsyncadd [#allocation8], 4294967040 }
  0x2b   :  { %4508 = dma.done.wait [#allocation11], 2064  }
  0x2c   :  { %4509 = vsyncadd [#allocation11], 4294965232 }
  0x2d   :  { %4510 = dma.done.wait [#allocation14], 8192  }
  0x2e   :  { %4511 = vsyncadd [#allocation14], 4294959104 }
  0x2f   :  { %4512 = dma.done.wait [#allocation17], 8192  }
  0x30   :  { %4513 = vsyncadd [#allocation17], 4294959104  ;;  %v338_v1 = vld [vmem:[#allocation10 + $0x78] sm:$0xff]  ;;  %v337_v2 = vld [vmem:[#allocation10 + $0x70] sm:$0xff]  ;;  %vm1850_vm0 = vcmask 130112   ;;  %vm1854_vm1 = vcmask 195712  }
  0x31   :  { %339 = vmatpush.msra.mxu0 %v338_v1  ;;  %3638 = vmatpush.msra.mxu1 %v338_v1  ;;  %v336_v3 = vld [vmem:[#allocation10 + $0x68] sm:$0xff]  ;;  %v335_v4 = vld [vmem:[#allocation10 + $0x60] sm:$0xff]  ;;  %v334_v5 = vld [vmem:[#allocation10 + $0x58] sm:$0xff]  ;;  %vm1858_vm2 = vcmask 261312   ;;  %vm1862_vm3 = vcmask 326912   ;;  %vm1866_vm4 = vcmask 392512  }
  0x32   :  { %3640 = vmatpush.msra.mxu3 %v338_v1  ;;  %3639 = vmatpush.msra.mxu2 %v338_v1  ;;  %v333_v6 = vld [vmem:[#allocation10 + $0x50] sm:$0xff]  ;;  %v332_v7 = vld [vmem:[#allocation10 + $0x48] sm:$0xff]  ;;  %v331_v8 = vld [vmem:[#allocation10 + $0x40] sm:$0xff]  ;;  %vm1870_vm5 = vcmask 458112   ;;  %vm1874_vm6 = vcmask 523712   ;;  %vm1878_vm7 = vcmask 589312  }
  0x33   :  { %340 = vmatpush.msra.mxu0 %v337_v2  ;;  %3641 = vmatpush.msra.mxu1 %v337_v2  ;;  %v330_v9 = vld [vmem:[#allocation10 + $0x38] sm:$0xff]  ;;  %v329_v10 = vld [vmem:[#allocation10 + $0x30] sm:$0xff]  ;;  %v328_v11 = vld [vmem:[#allocation10 + $0x28] sm:$0xff]  ;;  %vm1882_vm8 = vcmask 654912   ;;  %vm1886_vm9 = vcmask 720512   ;;  %vm1890_vm10 = vcmask 786112  }
  0x34   :  { %3643 = vmatpush.msra.mxu3 %v337_v2  ;;  %3642 = vmatpush.msra.mxu2 %v337_v2  ;;  %v327_v12 = vld [vmem:[#allocation10 + $0x20] sm:$0xff]  ;;  %v326_v13 = vld [vmem:[#allocation10 + $0x18] sm:$0xff]  ;;  %v325_v14 = vld [vmem:[#allocation10 + $0x10] sm:$0xff]  ;;  %vm1894_vm11 = vcmask 851712   ;;  %vm1898_vm12 = vcmask 917312   ;;  %vm1902_vm13 = vcmask 982912  }
  0x35   :  { %341 = vmatpush.msra.mxu0 %v336_v3  ;;  %3644 = vmatpush.msra.mxu1 %v336_v3  ;;  %v324_v15 = vld [vmem:[#allocation10 + $0x8] sm:$0xff]  ;;  %v323_v16 = vld [vmem:[#allocation10] sm:$0xff]  ;;  %v195_v17 = vld [vmem:[#allocation4] sm:$0xff]  ;;  %vm1906_vm14 = vcmask 1048512   ;;  %vm2125_vm15 = vcmask 1041409   ;;  %s3598_s18 = sshll.u32 %s6827_s16, 4  ;;  %s3599_s18 = int_to_ptr.hbm [resolvable:$true] %s3598_s18 }
  0x36   :  { %3646 = vmatpush.msra.mxu3 %v336_v3  ;;  %3645 = vmatpush.msra.mxu2 %v336_v3  ;;  %v233_v18 = vld [vmem:[#allocation4 + $0x130] sm:$0xff]  ;;  %v290_v19 = vld [vmem:[#allocation4 + $0x2f8] sm:$0xff]  ;;  %v755_v22 = vld [vmem:[#allocation13 + $0x70] sm:$0xff]  ;;  %s4530_s19 = smov [#allocation20]   ;;  %s3609_s4 = sshll.u32 %s6828_s17, 4  ;;  %s3610_s4 = int_to_ptr.hbm [resolvable:$true] %s3609_s4 }
  0x37   :  { %342 = vmatpush.msra.mxu0 %v335_v4  ;;  %3647 = vmatpush.msra.mxu1 %v335_v4  ;;  %v756_v20 = vld [vmem:[#allocation13 + $0x78] sm:$0xff]  ;;  %v262_v21 = vld [vmem:[#allocation4 + $0x218] sm:$0xff]  ;;  %v291_v26 = vld [vmem:[#allocation4 + $0x300] sm:$0xff]  ;;  %s3596_s1 = sshll.u32 %s4530_s19, 4  ;;  %s4531_s20 = smov [#allocation22]   ;;  %s3597_s1 = int_to_ptr.vmem [resolvable:$true] %s3596_s1 }
  0x38   :  { %3649 = vmatpush.msra.mxu3 %v335_v4  ;;  %3648 = vmatpush.msra.mxu2 %v335_v4  ;;  %v754_v23 = vld [vmem:[#allocation13 + $0x68] sm:$0xff]  ;;  %v196_v24 = vld [vmem:[#allocation4 + $0x8] sm:$0xff]  ;;  %v753_v28 = vld [vmem:[#allocation13 + $0x60] sm:$0xff]  ;;  %s3607_s9 = sshll.u32 %s4531_s20, 4  ;;  %s4532_s24 = smov [#allocation19]   ;;  %s3608_s9 = int_to_ptr.vmem [resolvable:$true] %s3607_s9 }
  0x39   :  { %343 = vmatpush.msra.mxu0 %v334_v5  ;;  %3650 = vmatpush.msra.mxu1 %v334_v5  ;;  %v234_v25 = vld [vmem:[#allocation4 + $0x138] sm:$0xff]  ;;  %v263_v27 = vld [vmem:[#allocation4 + $0x220] sm:$0xff]  ;;  %v197_v29 = vld [vmem:[#allocation4 + $0x10] sm:$0xff]  ;;  %s3585_s16 = sshll.u32 %s4532_s24, 4  ;;  %s3586_s16 = int_to_ptr.vmem [resolvable:$true] %s3585_s16 }
  0x3a   :  { %3652 = vmatpush.msra.mxu3 %v334_v5  ;;  %3651 = vmatpush.msra.mxu2 %v334_v5  ;;  %v235_v30 = vld [vmem:[#allocation4 + $0x140] sm:$0xff]  ;;  %v292_v31 = vld [vmem:[#allocation4 + $0x308] sm:$0xff]  ;;  %v198_v33 = vld [vmem:[#allocation4 + $0x18] sm:$0xff] }
  0x3b   :  { %344 = vmatpush.msra.mxu0 %v333_v6  ;;  %3653 = vmatpush.msra.mxu1 %v333_v6  ;;  %v264_v32 = vld [vmem:[#allocation4 + $0x228] sm:$0xff]  ;;  %v293_v35 = vld [vmem:[#allocation4 + $0x310] sm:$0xff]  ;;  %v199_v38 = vld [vmem:[#allocation4 + $0x20] sm:$0xff] }
  0x3c   :  { %3655 = vmatpush.msra.mxu3 %v333_v6  ;;  %3654 = vmatpush.msra.mxu2 %v333_v6  ;;  %v236_v34 = vld [vmem:[#allocation4 + $0x148] sm:$0xff]  ;;  %v265_v36 = vld [vmem:[#allocation4 + $0x230] sm:$0xff]  ;;  %v294_v40 = vld [vmem:[#allocation4 + $0x318] sm:$0xff] }
  0x3d   :  { %345 = vmatpush.msra.mxu0 %v332_v7  ;;  %3656 = vmatpush.msra.mxu1 %v332_v7  ;;  %v752_v37 = vld [vmem:[#allocation13 + $0x58] sm:$0xff]  ;;  %v266_v41 = vld [vmem:[#allocation4 + $0x238] sm:$0xff]  ;;  %v295_v44 = vld [vmem:[#allocation4 + $0x320] sm:$0xff] }
  0x3e   :  { %3658 = vmatpush.msra.mxu3 %v332_v7  ;;  %3657 = vmatpush.msra.mxu2 %v332_v7  ;;  %v237_v39 = vld [vmem:[#allocation4 + $0x150] sm:$0xff]  ;;  %v200_v42 = vld [vmem:[#allocation4 + $0x28] sm:$0xff]  ;;  %v238_v43 = vld [vmem:[#allocation4 + $0x158] sm:$0xff] }
  0x3f   :  { %346 = vmatpush.msra.mxu0 %v331_v8  ;;  %3659 = vmatpush.msra.mxu1 %v331_v8  ;;  %v267_v45 = vld [vmem:[#allocation4 + $0x240] sm:$0xff]  ;;  %v201_v47 = vld [vmem:[#allocation4 + $0x30] sm:$0xff]  ;;  %v296_v49 = vld [vmem:[#allocation4 + $0x328] sm:$0xff] }
  0x40   :  { %3661 = vmatpush.msra.mxu3 %v331_v8  ;;  %3660 = vmatpush.msra.mxu2 %v331_v8  ;;  %v751_v46 = vld [vmem:[#allocation13 + $0x50] sm:$0xff]  ;;  %v750_v51 = vld [vmem:[#allocation13 + $0x48] sm:$0xff]  ;;  %v297_v54 = vld [vmem:[#allocation4 + $0x330] sm:$0xff] }
  0x41   :  { %347 = vmatpush.msra.mxu0 %v330_v9  ;;  %3662 = vmatpush.msra.mxu1 %v330_v9  ;;  %v239_v48 = vld [vmem:[#allocation4 + $0x160] sm:$0xff]  ;;  %v268_v50 = vld [vmem:[#allocation4 + $0x248] sm:$0xff]  ;;  %v202_v52 = vld [vmem:[#allocation4 + $0x38] sm:$0xff] }
  0x42   :  { %3664 = vmatpush.msra.mxu3 %v330_v9  ;;  %3663 = vmatpush.msra.mxu2 %v330_v9  ;;  %v240_v53 = vld [vmem:[#allocation4 + $0x168] sm:$0xff]  ;;  %v269_v55 = vld [vmem:[#allocation4 + $0x250] sm:$0xff]  ;;  %v203_v56 = vld [vmem:[#allocation4 + $0x40] sm:$0xff] }
  0x43   :  { %348 = vmatpush.msra.mxu0 %v329_v10  ;;  %3665 = vmatpush.msra.mxu1 %v329_v10  ;;  %v241_v57 = vld [vmem:[#allocation4 + $0x170] sm:$0xff]  ;;  %v298_v58 = vld [vmem:[#allocation4 + $0x338] sm:$0xff]  ;;  %v204_v61 = vld [vmem:[#allocation4 + $0x48] sm:$0xff] }
  0x44   :  { %3667 = vmatpush.msra.mxu3 %v329_v10  ;;  %3666 = vmatpush.msra.mxu2 %v329_v10  ;;  %v270_v59 = vld [vmem:[#allocation4 + $0x258] sm:$0xff]  ;;  %v299_v63 = vld [vmem:[#allocation4 + $0x340] sm:$0xff]  ;;  %v205_v1 = vld [vmem:[#allocation4 + $0x50] sm:$0xff] }
  0x45   :  { %349 = vmatpush.msra.mxu0 %v328_v11  ;;  %3668 = vmatpush.msra.mxu1 %v328_v11  ;;  %v749_v60 = vld [vmem:[#allocation13 + $0x40] sm:$0xff]  ;;  %v271_v0 = vld [vmem:[#allocation4 + $0x260] sm:$0xff]  ;;  %v300_v3 = vld [vmem:[#allocation4 + $0x348] sm:$0xff] }
  0x46   :  { %3670 = vmatpush.msra.mxu3 %v328_v11  ;;  %3669 = vmatpush.msra.mxu2 %v328_v11  ;;  %v242_v62 = vld [vmem:[#allocation4 + $0x178] sm:$0xff]  ;;  %v243_v2 = vld [vmem:[#allocation4 + $0x180] sm:$0xff]  ;;  %v272_v4 = vld [vmem:[#allocation4 + $0x268] sm:$0xff] }
  0x47   :  { %350 = vmatpush.msra.mxu0 %v327_v12  ;;  %3671 = vmatpush.msra.mxu1 %v327_v12  ;;  %v748_v5 = vld [vmem:[#allocation13 + $0x38] sm:$0xff]  ;;  %v206_v6 = vld [vmem:[#allocation4 + $0x58] sm:$0xff]  ;;  %v207_v10 = vld [vmem:[#allocation4 + $0x60] sm:$0xff] }
  0x48   :  { %3673 = vmatpush.msra.mxu3 %v327_v12  ;;  %3672 = vmatpush.msra.mxu2 %v327_v12  ;;  %v244_v7 = vld [vmem:[#allocation4 + $0x188] sm:$0xff]  ;;  %v301_v8 = vld [vmem:[#allocation4 + $0x350] sm:$0xff]  ;;  %v302_v12 = vld [vmem:[#allocation4 + $0x358] sm:$0xff] }
  0x49   :  { %351 = vmatpush.msra.mxu0 %v326_v13  ;;  %3674 = vmatpush.msra.mxu1 %v326_v13  ;;  %v273_v9 = vld [vmem:[#allocation4 + $0x270] sm:$0xff] }
  0x4a   :  { %3676 = vmatpush.msra.mxu3 %v326_v13  ;;  %3675 = vmatpush.msra.mxu2 %v326_v13  ;;  %v245_v11 = vld [vmem:[#allocation4 + $0x190] sm:$0xff]  ;;  %v274_v13 = vld [vmem:[#allocation4 + $0x278] sm:$0xff] }
  0x4b   :  { %352 = vmatpush.msra.mxu0 %v325_v14  ;;  %3677 = vmatpush.msra.mxu1 %v325_v14 }
  0x4c   :  { %3679 = vmatpush.msra.mxu3 %v325_v14  ;;  %3678 = vmatpush.msra.mxu2 %v325_v14  ;;  %v208_v14 = vld [vmem:[#allocation4 + $0x68] sm:$0xff] }
  0x4d   :  { %353 = vmatpush.msra.mxu0 %v324_v15  ;;  %3680 = vmatpush.msra.mxu1 %v324_v15 }
  0x4e   :  { %3682 = vmatpush.msra.mxu3 %v324_v15  ;;  %3681 = vmatpush.msra.mxu2 %v324_v15  ;;  %v747_v15 = vld [vmem:[#allocation13 + $0x30] sm:$0xff] }
  0x4f   :  { %354 = vmatpush.msra.mxu0 %v323_v16  ;;  %3683 = vmatpush.msra.mxu1 %v323_v16 }
  0x50   :  { %3685 = vmatpush.msra.mxu3 %v323_v16  ;;  %355 = vmatmul.f32.vlgmr.msra.gmra.mxu0 %v195_v17  ;;  %v303_v17 = vld [vmem:[#allocation4 + $0x360] sm:$0xff] }
  0x51   :  { %469 = vmatmul.f32.vlgmr.msra.gmra.mxu1 %v233_v18  ;;  %640 = vmatmul.f32.vlgmr.msra.gmra.mxu3 %v290_v19  ;;  %v275_v18 = vld [vmem:[#allocation4 + $0x280] sm:$0xff]  ;;  %v209_v19 = vld [vmem:[#allocation4 + $0x70] sm:$0xff] }
  0x52   :  { %761 = vmatpush.msrb.mxu1 %v756_v20  ;;  %3684 = vmatpush.msra.mxu2 %v323_v16  ;;  %v246_v16 = vld [vmem:[#allocation4 + $0x198] sm:$0xff]  ;;  %v247_v20 = vld [vmem:[#allocation4 + $0x1a0] sm:$0xff] }
  0x53   :  { %556 = vmatmul.f32.vlgmr.msra.gmra.mxu2 %v262_v21  ;;  %v304_v21 = vld [vmem:[#allocation4 + $0x368] sm:$0xff] }
  0x54   :  { %762 = vmatpush.msrb.mxu1 %v755_v22  ;;  %v276_v22 = vld [vmem:[#allocation4 + $0x288] sm:$0xff] }
  0x56   :  { %763 = vmatpush.msrb.mxu1 %v754_v23  ;;  %v746_v23 = vld [vmem:[#allocation13 + $0x28] sm:$0xff] }
  0x58   :  { %358 = vmatmul.f32.gmra.mxu0 %v196_v24  ;;  %764 = vmatpush.msrb.mxu1 %v753_v28  ;;  %v210_v24 = vld [vmem:[#allocation4 + $0x78] sm:$0xff]  ;;  %v211_v28 = vld [vmem:[#allocation4 + $0x80] sm:$0xff] }
  0x59   :  { %472 = vmatmul.f32.gmra.mxu1 %v234_v25  ;;  %643 = vmatmul.f32.gmra.mxu3 %v291_v26  ;;  %v248_v25 = vld [vmem:[#allocation4 + $0x1a8] sm:$0xff]  ;;  %v305_v26 = vld [vmem:[#allocation4 + $0x370] sm:$0xff] }
  0x5a   :  { %765 = vmatpush.msrb.mxu1 %v752_v37  ;;  %v307_v37 = vld [vmem:[#allocation4 + $0x380] sm:$0xff] }
  0x5b   :  { %559 = vmatmul.f32.gmra.mxu2 %v263_v27  ;;  %v277_v27 = vld [vmem:[#allocation4 + $0x290] sm:$0xff] }
  0x5c   :  { %766 = vmatpush.msrb.mxu1 %v751_v46  ;;  %v214_v46 = vld [vmem:[#allocation4 + $0x98] sm:$0xff] }
  0x5e   :  { %767 = vmatpush.msrb.mxu1 %v750_v51  ;;  %v281_v51 = vld [vmem:[#allocation4 + $0x2b0] sm:$0xff] }
  0x60   :  { %361 = vmatmul.f32.gmra.mxu0 %v197_v29  ;;  %768 = vmatpush.msrb.mxu1 %v749_v60 }
  0x61   :  { %475 = vmatmul.f32.gmra.mxu1 %v235_v30  ;;  %646 = vmatmul.f32.gmra.mxu3 %v292_v31  ;;  %v249_v30 = vld [vmem:[#allocation4 + $0x1b0] sm:$0xff]  ;;  %v306_v31 = vld [vmem:[#allocation4 + $0x378] sm:$0xff] }
  0x62   :  { %769 = vmatpush.msrb.mxu1 %v748_v5  ;;  %v312_v5 = vld [vmem:[#allocation4 + $0x3a8] sm:$0xff] }
  0x63   :  { %562 = vmatmul.f32.gmra.mxu2 %v264_v32  ;;  %v278_v32 = vld [vmem:[#allocation4 + $0x298] sm:$0xff] }
  0x64   :  { %770 = vmatpush.msrb.mxu1 %v747_v15 }
  0x66   :  { %771 = vmatpush.msrb.mxu1 %v746_v23 }
  0x68   :  { %364 = vmatmul.f32.gmra.mxu0 %v198_v33  ;;  %v745_v33 = vld [vmem:[#allocation13 + $0x20] sm:$0xff] }
  0x69   :  { %478 = vmatmul.f32.gmra.mxu1 %v236_v34  ;;  %649 = vmatmul.f32.gmra.mxu3 %v293_v35  ;;  %v212_v34 = vld [vmem:[#allocation4 + $0x88] sm:$0xff] }
  0x6a   :  { %772 = vmatpush.msrb.mxu1 %v745_v33 }
  0x6b   :  { %565 = vmatmul.f32.gmra.mxu2 %v265_v36  ;;  %v250_v36 = vld [vmem:[#allocation4 + $0x1b8] sm:$0xff] }
  0x70   :  { %367 = vmatmul.f32.gmra.mxu0 %v199_v38  ;;  %v279_v38 = vld [vmem:[#allocation4 + $0x2a0] sm:$0xff] }
  0x71   :  { %481 = vmatmul.f32.gmra.mxu1 %v237_v39  ;;  %652 = vmatmul.f32.gmra.mxu3 %v294_v40  ;;  %v213_v39 = vld [vmem:[#allocation4 + $0x90] sm:$0xff] }
  0x73   :  { %568 = vmatmul.f32.gmra.mxu2 %v266_v41 }
  0x78   :  { %370 = vmatmul.f32.gmra.mxu0 %v200_v42  ;;  %v251_v42 = vld [vmem:[#allocation4 + $0x1c0] sm:$0xff] }
  0x79   :  { %484 = vmatmul.f32.gmra.mxu1 %v238_v43  ;;  %655 = vmatmul.f32.gmra.mxu3 %v295_v44  ;;  %v308_v43 = vld [vmem:[#allocation4 + $0x388] sm:$0xff] }
  0x7a   :  { %v744_v44 = vld [vmem:[#allocation13 + $0x18] sm:$0xff] }
  0x7b   :  { %571 = vmatmul.f32.gmra.mxu2 %v267_v45  ;;  %v280_v45 = vld [vmem:[#allocation4 + $0x2a8] sm:$0xff]  ;;  %773 = vmatpush.msrb.mxu1 %v744_v44 }
  0x80   :  { %373 = vmatmul.f32.gmra.mxu0 %v201_v47 }
  0x81   :  { %487 = vmatmul.f32.gmra.mxu1 %v239_v48  ;;  %658 = vmatmul.f32.gmra.mxu3 %v296_v49  ;;  %v252_v48 = vld [vmem:[#allocation4 + $0x1c8] sm:$0xff]  ;;  %v309_v49 = vld [vmem:[#allocation4 + $0x390] sm:$0xff] }
  0x83   :  { %574 = vmatmul.f32.gmra.mxu2 %v268_v50 }
  0x88   :  { %376 = vmatmul.f32.gmra.mxu0 %v202_v52  ;;  %v215_v52 = vld [vmem:[#allocation4 + $0xa0] sm:$0xff] }
  0x89   :  { %490 = vmatmul.f32.gmra.mxu1 %v240_v53  ;;  %661 = vmatmul.f32.gmra.mxu3 %v297_v54  ;;  %v253_v54 = vld [vmem:[#allocation4 + $0x1d0] sm:$0xff] }
  0x8b   :  { %577 = vmatmul.f32.gmra.mxu2 %v269_v55  ;;  %v310_v55 = vld [vmem:[#allocation4 + $0x398] sm:$0xff] }
  0x90   :  { %379 = vmatmul.f32.gmra.mxu0 %v203_v56  ;;  %v743_v56 = vld [vmem:[#allocation13 + $0x10] sm:$0xff] }
  0x91   :  { %493 = vmatmul.f32.gmra.mxu1 %v241_v57  ;;  %664 = vmatmul.f32.gmra.mxu3 %v298_v58  ;;  %v282_v57 = vld [vmem:[#allocation4 + $0x2b8] sm:$0xff] }
  0x92   :  { %774 = vmatpush.msrb.mxu1 %v743_v56  ;;  %v261_v56 = vld [vmem:[#allocation4 + $0x210] sm:$0xff] }
  0x93   :  { %580 = vmatmul.f32.gmra.mxu2 %v270_v59  ;;  %v216_v59 = vld [vmem:[#allocation4 + $0xa8] sm:$0xff] }
  0x98   :  { %382 = vmatmul.f32.gmra.mxu0 %v204_v61  ;;  %v254_v61 = vld [vmem:[#allocation4 + $0x1d8] sm:$0xff] }
  0x99   :  { %496 = vmatmul.f32.gmra.mxu1 %v242_v62  ;;  %667 = vmatmul.f32.gmra.mxu3 %v299_v63  ;;  %v311_v62 = vld [vmem:[#allocation4 + $0x3a0] sm:$0xff] }
  0x9a   :  { %v283_v63 = vld [vmem:[#allocation4 + $0x2c0] sm:$0xff] }
  0x9b   :  { %583 = vmatmul.f32.gmra.mxu2 %v271_v0 }
  0xa0   :  { %385 = vmatmul.f32.gmra.mxu0 %v205_v1  ;;  %v217_v1 = vld [vmem:[#allocation4 + $0xb0] sm:$0xff] }
  0xa1   :  { %499 = vmatmul.f32.gmra.mxu1 %v243_v2  ;;  %670 = vmatmul.f32.gmra.mxu3 %v300_v3  ;;  %v742_v2 = vld [vmem:[#allocation13 + $0x8] sm:$0xff] }
  0xa2   :  { %775 = vmatpush.msrb.mxu1 %v742_v2 }
  0xa3   :  { %586 = vmatmul.f32.gmra.mxu2 %v272_v4  ;;  %v255_v4 = vld [vmem:[#allocation4 + $0x1e0] sm:$0xff] }
  0xa8   :  { %388 = vmatmul.f32.gmra.mxu0 %v206_v6  ;;  %v284_v6 = vld [vmem:[#allocation4 + $0x2c8] sm:$0xff] }
  0xa9   :  { %502 = vmatmul.f32.gmra.mxu1 %v244_v7  ;;  %673 = vmatmul.f32.gmra.mxu3 %v301_v8  ;;  %v218_v8 = vld [vmem:[#allocation4 + $0xb8] sm:$0xff] }
  0xab   :  { %589 = vmatmul.f32.gmra.mxu2 %v273_v9 }
  0xb0   :  { %391 = vmatmul.f32.gmra.mxu0 %v207_v10 }
  0xb1   :  { %505 = vmatmul.f32.gmra.mxu1 %v245_v11  ;;  %676 = vmatmul.f32.gmra.mxu3 %v302_v12  ;;  %v256_v11 = vld [vmem:[#allocation4 + $0x1e8] sm:$0xff]  ;;  %v313_v12 = vld [vmem:[#allocation4 + $0x3b0] sm:$0xff] }
  0xb3   :  { %592 = vmatmul.f32.gmra.mxu2 %v274_v13  ;;  %v285_v13 = vld [vmem:[#allocation4 + $0x2d0] sm:$0xff] }
  0xb8   :  { %394 = vmatmul.f32.gmra.mxu0 %v208_v14  ;;  %v741_v14 = vld [vmem:[#allocation13] sm:$0xff] }
  0xb9   :  { %508 = vmatmul.f32.gmra.mxu1 %v246_v16  ;;  %679 = vmatmul.f32.gmra.mxu3 %v303_v17  ;;  %v219_v17 = vld [vmem:[#allocation4 + $0xc0] sm:$0xff] }
  0xba   :  { %776 = vmatpush.msrb.mxu1 %v741_v14  ;;  %v321_v14 = vld [vmem:[#allocation4 + $0x3f0] sm:$0xff] }
  0xbb   :  { %595 = vmatmul.f32.gmra.mxu2 %v275_v18 }
  0xc0   :  { %397 = vmatmul.f32.gmra.mxu0 %v209_v19  ;;  %v257_v19 = vld [vmem:[#allocation4 + $0x1f0] sm:$0xff] }
  0xc1   :  { %511 = vmatmul.f32.gmra.mxu1 %v247_v20  ;;  %682 = vmatmul.f32.gmra.mxu3 %v304_v21  ;;  %v314_v20 = vld [vmem:[#allocation4 + $0x3b8] sm:$0xff] }
  0xc3   :  { %598 = vmatmul.f32.gmra.mxu2 %v276_v22  ;;  %v286_v22 = vld [vmem:[#allocation4 + $0x2d8] sm:$0xff] }
  0xc8   :  { %400 = vmatmul.f32.gmra.mxu0 %v210_v24  ;;  %v220_v24 = vld [vmem:[#allocation4 + $0xc8] sm:$0xff] }
  0xc9   :  { %514 = vmatmul.f32.gmra.mxu1 %v248_v25  ;;  %685 = vmatmul.f32.gmra.mxu3 %v305_v26  ;;  %v258_v26 = vld [vmem:[#allocation4 + $0x1f8] sm:$0xff] }
  0xcb   :  { %601 = vmatmul.f32.gmra.mxu2 %v277_v27  ;;  %v315_v27 = vld [vmem:[#allocation4 + $0x3c0] sm:$0xff] }
  0xcd   :  { %v4675_v40 = vpop.f32.mrf.mxu0 }
  0xce   :  { %v4671_v29 = vpop.f32.mrf.mxu1 }
  0xcf   :  { %6840 = vst [vmem:[#allocation30_spill] sm:$0xff] %v4671_v29  ;;  %v3807_v29 = vld [vmem:[%s6817_s6] ss:$0 sm:$0xff] }
  0xd0   :  { %403 = vmatmul.f32.gmra.mxu0 %v211_v28 }
  0xd1   :  { %517 = vmatmul.f32.gmra.mxu1 %v249_v30  ;;  %688 = vmatmul.f32.gmra.mxu3 %v306_v31  ;;  %v287_v30 = vld [vmem:[#allocation4 + $0x2e0] sm:$0xff] }
  0xd3   :  { %604 = vmatmul.f32.gmra.mxu2 %v278_v32  ;;  %v221_v32 = vld [vmem:[#allocation4 + $0xd0] sm:$0xff] }
  0xd4   :  { %v4693_v7 = vpop.f32.mrf.mxu3 }
  0xd5   :  { %v4681_v50 = vpop.f32.mrf.mxu0  ;;  %6847 = vst [vmem:[#allocation37_spill] sm:$0xff] %v4693_v7 }
  0xd6   :  { %v4673_v35 = vpop.f32.mrf.mxu1  ;;  %v4701_v16 = vpop.f32.mrf.mxu2 }
  0xd7   :  { %6841 = vst [vmem:[#allocation31_spill] sm:$0xff] %v4673_v35 }
  0xd8   :  { %406 = vmatmul.f32.gmra.mxu0 %v212_v34  ;;  %v259_v34 = vld [vmem:[#allocation4 + $0x200] sm:$0xff] }
  0xd9   :  { %520 = vmatmul.f32.gmra.mxu1 %v250_v36  ;;  %691 = vmatmul.f32.gmra.mxu3 %v307_v37  ;;  %v316_v36 = vld [vmem:[#allocation4 + $0x3c8] sm:$0xff] }
  0xdb   :  { %607 = vmatmul.f32.gmra.mxu2 %v279_v38  ;;  %v288_v38 = vld [vmem:[#allocation4 + $0x2e8] sm:$0xff] }
  0xdc   :  { %v4699_v15 = vpop.f32.mrf.mxu3 }
  0xdd   :  { %v4685_v58 = vpop.f32.mrf.mxu0  ;;  %6849 = vst [vmem:[#allocation39_spill] sm:$0xff] %v4699_v15 }
  0xde   :  { %v4677_v41 = vpop.f32.mrf.mxu1  ;;  %v4711_v28 = vpop.f32.mrf.mxu2 }
  0xdf   :  { %6842 = vst [vmem:[#allocation32_spill] sm:$0xff] %v4677_v41 }
  0xe0   :  { %409 = vmatmul.f32.gmra.mxu0 %v213_v39 }
  0xe1   :  { %523 = vmatmul.f32.gmra.mxu1 %v251_v42  ;;  %694 = vmatmul.f32.gmra.mxu3 %v308_v43  ;;  %v222_v43 = vld [vmem:[#allocation4 + $0xd8] sm:$0xff] }
  0xe3   :  { %610 = vmatmul.f32.gmra.mxu2 %v280_v45  ;;  %v260_v45 = vld [vmem:[#allocation4 + $0x208] sm:$0xff] }
  0xe4   :  { %v4707_v23 = vpop.f32.mrf.mxu3 }
  0xe5   :  { %v4689_v0 = vpop.f32.mrf.mxu0  ;;  %6850 = vst [vmem:[#allocation40_spill] sm:$0xff] %v4707_v23 }
  0xe6   :  { %v4679_v47 = vpop.f32.mrf.mxu1  ;;  %v4719_v39 = vpop.f32.mrf.mxu2 }
  0xe7   :  { %6843 = vst [vmem:[#allocation33_spill] sm:$0xff] %v4679_v47 }
  0xe8   :  { %412 = vmatmul.f32.gmra.mxu0 %v214_v46  ;;  %v317_v46 = vld [vmem:[#allocation4 + $0x3d0] sm:$0xff] }
  0xe9   :  { %526 = vmatmul.f32.gmra.mxu1 %v252_v48  ;;  %697 = vmatmul.f32.gmra.mxu3 %v309_v49  ;;  %v289_v48 = vld [vmem:[#allocation4 + $0x2f0] sm:$0xff] }
  0xeb   :  { %613 = vmatmul.f32.gmra.mxu2 %v281_v51 }
  0xec   :  { %v4717_v37 = vpop.f32.mrf.mxu3 }
  0xed   :  { %v4695_v9 = vpop.f32.mrf.mxu0  ;;  %6851 = vst [vmem:[#allocation41_spill] sm:$0xff] %v4717_v37 }
  0xee   :  { %v4683_v53 = vpop.f32.mrf.mxu1  ;;  %v4727_v51 = vpop.f32.mrf.mxu2 }
  0xef   :  { %6844 = vst [vmem:[#allocation34_spill] sm:$0xff] %v4683_v53 }
  0xf0   :  { %415 = vmatmul.f32.gmra.mxu0 %v215_v52  ;;  %v223_v52 = vld [vmem:[#allocation4 + $0xe0] sm:$0xff] }
  0xf1   :  { %529 = vmatmul.f32.gmra.mxu1 %v253_v54  ;;  %700 = vmatmul.f32.gmra.mxu3 %v310_v55 }
  0xf3   :  { %616 = vmatmul.f32.gmra.mxu2 %v282_v57  ;;  %v318_v57 = vld [vmem:[#allocation4 + $0x3d8] sm:$0xff] }
  0xf4   :  { %v4725_v49 = vpop.f32.mrf.mxu3 }
  0xf5   :  { %v4705_v21 = vpop.f32.mrf.mxu0  ;;  %6852 = vst [vmem:[#allocation42_spill] sm:$0xff] %v4725_v49 }
  0xf6   :  { %v4687_v60 = vpop.f32.mrf.mxu1 }
  0xf7   :  { %6845 = vst [vmem:[#allocation35_spill] sm:$0xff] %v4687_v60 }
  0xf8   :  { %418 = vmatmul.f32.gmra.mxu0 %v216_v59 }
  0xf9   :  { %532 = vmatmul.f32.gmra.mxu1 %v254_v61  ;;  %703 = vmatmul.f32.gmra.mxu3 %v311_v62  ;;  %v224_v61 = vld [vmem:[#allocation4 + $0xe8] sm:$0xff] }
  0xfb   :  { %619 = vmatmul.f32.gmra.mxu2 %v283_v63  ;;  %v319_v63 = vld [vmem:[#allocation4 + $0x3e0] sm:$0xff] }
  0xfc   :  { %v4733_v59 = vpop.f32.mrf.mxu3 }
  0xfd   :  { %v4713_v31 = vpop.f32.mrf.mxu0  ;;  %6853 = vst [vmem:[#allocation43_spill] sm:$0xff] %v4733_v59 }
  0xfe   :  { %v4691_v3 = vpop.f32.mrf.mxu1 }
  0xff   :  { %6846 = vst [vmem:[#allocation36_spill] sm:$0xff] %v4691_v3 }
 0x100   :  { %421 = vmatmul.f32.gmra.mxu0 %v217_v1  ;;  %v740_v1 = vld [vmem:[#allocation7] sm:$0xff] }
 0x101   :  { %535 = vmatmul.f32.gmra.mxu1 %v255_v4  ;;  %706 = vmatmul.f32.gmra.mxu3 %v312_v5  ;;  %v225_v5 = vld [vmem:[#allocation4 + $0xf0] sm:$0xff] }
 0x103   :  { %622 = vmatmul.f32.gmra.mxu2 %v284_v6 }
 0x104   :  { %v4739_v4 = vpop.f32.mrf.mxu3 }
 0x105   :  { %v4721_v42 = vpop.f32.mrf.mxu0  ;;  %6854 = vst [vmem:[#allocation44_spill] sm:$0xff] %v4739_v4  ;;  %v4820_v4 = vld [vmem:[#allocation12] ss:$0 sm:$0xff] }
 0x106   :  { %v4697_v10 = vpop.f32.mrf.mxu1  ;;  %v789_v49 = vadd.f32 %v4820_v4, %v4695_v9  ;;  %v788_v23 = vadd.f32 %v4820_v4, %v4689_v0  ;;  %v4848_v9 = vld [vmem:[%s6818_s7] ss:$0 sm:$0xff] }
 0x107   :  { %6848 = vst [vmem:[#allocation38_spill] sm:$0xff] %v4697_v10 }
 0x108   :  { %424 = vmatmul.f32.gmra.mxu0 %v218_v8  ;;  %v320_v8 = vld [vmem:[#allocation4 + $0x3e8] sm:$0xff] }
 0x109   :  { %538 = vmatmul.f32.gmra.mxu1 %v256_v11  ;;  %709 = vmatmul.f32.gmra.mxu3 %v313_v12  ;;  %v226_v12 = vld [vmem:[#allocation4 + $0xf8] sm:$0xff] }
 0x10b   :  { %625 = vmatmul.f32.gmra.mxu2 %v285_v13 }
 0x10d   :  { %v4729_v54 = vpop.f32.mrf.mxu0 }
 0x10e   :  { %v4703_v18 = vpop.f32.mrf.mxu1 }
 0x110   :  { %427 = vmatmul.f32.gmra.mxu0 %v219_v17  ;;  %v4747_v17 = vpop.f32.mrf.mxu3 }
 0x111   :  { %541 = vmatmul.f32.gmra.mxu1 %v257_v19  ;;  %712 = vmatmul.f32.gmra.mxu3 %v314_v20  ;;  %6855 = vst [vmem:[#allocation45_spill] sm:$0xff] %v4747_v17  ;;  %v227_v20 = vld [vmem:[#allocation4 + $0x100] sm:$0xff] }
 0x113   :  { %628 = vmatmul.f32.gmra.mxu2 %v286_v22 }
 0x115   :  { %v4737_v2 = vpop.f32.mrf.mxu0 }
 0x116   :  { %v4709_v25 = vpop.f32.mrf.mxu1 }
 0x118   :  { %430 = vmatmul.f32.gmra.mxu0 %v220_v24  ;;  %v322_v24 = vld [vmem:[#allocation4 + $0x3f8] sm:$0xff] }
 0x119   :  { %544 = vmatmul.f32.gmra.mxu1 %v258_v26  ;;  %715 = vmatmul.f32.gmra.mxu3 %v315_v27  ;;  %v4753_v26 = vpop.f32.mrf.mxu3  ;;  %v228_v27 = vld [vmem:[#allocation4 + $0x108] sm:$0xff] }
 0x11a   :  { %6856 = vst [vmem:[#allocation46_spill] sm:$0xff] %v4753_v26  ;;  %v785_v26 = vadd.f32 %v4820_v4, %v4675_v40  ;;  %v786_v40 = vadd.f32 %v4820_v4, %v4681_v50 }
 0x11b   :  { %631 = vmatmul.f32.gmra.mxu2 %v287_v30 }
 0x11d   :  { %v4743_v11 = vpop.f32.mrf.mxu0 }
 0x11e   :  { %v4715_v33 = vpop.f32.mrf.mxu1 }
 0x120   :  { %433 = vmatmul.f32.gmra.mxu0 %v221_v32 }
 0x121   :  { %547 = vmatmul.f32.gmra.mxu1 %v259_v34  ;;  %718 = vmatmul.f32.gmra.mxu3 %v316_v36  ;;  %v229_v34 = vld [vmem:[#allocation4 + $0x110] sm:$0xff]  ;;  %v4811_v60 = vpop.f32.mrf.mxu3 }
 0x122   :  { %6861 = vst [vmem:[#allocation51_spill] sm:$0xff] %v4811_v60  ;;  %v787_v60 = vadd.f32 %v4820_v4, %v4685_v58 }
 0x123   :  { %634 = vmatmul.f32.gmra.mxu2 %v288_v38 }
 0x125   :  { %v4749_v19 = vpop.f32.mrf.mxu0 }
 0x126   :  { %v4723_v44 = vpop.f32.mrf.mxu1 }
 0x128   :  { %436 = vmatmul.f32.gmra.mxu0 %v222_v43  ;;  %v230_v43 = vld [vmem:[#allocation4 + $0x118] sm:$0xff] }
 0x129   :  { %550 = vmatmul.f32.gmra.mxu1 %v260_v45  ;;  %721 = vmatmul.f32.gmra.mxu3 %v317_v46 }
 0x12b   :  { %637 = vmatmul.f32.gmra.mxu2 %v289_v48  ;;  %v231_v48 = vld [vmem:[#allocation4 + $0x120] sm:$0xff] }
 0x12d   :  { %v4755_v30 = vpop.f32.mrf.mxu0 }
 0x12e   :  { %v4731_v55 = vpop.f32.mrf.mxu1 }
 0x130   :  { %439 = vmatmul.f32.gmra.mxu0 %v223_v52 }
 0x131   :  { %553 = vmatmul.f32.gmra.mxu1 %v261_v56  ;;  %724 = vmatmul.f32.gmra.mxu3 %v318_v57  ;;  %v232_v57 = vld [vmem:[#allocation4 + $0x128] sm:$0xff] }
 0x135   :  { %v4761_v38 = vpop.f32.mrf.mxu0 }
 0x136   :  { %v4735_v62 = vpop.f32.mrf.mxu1 }
 0x138   :  { %442 = vmatmul.f32.gmra.mxu0 %v224_v61 }
 0x139   :  { %727 = vmatmul.f32.gmra.mxu3 %v319_v63  ;;  %777 = vmatmul.f32.vlgmr.msrb.gmra.mxu1 %v740_v1  ;;  %v4773_v63 = vpop.f32.mrf.mxu2  ;;  %v4529_v1 = vmov 0  }
 0x13a   :  { %6857 = vst [vmem:[#allocation47_spill] sm:$0xff] %v4773_v63  ;;  %3701 = vset.pattern.permute.xlu2 %v4529_v1 }
 0x13d   :  { %v4765_v46 = vpop.f32.mrf.mxu0 }
 0x13e   :  { %v4741_v6 = vpop.f32.mrf.mxu1 }
 0x140   :  { %445 = vmatmul.f32.gmra.mxu0 %v225_v5  ;;  %v3806_v5 = vld [vmem:[#allocation3] ss:$0 sm:$0xff] }
 0x141   :  { %730 = vmatmul.f32.gmra.mxu3 %v320_v8  ;;  %1585 = vperm.xlu2 %3701, %v3806_v5  }
 0x145   :  { %v4769_v56 = vpop.f32.mrf.mxu0 }
 0x146   :  { %v4745_v13 = vpop.f32.mrf.mxu1 }
 0x148   :  { %448 = vmatmul.f32.gmra.mxu0 %v226_v12 }
 0x149   :  { %733 = vmatmul.f32.gmra.mxu3 %v321_v14  ;;  %v4779_v14 = vpop.f32.mrf.mxu2 }
 0x14a   :  { %6858 = vst [vmem:[#allocation48_spill] sm:$0xff] %v4779_v14 }
 0x14d   :  { %v4775_v8 = vpop.f32.mrf.mxu0 }
 0x14e   :  { %v4751_v22 = vpop.f32.mrf.mxu1 }
 0x150   :  { %451 = vmatmul.f32.gmra.mxu0 %v227_v20 }
 0x151   :  { %736 = vmatmul.f32.gmra.mxu3 %v322_v24 }
 0x155   :  { %v4783_v24 = vpop.f32.mrf.mxu0 }
 0x156   :  { %v4757_v32 = vpop.f32.mrf.mxu1 }
 0x158   :  { %454 = vmatmul.f32.gmra.mxu0 %v228_v27  ;;  %v4785_v27 = vpop.f32.mrf.mxu2 }
 0x159   :  { %6859 = vst [vmem:[#allocation49_spill] sm:$0xff] %v4785_v27 }
 0x15e   :  { %v4759_v36 = vpop.f32.mrf.mxu1 }
 0x160   :  { %457 = vmatmul.f32.gmra.mxu0 %v229_v34 }
 0x166   :  { %v4763_v45 = vpop.f32.mrf.mxu1 }
 0x168   :  { %460 = vmatmul.f32.gmra.mxu0 %v230_v43  ;;  %v4789_v43 = vpop.f32.mrf.mxu0 }
 0x16e   :  { %v4767_v52 = vpop.f32.mrf.mxu1 }
 0x170   :  { %463 = vmatmul.f32.gmra.mxu0 %v231_v48  ;;  %v4791_v48 = vpop.f32.mrf.mxu2  ;;  %v4795_v1 = vpop.f32.mrf.mxu0 }
 0x176   :  { %v4771_v61 = vpop.f32.mrf.mxu1 }
 0x178   :  { %466 = vmatmul.f32.gmra.mxu0 %v232_v57  ;;  %v4799_v63 = vpop.f32.mrf.mxu2  ;;  %v4801_v14 = vpop.f32.mrf.mxu0 }
 0x17e   :  { %v4777_v12 = vpop.f32.mrf.mxu1 }
 0x180   :  { %v4805_v10 = vpop.f32.mrf.mxu2  ;;  %v4809_v47 = vpop.f32.mrf.mxu0 }
 0x181   :  { %6860 = vst [vmem:[#allocation50_spill] sm:$0xff] %v4809_v47 }
 0x186   :  { %v4781_v20 = vpop.f32.mrf.mxu1 }
 0x188   :  { %v4813_v53 = vpop.f32.mrf.mxu2  ;;  %v4824_v17 = vpop.f32.mrf.mxu0 }
 0x189   :  { %6862 = vst [vmem:[#allocation52_spill] sm:$0xff] %v4824_v17 }
 0x18e   :  { %v4787_v34 = vpop.f32.mrf.mxu1 }
 0x196   :  { %v4793_v57 = vpop.f32.mrf.mxu1 }
 0x19e   :  { %v4797_v5 = vpop.f32.mrf.mxu1 }
 0x1a6   :  { %v4803_v3 = vpop.f32.mrf.mxu1 }
 0x1ae   :  { %v4807_v27 = vpop.f32.mrf.mxu1 }
 0x1b6   :  { %v778_v41 = vpop.f32.mrf.mxu1 }
 0x1b7   :  { %v4818_v35 = vadd.f32 %v3807_v29, %v778_v41  ;;  %v4834_v29 = vpop.f32.mrf.mxu3  ;;  %v4836_v41 = vpop.f32.mrf.mxu2 }
 0x1b8   :  { %6863 = vst [vmem:[#allocation53_spill] sm:$0xff] %v4834_v29 }
 0x1b9   :  { %v4827_v37 = vperm.slane %v4818_v35, 0  ;;  %v915_v15 = vrot.slane %v4818_v35, 2 }
 0x1bb   :  { %v937_v59 = vadd.f32 %v4827_v37, %v785_v26  ;;  %v939_v7 = vadd.f32 %v4827_v37, %v787_v60  ;;  %v941_v58 = vadd.f32 %v4827_v37, %v789_v49  ;;  %v938_v26 = vadd.f32 %v4827_v37, %v786_v40 }
 0x1bc   :  { %v940_v29 = vadd.f32 %v4827_v37, %v788_v23  ;;  %v790_v60 = vadd.f32 %v4820_v4, %v4705_v21  ;;  %v791_v40 = vadd.f32 %v4820_v4, %v4713_v31  ;;  %v792_v21 = vadd.f32 %v4820_v4, %v4721_v42 }
 0x1bd   :  { %3816 = vtanh.f32 %v937_v59  ;;  %v4853_v59 = vpop.f32.mrf.mxu0  ;;  %v4870_v17 = vperm.slane %v915_v15, 0 }
 0x1be   :  { %3818 = vtanh.f32 %v939_v7  ;;  %6864 = vst [vmem:[#allocation54_spill] sm:$0xff] %v4853_v59  ;;  %v942_v49 = vadd.f32 %v4827_v37, %v790_v60  ;;  %v944_v31 = vadd.f32 %v4827_v37, %v792_v21 }
 0x1bf   :  { %3820 = vtanh.f32 %v941_v58  ;;  %v4863_v58 = vpop.f32.mrf.mxu3  ;;  %v4865_v59 = vpop.f32.mrf.mxu2 }
 0x1c0   :  { %3822 = vtanh.f32 %v938_v26  ;;  %6865 = vst [vmem:[#allocation55_spill] sm:$0xff] %v4863_v58  ;;  %v916_v26 = vrot.slane %v4818_v35, 3  ;;  %v793_v58 = vadd.f32 %v4820_v4, %v4729_v54  ;;  %v834_v54 = vadd.f32 %v4820_v4, %v4723_v44 }
 0x1c1   :  { %3824 = vtanh.f32 %v940_v29  ;;  %v943_v29 = vadd.f32 %v4827_v37, %v791_v40  ;;  %v836_v44 = vadd.f32 %v4820_v4, %v4735_v62 }
 0x1c2   :  { %3826 = vtanh.f32 %v942_v49  ;;  %v4877_v47 = vperm.slane %v916_v26, 0  ;;  %v794_v49 = vadd.f32 %v4820_v4, %v4737_v2  ;;  %v945_v15 = vadd.f32 %v4827_v37, %v793_v58 }
 0x1c3   :  { %v3817_v50 = vpop.eup %3816  ;;  %3828 = vtanh.f32 %v943_v29  ;;  %v832_v2 = vadd.f32 %v4820_v4, %v4709_v25  ;;  %v795_v58 = vadd.f32 %v4820_v4, %v4743_v11 }
 0x1c4   :  { %v3819_v0 = vpop.eup %3818  ;;  %v1197_v7 = vmul.f32 %v3817_v50, %v4848_v9  ;;  %3830 = vtanh.f32 %v944_v31  ;;  %v946_v31 = vadd.f32 %v4827_v37, %v794_v49  ;;  %v4908_v25 = vadd.f32 %v4877_v47, %v834_v54 }
 0x1c5   :  { %v1199_v23 = vmul.f32 %v3819_v0, %v4848_v9  ;;  %v3821_v60 = vpop.eup %3820  ;;  %v4887_v21 = vpop.f32.mrf.mxu0  ;;  %3832 = vtanh.f32 %v945_v15  ;;  %v4916_v62 = vadd.f32 %v4870_v17, %v832_v2  ;;  %v796_v15 = vadd.f32 %v4820_v4, %v4749_v19 }
 0x1c6   :  { %1325 = vadd.xlane.f32.xlu0 %v1197_v7  ;;  %v3823_v50 = vpop.eup %3822  ;;  %v1201_v0 = vmul.f32 %v3821_v60, %v4848_v9  ;;  %v831_v7 = vadd.f32 %v4820_v4, %v4703_v18  ;;  %v837_v60 = vadd.f32 %v4820_v4, %v4741_v6  ;;  %v4919_v6 = vadd.f32 %v4877_v47, %v836_v44 }
 0x1c7   :  { %1329 = vadd.xlane.f32.xlu1 %v1199_v23  ;;  %v3825_v42 = vpop.eup %3824  ;;  %v1198_v40 = vmul.f32 %v3823_v50, %v4848_v9  ;;  %v833_v23 = vadd.f32 %v4820_v4, %v4715_v33  ;;  %v835_v33 = vadd.f32 %v4820_v4, %v4731_v55  ;;  %v4910_v11 = vpop.f32.mrf.mxu3  ;;  %v947_v55 = vadd.f32 %v4827_v37, %v795_v58 }
 0x1c8   :  { %1333 = vadd.xlane.f32.xlu2 %v1201_v0  ;;  %v1200_v18 = vmul.f32 %v3825_v42, %v4848_v9  ;;  %v4891_v26 = vadd.f32 %v4870_v17, %v831_v7  ;;  %v3827_v29 = vpop.eup %3826  ;;  %v4912_v0 = vpop.f32.mrf.mxu2  ;;  %v839_v7 = vadd.f32 %v4820_v4, %v4751_v22  ;;  %v840_v54 = vadd.f32 %v4820_v4, %v4757_v32 }
 0x1c9   :  { %v4905_v50 = vadd.f32 %v4877_v47, %v833_v23  ;;  %v3829_v42 = vpop.eup %3828  ;;  %v1202_v49 = vmul.f32 %v3827_v29, %v4848_v9  ;;  %v838_v2 = vadd.f32 %v4820_v4, %v4745_v13  ;;  %v842_v22 = vadd.f32 %v4820_v4, %v4763_v45 }
 0x1ca   :  { %v3831_v23 = vpop.eup %3830  ;;  %3834 = vtanh.f32 %v946_v31  ;;  %v4939_v29 = vadd.f32 %v4877_v47, %v839_v7  ;;  %v1203_v58 = vmul.f32 %v3829_v42, %v4848_v9  ;;  %v948_v19 = vadd.f32 %v4827_v37, %v796_v15 }
 0x1cb   :  { %3836 = vtanh.f32 %v947_v55  ;;  %v4944_v32 = vadd.f32 %v4877_v47, %v840_v54  ;;  %v1204_v13 = vmul.f32 %v3831_v23, %v4848_v9  ;;  %v4950_v45 = vadd.f32 %v4877_v47, %v838_v2  ;;  %v3833_v44 = vpop.eup %3832 }
 0x1cc   :  { %v843_v31 = vadd.f32 %v4820_v4, %v4767_v52  ;;  %v917_v55 = vrot.slane %v4818_v35, 4  ;;  %v4958_v42 = vadd.f32 %v4877_v47, %v842_v22  ;;  %v841_v7 = vadd.f32 %v4820_v4, %v4759_v36 }
 0x1cd   :  { %v914_v23 = vrot.slane %v4818_v35, 1  ;;  %v845_v52 = vadd.f32 %v4820_v4, %v4777_v12  ;;  %3838 = vtanh.f32 %v948_v19  ;;  %v799_v36 = vadd.f32 %v4820_v4, %v4765_v46 }
 0x1ce   :  { %1327 = vadd.xlane.f32.xlu0 %v1198_v40  ;;  %v4925_v40 = vadd.f32 %v4877_v47, %v837_v60  ;;  %v798_v60 = vadd.f32 %v4820_v4, %v4761_v38  ;;  %v4972_v54 = vadd.f32 %v4877_v47, %v843_v31  ;;  %v846_v2 = vadd.f32 %v4820_v4, %v4781_v20 }
 0x1cf   :  { %1331 = vadd.xlane.f32.xlu1 %v1200_v18  ;;  %v4932_v18 = vadd.f32 %v4877_v47, %v835_v33  ;;  %v797_v33 = vadd.f32 %v4820_v4, %v4755_v30  ;;  %v852_v30 = vadd.f32 %v4820_v4, %v4701_v16  ;;  %v1205_v22 = vmul.f32 %v3833_v44, %v4848_v9  ;;  %v4982_v12 = vpop.f32.mrf.mxu3 }
 0x1d0   :  { %1335 = vadd.xlane.f32.xlu2 %v1202_v49  ;;  %v4964_v49 = vpop.f32.mrf.mxu0  ;;  %v950_v15 = vadd.f32 %v4827_v37, %v798_v60  ;;  %v3835_v16 = vpop.eup %3834  ;;  %v848_v60 = vadd.f32 %v4820_v4, %v4793_v57  ;;  %v4990_v46 = vperm.slane %v917_v55, 0  ;;  %v4993_v20 = vadd.f32 %v4877_v47, %v845_v52 }
 0x1d1   :  { %v949_v38 = vadd.f32 %v4827_v37, %v797_v33  ;;  %v3837_v33 = vpop.eup %3836  ;;  %v4984_v19 = vpop.f32.mrf.mxu2  ;;  %v849_v44 = vadd.f32 %v4820_v4, %v4797_v5  ;;  %v4997_v31 = vperm.slane %v914_v23, 0  ;;  %v951_v57 = vadd.f32 %v4827_v37, %v799_v36 }
 0x1d2   :  { %v800_v52 = vadd.f32 %v4820_v4, %v4769_v56  ;;  %v847_v5 = vadd.f32 %v4820_v4, %v4787_v34  ;;  %v1207_v23 = vmul.f32 %v3837_v33, %v4848_v9  ;;  %v854_v56 = vadd.f32 %v4820_v4, %v4719_v39 }
 0x1d3   :  { %6866 = vst [vmem:[#allocation56_spill] sm:$0xff] %v4997_v31  ;;  %3840 = vtanh.f32 %v949_v38  ;;  %v5013_v38 = vadd.f32 %v4877_v47, %v848_v60  ;;  %v5020_v36 = vadd.f32 %v4990_v46, %v849_v44  ;;  %v855_v34 = vadd.f32 %v4820_v4, %v4727_v51 }
 0x1d4   :  { %3842 = vtanh.f32 %v950_v15  ;;  %v801_v15 = vadd.f32 %v4820_v4, %v4775_v8  ;;  %v5028_v33 = vadd.f32 %v4877_v47, %v847_v5  ;;  %v850_v8 = vadd.f32 %v4820_v4, %v4803_v3 }
 0x1d5   :  { %3844 = vtanh.f32 %v951_v57  ;;  %v853_v39 = vadd.f32 %v4820_v4, %v4711_v28  ;;  %v802_v3 = vadd.f32 %v4820_v4, %v4783_v24  ;;  %v5050_v57 = vadd.f32 %v4990_v46, %v854_v56 }
 0x1d6   :  { %1337 = vadd.xlane.f32.xlu0 %v1203_v58  ;;  %v4980_v58 = vadd.f32 %v4877_v47, %v841_v7  ;;  %v5000_v7 = vadd.f32 %v4877_v47, %v846_v2  ;;  %v3839_v2 = vpop.eup %3838  ;;  %v860_v24 = vadd.f32 %v4820_v4, %v4799_v63  ;;  %v918_v63 = vrot.slane %v4818_v35, 5 }
 0x1d7   :  { %1339 = vadd.xlane.f32.xlu1 %v1204_v13  ;;  %v844_v13 = vadd.f32 %v4820_v4, %v4771_v61  ;;  %v1206_v61 = vmul.f32 %v3835_v16, %v4848_v9  ;;  %v851_v16 = vadd.f32 %v4820_v4, %v4807_v27  ;;  %v953_v27 = vadd.f32 %v4997_v31, %v801_v15  ;;  %v5052_v28 = vpop.f32.mrf.mxu3 }
 0x1d8   :  { %1341 = vadd.xlane.f32.xlu2 %v1205_v22  ;;  %v952_v22 = vadd.f32 %v4827_v37, %v800_v52  ;;  %v5038_v51 = vpop.f32.mrf.mxu0  ;;  %v1208_v37 = vmul.f32 %v3839_v2, %v4848_v9  ;;  %v803_v2 = vadd.f32 %v4820_v4, %v4789_v43 }
 0x1d9   :  { %v5005_v55 = vadd.f32 %v4877_v47, %v844_v13  ;;  %v5034_v13 = vadd.f32 %v4990_v46, %v851_v16  ;;  %v3841_v60 = vpop.eup %3840  ;;  %v5042_v47 = vadd.f32 %v4990_v46, %v852_v30  ;;  %v602_v52 = vpop.f32.mrf.mxu2  ;;  %v954_v30 = vadd.f32 %v4997_v31, %v802_v3 }
 0x1da   :  { %v3843_v44 = vpop.eup %3842  ;;  %3846 = vtanh.f32 %v952_v22  ;;  %v1209_v5 = vmul.f32 %v3841_v60, %v4848_v9  ;;  %v5065_v16 = vadd.f32 %v4990_v46, %v853_v39  ;;  %v861_v22 = vadd.f32 %v4820_v4, %v4805_v10 }
 0x1db   :  { %3848 = vtanh.f32 %v953_v27  ;;  %v1210_v15 = vmul.f32 %v3843_v44, %v4848_v9  ;;  %v3845_v56 = vpop.eup %3844  ;;  %v955_v43 = vadd.f32 %v4997_v31, %v803_v2  ;;  %v863_v27 = vadd.f32 %v4820_v4, %v4836_v41 }
 0x1dc   :  { %v805_v60 = vadd.f32 %v4820_v4, %v4801_v14  ;;  %3850 = vtanh.f32 %v954_v30  ;;  %v5086_v44 = vadd.f32 %v4990_v46, %v860_v24  ;;  %v866_v41 = vadd.f32 %v4820_v4, %v4984_v19 }
 0x1dd   :  { %v867_v14 = vadd.f32 %v4820_v4, %v602_v52  ;;  %v5094_v2 = vadd.f32 %v4990_v46, %v861_v22  ;;  %3852 = vtanh.f32 %v955_v43  ;;  %v865_v22 = vadd.f32 %v4820_v4, %v4912_v0 }
 0x1de   :  { %1343 = vadd.xlane.f32.xlu0 %v1206_v61  ;;  %v5047_v61 = vadd.f32 %v4990_v46, %v850_v8  ;;  %v804_v8 = vadd.f32 %v4820_v4, %v4795_v1  ;;  %v862_v1 = vadd.f32 %v4820_v4, %v4813_v53  ;;  %v6868_v53 = vld [vmem:[#allocation52_spill] sm:$0xff]  ;;  %v957_v52 = vadd.f32 %v4997_v31, %v805_v60 }
 0x1df   :  { %1345 = vadd.xlane.f32.xlu1 %v1207_v23  ;;  %v5057_v23 = vadd.f32 %v4990_v46, %v855_v34  ;;  %v859_v34 = vadd.f32 %v4820_v4, %v4791_v48  ;;  %v864_v48 = vadd.f32 %v4820_v4, %v4865_v59  ;;  %v807_v59 = vadd.f32 %v4820_v4, %v6868_v53 }
 0x1e0   :  { %1347 = vadd.xlane.f32.xlu2 %v1208_v37  ;;  %v956_v10 = vadd.f32 %v4997_v31, %v804_v8  ;;  %v3847_v39 = vpop.eup %3846  ;;  %v1211_v37 = vmul.f32 %v3845_v56, %v4848_v9  ;;  %v5098_v56 = vperm.slane %v918_v63, 0  ;;  %v5106_v8 = vadd.f32 %v4990_v46, %v863_v27 }
 0x1e1   :  { %v3849_v3 = vpop.eup %3848  ;;  %v5101_v24 = vadd.f32 %v4990_v46, %v859_v34  ;;  %v1212_v19 = vmul.f32 %v3847_v39, %v4848_v9  ;;  %v5112_v63 = vadd.f32 %v4990_v46, %v864_v48  ;;  %v605_v34 = vpop.f32.mrf.mxu2  ;;  %v6872_v39 = vld [vmem:[#allocation54_spill] sm:$0xff] }
 0x1e2   :  { %3854 = vtanh.f32 %v956_v10  ;;  %v3851_v43 = vpop.eup %3850  ;;  %v5117_v10 = vadd.f32 %v4990_v46, %v862_v1  ;;  %v868_v60 = vadd.f32 %v4820_v4, %v605_v34  ;;  %v5122_v0 = vadd.f32 %v5098_v56, %v866_v41 }
 0x1e3   :  { %v808_v48 = vadd.f32 %v4820_v4, %v6872_v39  ;;  %3856 = vtanh.f32 %v957_v52  ;;  %v5128_v53 = vadd.f32 %v5098_v56, %v867_v14  ;;  %v1214_v1 = vmul.f32 %v3851_v43, %v4848_v9 }
 0x1e4   :  { %6870 = vst [vmem:[#allocation52_spill] sm:$0xff] %v5117_v10  ;;  %v5132_v34 = vadd.f32 %v5098_v56, %v865_v22  ;;  %v809_v41 = vadd.f32 %v4820_v4, %v4887_v21  ;;  %v5141_v52 = vadd.f32 %v5098_v56, %v868_v60  ;;  %v919_v22 = vrot.slane %v4818_v35, 6 }
 0x1e5   :  { %6871 = vst [vmem:[#allocation57_spill] sm:$0xff] %v5122_v0  ;;  %v960_v14 = vadd.f32 %v4997_v31, %v808_v48  ;;  %v6879_v0 = vld [vmem:[#allocation42_spill] sm:$0xff] }
 0x1e6   :  { %1349 = vadd.xlane.f32.xlu0 %v1209_v5  ;;  %v6867_v5 = vld [vmem:[#allocation50_spill] sm:$0xff]  ;;  %6873 = vst [vmem:[#allocation54_spill] sm:$0xff] %v5128_v53  ;;  %v961_v21 = vadd.f32 %v4997_v31, %v809_v41 }
 0x1e7   :  { %1351 = vadd.xlane.f32.xlu1 %v1210_v15  ;;  %v806_v30 = vadd.f32 %v4820_v4, %v6867_v5  ;;  %v437_v15 = vpop.f32.mrf.mxu0  ;;  %v1213_v5 = vmul.f32 %v3849_v3, %v4848_v9  ;;  %6869 = vst [vmem:[#allocation50_spill] sm:$0xff] %v5112_v63  ;;  %v959_v3 = vadd.f32 %v4997_v31, %v807_v59  ;;  %v6881_v63 = vld [vmem:[#allocation41_spill] sm:$0xff] }
 0x1e8   :  { %1353 = vadd.xlane.f32.xlu2 %v1211_v37  ;;  %v5114_v37 = vpop.f32.mrf.mxu3  ;;  %6874 = vst [vmem:[#allocation58_spill] sm:$0xff] %v5132_v34 }
 0x1e9   :  { %v958_v27 = vadd.f32 %v4997_v31, %v806_v30  ;;  %v810_v30 = vadd.f32 %v4820_v4, %v4964_v49  ;;  %6875 = vst [vmem:[#allocation59_spill] sm:$0xff] %v5141_v52  ;;  %v6878_v52 = vld [vmem:[#allocation37_spill] sm:$0xff] }
 0x1ea   :  { %v880_v53 = vadd.f32 %v4820_v4, %v6878_v52 }
 0x1eb   :  { %3858 = vtanh.f32 %v958_v27  ;;  %v811_v27 = vadd.f32 %v4820_v4, %v5038_v51  ;;  %v962_v48 = vadd.f32 %v4997_v31, %v810_v30  ;;  %v884_v51 = vadd.f32 %v4820_v4, %v6879_v0 }
 0x1ec   :  { %3860 = vtanh.f32 %v959_v3  ;;  %v6876_v3 = vld [vmem:[#allocation39_spill] sm:$0xff]  ;;  %v812_v30 = vadd.f32 %v4820_v4, %v437_v15  ;;  %v883_v15 = vadd.f32 %v4820_v4, %v6881_v63 }
 0x1ed   :  { %3862 = vtanh.f32 %v960_v14 }
 0x1ee   :  { %1355 = vadd.xlane.f32.xlu0 %v1212_v19  ;;  %v3853_v19 = vpop.eup %3852  ;;  %3864 = vtanh.f32 %v961_v21  ;;  %v6883_v21 = vld [vmem:[#allocation45_spill] sm:$0xff] }
 0x1ef   :  { %1357 = vadd.xlane.f32.xlu1 %v1213_v5  ;;  %v3855_v5 = vpop.eup %3854  ;;  %v1215_v59 = vmul.f32 %v3853_v19, %v4848_v9  ;;  %v440_v43 = vpop.f32.mrf.mxu0  ;;  %v881_v19 = vadd.f32 %v4820_v4, %v6876_v3  ;;  %3866 = vtanh.f32 %v962_v48  ;;  %v6880_v3 = vld [vmem:[#allocation43_spill] sm:$0xff]  ;;  %v887_v48 = vadd.f32 %v4820_v4, %v6883_v21  ;;  %v6886_v21 = vld [vmem:[#allocation44_spill] sm:$0xff] }
 0x1f0   :  { %1359 = vadd.xlane.f32.xlu2 %v1214_v1  ;;  %v1216_v39 = vmul.f32 %v3855_v5, %v4848_v9  ;;  %v3857_v34 = vpop.eup %3856  ;;  %v5146_v49 = vpop.f32.mrf.mxu3  ;;  %v5153_v1 = vperm.slane %v919_v22, 0  ;;  %v813_v14 = vadd.f32 %v4820_v4, %v440_v43 }
 0x1f1   :  { %v3859_v60 = vpop.eup %3858  ;;  %v1217_v5 = vmul.f32 %v3857_v34, %v4848_v9  ;;  %v963_v34 = vadd.f32 %v4997_v31, %v811_v27  ;;  %v6884_v27 = vld [vmem:[#allocation46_spill] sm:$0xff] }
 0x1f2   :  { %v1218_v22 = vmul.f32 %v3859_v60, %v4848_v9  ;;  %v5170_v52 = vadd.f32 %v5153_v1, %v881_v19  ;;  %v888_v60 = vadd.f32 %v4820_v4, %v6884_v27  ;;  %v5183_v19 = vadd.f32 %v5098_v56, %v880_v53 }
 0x1f3   :  { %3868 = vtanh.f32 %v963_v34  ;;  %v965_v63 = vadd.f32 %v4997_v31, %v813_v14  ;;  %v6888_v34 = vld [vmem:[#allocation31_spill] sm:$0xff] }
 0x1f4   :  { %v824_v14 = vadd.f32 %v4820_v4, %v6888_v34  ;;  %v920_v34 = vrot.slane %v4818_v35, 7 }
 0x1f6   :  { %1361 = vadd.xlane.f32.xlu0 %v1215_v59  ;;  %v3861_v59 = vpop.eup %3860 }
 0x1f7   :  { %1363 = vadd.xlane.f32.xlu1 %v1216_v39  ;;  %v6877_v39 = vld [vmem:[#allocation40_spill] sm:$0xff]  ;;  %v1219_v10 = vmul.f32 %v3861_v59, %v4848_v9  ;;  %v3863_v0 = vpop.eup %3862  ;;  %v964_v59 = vadd.f32 %v4997_v31, %v812_v30 }
 0x1f8   :  { %v882_v41 = vadd.f32 %v4820_v4, %v6877_v39  ;;  %1365 = vadd.xlane.f32.xlu2 %v1217_v5  ;;  %v885_v39 = vadd.f32 %v4820_v4, %v6880_v3  ;;  %v443_v5 = vpop.f32.mrf.mxu0  ;;  %6885 = vst [vmem:[#allocation40_spill] sm:$0xff] %v5183_v19  ;;  %v1220_v27 = vmul.f32 %v3863_v0, %v4848_v9  ;;  %v692_v53 = vpop.f32.mrf.mxu3 }
 0x1f9   :  { %v814_v3 = vadd.f32 %v4820_v4, %v443_v5  ;;  %v5197_v19 = vadd.f32 %v5153_v1, %v883_v15  ;;  %v6889_v5 = vld [vmem:[#allocation55_spill] sm:$0xff]  ;;  %3870 = vtanh.f32 %v964_v59  ;;  %v893_v15 = vadd.f32 %v4820_v4, %v4982_v12 }
 0x1fa   :  { %v5175_v43 = vadd.f32 %v5153_v1, %v882_v41  ;;  %v5188_v41 = vadd.f32 %v5153_v1, %v884_v51  ;;  %v891_v51 = vadd.f32 %v4820_v4, %v6889_v5  ;;  %3872 = vtanh.f32 %v965_v63 }
 0x1fb   :  { %v976_v12 = vadd.f32 %v4870_v17, %v824_v14 }
 0x1fc   :  { %6882 = vst [vmem:[#allocation39_spill] sm:$0xff] %v5175_v43  ;;  %v886_v43 = vadd.f32 %v4820_v4, %v6886_v21  ;;  %v5204_v21 = vadd.f32 %v5153_v1, %v887_v48  ;;  %v5226_v35 = vadd.f32 %v5153_v1, %v891_v51 }
 0x1fe   :  { %1367 = vadd.xlane.f32.xlu0 %v1218_v22  ;;  %v3865_v22 = vpop.eup %3864  ;;  %v5216_v59 = vadd.f32 %v5153_v1, %v886_v43  ;;  %v896_v43 = vadd.f32 %v4820_v4, %v5146_v49  ;;  %v895_v49 = vadd.f32 %v4820_v4, %v5114_v37 }
 0x1ff   :  { %1369 = vadd.xlane.f32.xlu1 %v1219_v10  ;;  %v5194_v10 = vadd.f32 %v5153_v1, %v885_v39  ;;  %v3867_v30 = vpop.eup %3866  ;;  %v1221_v0 = vmul.f32 %v3865_v22, %v4848_v9  ;;  %v966_v39 = vadd.f32 %v4997_v31, %v814_v3  ;;  %v894_v3 = vadd.f32 %v4820_v4, %v5052_v28  ;;  %v6894_v31 = vld [vmem:[#allocation35_spill] sm:$0xff] }
 0x200   :  { %1371 = vadd.xlane.f32.xlu2 %v1220_v27  ;;  %v1222_v5 = vmul.f32 %v3867_v30, %v4848_v9  ;;  %v3869_v48 = vpop.eup %3868  ;;  %v6890_v27 = vld [vmem:[#allocation32_spill] sm:$0xff]  ;;  %v5232_v28 = vperm.slane %v920_v34, 0  ;;  %v695_v34 = vpop.f32.mrf.mxu3 }
 0x201   :  { %6887 = vst [vmem:[#allocation37_spill] sm:$0xff] %v5194_v10  ;;  %v5209_v10 = vadd.f32 %v5153_v1, %v888_v60  ;;  %v825_v22 = vadd.f32 %v4820_v4, %v6890_v27  ;;  %v892_v60 = vadd.f32 %v4820_v4, %v4910_v11  ;;  %3874 = vtanh.f32 %v966_v39  ;;  %v3871_v30 = vpop.eup %3870 }
 0x202   :  { %v897_v27 = vadd.f32 %v4820_v4, %v692_v53  ;;  %v5236_v11 = vadd.f32 %v5153_v1, %v893_v15  ;;  %v3873_v14 = vpop.eup %3872  ;;  %v5243_v39 = vadd.f32 %v5153_v1, %v894_v3  ;;  %3876 = vtanh.f32 %v976_v12 }
 0x203   :  { %v977_v63 = vadd.f32 %v4870_v17, %v825_v22  ;;  %v5246_v53 = vadd.f32 %v5153_v1, %v892_v60  ;;  %v5251_v22 = vadd.f32 %v5153_v1, %v896_v43  ;;  %v898_v3 = vadd.f32 %v4820_v4, %v695_v34 }
 0x204   :  { %v5258_v12 = vadd.f32 %v5232_v28, %v897_v27 }
 0x205   :  { %3878 = vtanh.f32 %v977_v63  ;;  %v5263_v63 = vadd.f32 %v5153_v1, %v895_v49  ;;  %v5269_v27 = vadd.f32 %v5232_v28, %v898_v3 }
 0x206   :  { %1373 = vadd.xlane.f32.xlu0 %v1221_v0  ;;  %v1223_v0 = vmul.f32 %v3869_v48, %v4848_v9  ;;  %v1224_v48 = vmul.f32 %v3871_v30, %v4848_v9  ;;  %6893 = vst [vmem:[#allocation42_spill] sm:$0xff] %v5258_v12  ;;  %v828_v30 = vadd.f32 %v4820_v4, %v6894_v31  ;;  %v6895_v12 = vld [vmem:[#allocation33_spill] sm:$0xff] }
 0x207   :  { %1375 = vadd.xlane.f32.xlu1 %v1222_v5  ;;  %v6891_v5 = vld [vmem:[#allocation30_spill] sm:$0xff]  ;;  %v3875_v60 = vpop.eup %3874  ;;  %v826_v31 = vadd.f32 %v4820_v4, %v6895_v12 }
 0x208   :  { %v823_v51 = vadd.f32 %v4820_v4, %v6891_v5  ;;  %1377 = vadd.xlane.f32.xlu2 %v1223_v0  ;;  %v6892_v5 = vld [vmem:[#allocation34_spill] sm:$0xff]  ;;  %v1225_v0 = vmul.f32 %v3873_v14, %v4848_v9  ;;  %v3877_v34 = vpop.eup %3876  ;;  %v1226_v14 = vmul.f32 %v3875_v60, %v4848_v9 }
 0x209   :  { %v827_v37 = vadd.f32 %v4820_v4, %v6892_v5  ;;  %v1236_v49 = vmul.f32 %v3877_v34, %v4848_v9 }
 0x20a   :  { %v975_v15 = vadd.f32 %v4870_v17, %v823_v51  ;;  %v980_v51 = vadd.f32 %v4870_v17, %v828_v30 }
 0x20b   :  { %v979_v43 = vadd.f32 %v4870_v17, %v827_v37  ;;  %v3879_v5 = vpop.eup %3878 }
 0x20c   :  { %3880 = vtanh.f32 %v975_v15  ;;  %v6896_v15 = vld [vmem:[#allocation38_spill] sm:$0xff] }
 0x20d   :  { %3882 = vtanh.f32 %v979_v43  ;;  %v830_v37 = vadd.f32 %v4820_v4, %v6896_v15 }
 0x20e   :  { %1379 = vadd.xlane.f32.xlu0 %v1224_v48  ;;  %3884 = vtanh.f32 %v980_v51  ;;  %v978_v48 = vadd.f32 %v4870_v17, %v826_v31 }
 0x20f   :  { %1381 = vadd.xlane.f32.xlu1 %v1225_v0  ;;  %v1237_v0 = vmul.f32 %v3879_v5, %v4848_v9  ;;  %v982_v3 = vadd.f32 %v4870_v17, %v830_v37 }
 0x210   :  { %1383 = vadd.xlane.f32.xlu2 %v1226_v14  ;;  %3886 = vtanh.f32 %v978_v48  ;;  %v6897_v14 = vld [vmem:[#allocation36_spill] sm:$0xff] }
 0x211   :  { %v829_v51 = vadd.f32 %v4820_v4, %v6897_v14  ;;  %3888 = vtanh.f32 %v982_v3 }
 0x212   :  { %v3881_v60 = vpop.eup %3880  ;;  %3890 = vtanh.f32 %v4891_v26 }
 0x213   :  { %v3883_v30 = vpop.eup %3882  ;;  %v1235_v12 = vmul.f32 %v3881_v60, %v4848_v9  ;;  %v981_v5 = vadd.f32 %v4870_v17, %v829_v51 }
 0x214   :  { %v3885_v43 = vpop.eup %3884  ;;  %v1239_v34 = vmul.f32 %v3883_v30, %v4848_v9 }
 0x215   :  { %v1240_v31 = vmul.f32 %v3885_v43, %v4848_v9  ;;  %3892 = vtanh.f32 %v981_v5  ;;  %v5296_v43 = vpop.f32.mrf.mxu2 }
 0x216   :  { %1403 = vadd.xlane.f32.xlu0 %v1236_v49  ;;  %v3887_v49 = vpop.eup %3886  ;;  %3894 = vtanh.f32 %v4905_v50 }
 0x217   :  { %1405 = vadd.xlane.f32.xlu1 %v1237_v0  ;;  %v3889_v48 = vpop.eup %3888  ;;  %v1238_v15 = vmul.f32 %v3887_v49, %v4848_v9  ;;  %3896 = vtanh.f32 %v4908_v25 }
 0x218   :  { %1401 = vadd.xlane.f32.xlu2 %v1235_v12  ;;  %v3891_v37 = vpop.eup %3890  ;;  %v1242_v0 = vmul.f32 %v3889_v48, %v4848_v9  ;;  %3898 = vtanh.f32 %v4916_v62 }
 0x219   :  { %v1243_v26 = vmul.f32 %v3891_v37, %v4848_v9  ;;  %3900 = vtanh.f32 %v4919_v6 }
 0x21a   :  { %3902 = vtanh.f32 %v4925_v40 }
 0x21b   :  { %v3893_v60 = vpop.eup %3892  ;;  %3904 = vtanh.f32 %v4932_v18 }
 0x21c   :  { %v3895_v3 = vpop.eup %3894  ;;  %v1241_v30 = vmul.f32 %v3893_v60, %v4848_v9  ;;  %3906 = vtanh.f32 %v4939_v29 }
 0x21d   :  { %v3897_v12 = vpop.eup %3896  ;;  %v1245_v50 = vmul.f32 %v3895_v3, %v4848_v9  ;;  %3908 = vtanh.f32 %v4944_v32  ;;  %v5307_v49 = vpop.f32.mrf.mxu2 }
 0x21e   :  { %1409 = vadd.xlane.f32.xlu0 %v1239_v34  ;;  %v1246_v25 = vmul.f32 %v3897_v12, %v4848_v9  ;;  %v3899_v14 = vpop.eup %3898  ;;  %3910 = vtanh.f32 %v4950_v45 }
 0x21f   :  { %1411 = vadd.xlane.f32.xlu1 %v1240_v31  ;;  %v3901_v62 = vpop.eup %3900  ;;  %v1244_v51 = vmul.f32 %v3899_v14, %v4848_v9  ;;  %v5305_v31 = vpop.permute.xlu2 %1585  ;;  %3912 = vtanh.f32 %v4958_v42 }
 0x220   :  { %1407 = vadd.xlane.f32.xlu2 %v1238_v15  ;;  %v3903_v34 = vpop.eup %3902  ;;  %v1248_v6 = vmul.f32 %v3901_v62, %v4848_v9  ;;  %3914 = vtanh.f32 %v4972_v54 }
 0x221   :  { %v1249_v40 = vmul.f32 %v3903_v34, %v4848_v9  ;;  %v3905_v5 = vpop.eup %3904  ;;  %3916 = vtanh.f32 %v4980_v58 }
 0x222   :  { %v3907_v18 = vpop.eup %3906  ;;  %v1247_v48 = vmul.f32 %v3905_v5, %v4848_v9  ;;  %3918 = vtanh.f32 %v4993_v20 }
 0x223   :  { %v3909_v29 = vpop.eup %3908  ;;  %v1251_v32 = vmul.f32 %v3907_v18, %v4848_v9  ;;  %3920 = vtanh.f32 %v5000_v7 }
 0x224   :  { %3922 = vtanh.f32 %v5005_v55 }
 0x225   :  { %v5322_v3 = vpop.f32.mrf.mxu2  ;;  %3924 = vtanh.f32 %v5013_v38 }
 0x226   :  { %1415 = vadd.xlane.f32.xlu0 %v1242_v0  ;;  %v1252_v0 = vmul.f32 %v3909_v29, %v4848_v9  ;;  %3926 = vtanh.f32 %v5020_v36 }
 0x227   :  { %1417 = vadd.xlane.f32.xlu1 %v1243_v26  ;;  %v3911_v26 = vpop.eup %3910  ;;  %3928 = vtanh.f32 %v5028_v33 }
 0x228   :  { %1413 = vadd.xlane.f32.xlu2 %v1241_v30  ;;  %v3913_v45 = vpop.eup %3912  ;;  %v1250_v30 = vmul.f32 %v3911_v26, %v4848_v9  ;;  %3930 = vtanh.f32 %v5034_v13 }
 0x229   :  { %v3915_v42 = vpop.eup %3914  ;;  %v1254_v54 = vmul.f32 %v3913_v45, %v4848_v9  ;;  %3932 = vtanh.f32 %v5042_v47  ;;  %v6901_v47 = vld [vmem:[#allocation48_spill] sm:$0xff] }
 0x22a   :  { %v3917_v58 = vpop.eup %3916  ;;  %3934 = vtanh.f32 %v5047_v61 }
 0x22b   :  { %v3919_v62 = vpop.eup %3918  ;;  %3936 = vtanh.f32 %v5050_v57 }
 0x22c   :  { %v1257_v7 = vmul.f32 %v3919_v62, %v4848_v9  ;;  %v857_v62 = vadd.f32 %v4820_v4, %v6901_v47  ;;  %3938 = vtanh.f32 %v5057_v23 }
 0x22d   :  { %3940 = vtanh.f32 %v5065_v16 }
 0x22e   :  { %1421 = vadd.xlane.f32.xlu0 %v1245_v50 }
 0x22f   :  { %1423 = vadd.xlane.f32.xlu1 %v1246_v25  ;;  %v1255_v25 = vmul.f32 %v3915_v42, %v4848_v9 }
 0x230   :  { %1419 = vadd.xlane.f32.xlu2 %v1244_v51  ;;  %v1253_v51 = vmul.f32 %v3917_v58, %v4848_v9 }
 0x236   :  { %1427 = vadd.xlane.f32.xlu0 %v1248_v6  ;;  %v3921_v6 = vpop.eup %3920 }
 0x237   :  { %1429 = vadd.xlane.f32.xlu1 %v1249_v40  ;;  %v5341_v40 = vpop.f32.mrf.mxu2  ;;  %v1258_v5 = vmul.f32 %v3921_v6, %v4848_v9  ;;  %v3923_v55 = vpop.eup %3922 }
 0x238   :  { %1425 = vadd.xlane.f32.xlu2 %v1247_v48  ;;  %v3925_v48 = vpop.eup %3924  ;;  %v1256_v29 = vmul.f32 %v3923_v55, %v4848_v9 }
 0x239   :  { %v5311_v15 = vpop.xlane.xlu0 %1325  ;;  %v1260_v36 = vmul.f32 %v3925_v48, %v4848_v9 }
 0x23a   :  { %v5313_v37 = vpop.xlane.xlu1 %1329 }
 0x23b   :  { %v5319_v60 = vpop.xlane.xlu2 %1333 }
 0x23e   :  { %1433 = vadd.xlane.f32.xlu0 %v1251_v32 }
 0x23f   :  { %1435 = vadd.xlane.f32.xlu1 %v1252_v0  ;;  %v3927_v0 = vpop.eup %3926  ;;  %v5358_v26 = vpop.f32.mrf.mxu2 }
 0x240   :  { %1431 = vadd.xlane.f32.xlu2 %v1250_v30  ;;  %v1261_v45 = vmul.f32 %v3927_v0, %v4848_v9  ;;  %v3929_v33 = vpop.eup %3928  ;;  %v6904_v0 = vld [vmem:[#allocation47_spill] sm:$0xff] }
 0x241   :  { %v5325_v12 = vpop.xlane.xlu0 %1327  ;;  %v3931_v42 = vpop.eup %3930  ;;  %v856_v57 = vadd.f32 %v4820_v4, %v6904_v0 }
 0x242   :  { %v5327_v50 = vpop.xlane.xlu1 %1331  ;;  %v3933_v13 = vpop.eup %3932 }
 0x243   :  { %v5333_v14 = vpop.xlane.xlu2 %1335  ;;  %v1264_v61 = vmul.f32 %v3933_v13, %v4848_v9  ;;  %v1008_v47 = vadd.f32 %v4990_v46, %v856_v57 }
 0x246   :  { %1439 = vadd.xlane.f32.xlu0 %v1254_v54  ;;  %v1259_v54 = vmul.f32 %v3929_v33, %v4848_v9 }
 0x247   :  { %1441 = vadd.xlane.f32.xlu1 %v1255_v25  ;;  %v5379_v48 = vpop.f32.mrf.mxu2 }
 0x248   :  { %1437 = vadd.xlane.f32.xlu2 %v1253_v51  ;;  %v6902_v51 = vld [vmem:[#allocation49_spill] sm:$0xff] }
 0x249   :  { %v5337_v34 = vpop.xlane.xlu0 %1337  ;;  %v858_v6 = vadd.f32 %v4820_v4, %v6902_v51 }
 0x24a   :  { %v5339_v20 = vpop.xlane.xlu1 %1339 }
 0x24b   :  { %v5347_v18 = vpop.xlane.xlu2 %1341 }
 0x24e   :  { %1445 = vadd.xlane.f32.xlu0 %v1257_v7  ;;  %v1263_v7 = vmul.f32 %v3931_v42, %v4848_v9 }
 0x24f   :  { %1447 = vadd.xlane.f32.xlu1 %v1258_v5  ;;  %v3935_v5 = vpop.eup %3934 }
 0x250   :  { %1443 = vadd.xlane.f32.xlu2 %v1256_v29  ;;  %v1009_v29 = vadd.f32 %v4990_v46, %v857_v62  ;;  %v1262_v23 = vmul.f32 %v3935_v5, %v4848_v9 }
 0x251   :  { %v5351_v32 = vpop.xlane.xlu0 %1343 }
 0x252   :  { %v5353_v38 = vpop.xlane.xlu1 %1345  ;;  %3942 = vtanh.f32 %v1009_v29 }
 0x253   :  { %v5361_v30 = vpop.xlane.xlu2 %1347 }
 0x254   :  { %6898 = vst [vmem:[#allocation43_spill] sm:$0xff] %v5361_v30 }
 0x256   :  { %1451 = vadd.xlane.f32.xlu0 %v1260_v36  ;;  %v1010_v36 = vadd.f32 %v4990_v46, %v858_v6  ;;  %v5396_v6 = vpop.f32.mrf.mxu2 }
 0x257   :  { %1453 = vadd.xlane.f32.xlu1 %v1261_v45  ;;  %v3937_v45 = vpop.eup %3936 }
 0x258   :  { %1449 = vadd.xlane.f32.xlu2 %v1259_v54  ;;  %v3939_v42 = vpop.eup %3938  ;;  %v1266_v13 = vmul.f32 %v3937_v45, %v4848_v9  ;;  %3944 = vtanh.f32 %v1010_v36  ;;  %v5409_v45 = vpop.f32.mrf.mxu3 }
 0x259   :  { %v5365_v25 = vpop.xlane.xlu0 %1349  ;;  %v1267_v4 = vmul.f32 %v3939_v42, %v4848_v9  ;;  %v3941_v16 = vpop.eup %3940  ;;  %3946 = vtanh.f32 %v1008_v47 }
 0x25a   :  { %6899 = vst [vmem:[#allocation41_spill] sm:$0xff] %v5365_v25  ;;  %v5367_v58 = vpop.xlane.xlu1 %1351  ;;  %v3943_v51 = vpop.eup %3942  ;;  %3948 = vtanh.f32 %v5086_v44 }
 0x25b   :  { %6900 = vst [vmem:[#allocation45_spill] sm:$0xff] %v5367_v58  ;;  %v5377_v55 = vpop.xlane.xlu2 %1353  ;;  %v1269_v46 = vmul.f32 %v3943_v51, %v4848_v9  ;;  %3950 = vtanh.f32 %v5094_v2 }
 0x25c   :  { %6903 = vst [vmem:[#allocation46_spill] sm:$0xff] %v5377_v55  ;;  %3952 = vtanh.f32 %v5101_v24 }
 0x25d   :  { %3954 = vtanh.f32 %v5106_v8 }
 0x25e   :  { %1457 = vadd.xlane.f32.xlu0 %v1263_v7  ;;  %v1265_v7 = vmul.f32 %v3941_v16, %v4848_v9  ;;  %v3945_v5 = vpop.eup %3944  ;;  %v5417_v2 = vpop.f32.mrf.mxu2  ;;  %v6906_v16 = vld [vmem:[#allocation50_spill] sm:$0xff] }
 0x25f   :  { %1459 = vadd.xlane.f32.xlu1 %v1264_v61  ;;  %v1270_v0 = vmul.f32 %v3945_v5, %v4848_v9  ;;  %v3947_v57 = vpop.eup %3946  ;;  %3956 = vtanh.f32 %v6906_v16  ;;  %v6907_v5 = vld [vmem:[#allocation52_spill] sm:$0xff]  ;;  %v5438_v16 = vld [vmem:[#allocation12] ss:$0 sm:$0xff] }
 0x260   :  { %1455 = vadd.xlane.f32.xlu2 %v1262_v23  ;;  %v3949_v23 = vpop.eup %3948  ;;  %v1268_v42 = vmul.f32 %v3947_v57, %v4848_v9  ;;  %3958 = vtanh.f32 %v6907_v5  ;;  %v5431_v8 = vpop.f32.mrf.mxu3 }
 0x261   :  { %v5387_v33 = vpop.xlane.xlu0 %1355  ;;  %v3951_v44 = vpop.eup %3950 }
 0x262   :  { %6905 = vst [vmem:[#allocation44_spill] sm:$0xff] %v5387_v33  ;;  %v5389_v54 = vpop.xlane.xlu1 %1357  ;;  %v3953_v51 = vpop.eup %3952  ;;  %v6910_v33 = vld [vmem:[#allocation54_spill] sm:$0xff] }
 0x263   :  { %v5394_v62 = vpop.xlane.xlu2 %1359 }
 0x266   :  { %1463 = vadd.xlane.f32.xlu0 %v1266_v13 }
 0x267   :  { %1465 = vadd.xlane.f32.xlu1 %v1267_v4  ;;  %v5423_v4 = vld [vmem:[%s6818_s7] ss:$0 sm:$0xff]  ;;  %s3587_s7 = sshll.u32 %s6826_s15, 4  ;;  %s3588_s7 = int_to_ptr.hbm [resolvable:$true] %s3587_s7 }
 0x268   :  { %1461 = vadd.xlane.f32.xlu2 %v1265_v7  ;;  %v1272_v24 = vmul.f32 %v5423_v4, %v3949_v23  ;;  %v1273_v9 = vmul.f32 %v5423_v4, %v3951_v44  ;;  %v869_v44 = vadd.f32 %v5438_v16, %v5296_v43 }
 0x269   :  { %v5399_v61 = vpop.xlane.xlu0 %1361 }
 0x26a   :  { %v5401_v29 = vpop.xlane.xlu1 %1363  ;;  %v1021_v43 = vadd.f32 %v5098_v56, %v869_v44 }
 0x26b   :  { %v5407_v36 = vpop.xlane.xlu2 %1365 }
 0x26e   :  { %1469 = vadd.xlane.f32.xlu0 %v1269_v46  ;;  %v3955_v46 = vpop.eup %3954 }
 0x26f   :  { %1471 = vadd.xlane.f32.xlu1 %v1270_v0  ;;  %v1271_v0 = vmul.f32 %v5423_v4, %v3953_v51  ;;  %v1275_v5 = vmul.f32 %v5423_v4, %v3955_v46  ;;  %v5447_v51 = vpop.f32.mrf.mxu2 }
 0x270   :  { %1467 = vadd.xlane.f32.xlu2 %v1268_v42  ;;  %v3957_v42 = vpop.eup %3956 }
 0x271   :  { %v5413_v13 = vpop.xlane.xlu0 %1367  ;;  %v1276_v55 = vmul.f32 %v5423_v4, %v3957_v42  ;;  %v3959_v58 = vpop.eup %3958 }
 0x272   :  { %v5415_v47 = vpop.xlane.xlu1 %1369  ;;  %v1274_v46 = vmul.f32 %v5423_v4, %v3959_v58  ;;  %v5460_v42 = vpop.f32.mrf.mxu3 }
 0x273   :  { %v5428_v7 = vpop.xlane.xlu2 %1371 }
 0x276   :  { %1475 = vadd.xlane.f32.xlu0 %v1272_v24  ;;  %v6909_v24 = vld [vmem:[#allocation57_spill] sm:$0xff] }
 0x277   :  { %1477 = vadd.xlane.f32.xlu1 %v1273_v9  ;;  %3960 = vtanh.f32 %v6909_v24  ;;  %v870_v9 = vadd.f32 %v5438_v16, %v5307_v49 }
 0x278   :  { %1473 = vadd.xlane.f32.xlu2 %v1271_v0  ;;  %3962 = vtanh.f32 %v6910_v33  ;;  %v6912_v0 = vld [vmem:[#allocation58_spill] sm:$0xff] }
 0x279   :  { %v5434_v57 = vpop.xlane.xlu0 %1373  ;;  %3964 = vtanh.f32 %v6912_v0  ;;  %v1022_v24 = vadd.f32 %v5098_v56, %v870_v9 }
 0x27a   :  { %v5436_v23 = vpop.xlane.xlu1 %1375  ;;  %3966 = vtanh.f32 %v1021_v43  ;;  %v6915_v43 = vld [vmem:[#allocation59_spill] sm:$0xff] }
 0x27b   :  { %6908 = vst [vmem:[#allocation31_spill] sm:$0xff] %v5436_v23  ;;  %v5450_v30 = vpop.xlane.xlu2 %1377  ;;  %3968 = vtanh.f32 %v1022_v24 }
 0x27c   :  { %6911 = vst [vmem:[#allocation55_spill] sm:$0xff] %v5450_v30  ;;  %3970 = vtanh.f32 %v6915_v43 }
 0x27d   :  { %v3961_v49 = vpop.eup %3960 }
 0x27e   :  { %1481 = vadd.xlane.f32.xlu0 %v1275_v5  ;;  %v3963_v33 = vpop.eup %3962  ;;  %v872_v5 = vadd.f32 %v5438_v16, %v5341_v40  ;;  %v1278_v44 = vmul.f32 %v5423_v4, %v3961_v49  ;;  %v871_v40 = vadd.f32 %v5438_v16, %v5322_v3  ;;  %v876_v3 = vadd.f32 %v5438_v16, %v5417_v2 }
 0x27f   :  { %1483 = vadd.xlane.f32.xlu1 %v1276_v55  ;;  %v873_v55 = vadd.f32 %v5438_v16, %v5358_v26  ;;  %v1279_v58 = vmul.f32 %v5423_v4, %v3963_v33  ;;  %v3965_v9 = vpop.eup %3964 }
 0x280   :  { %1479 = vadd.xlane.f32.xlu2 %v1274_v46  ;;  %v1024_v30 = vadd.f32 %v5098_v56, %v872_v5  ;;  %v3967_v46 = vpop.eup %3966  ;;  %v1277_v24 = vmul.f32 %v5423_v4, %v3965_v9  ;;  %v1028_v2 = vadd.f32 %v5098_v56, %v876_v3 }
 0x281   :  { %v5456_v25 = vpop.xlane.xlu0 %1379  ;;  %v1025_v26 = vadd.f32 %v5098_v56, %v873_v55  ;;  %v3969_v33 = vpop.eup %3968  ;;  %v1281_v5 = vmul.f32 %v5423_v4, %v3967_v46  ;;  %v1023_v55 = vadd.f32 %v5098_v56, %v871_v40 }
 0x282   :  { %6913 = vst [vmem:[#allocation32_spill] sm:$0xff] %v5456_v25  ;;  %v5458_v23 = vpop.xlane.xlu1 %1381  ;;  %3972 = vtanh.f32 %v1024_v30  ;;  %v1282_v9 = vmul.f32 %v5423_v4, %v3969_v33  ;;  %v3971_v43 = vpop.eup %3970  ;;  %v874_v30 = vadd.f32 %v5438_v16, %v5379_v48 }
 0x283   :  { %6914 = vst [vmem:[#allocation30_spill] sm:$0xff] %v5458_v23  ;;  %v5468_v0 = vpop.xlane.xlu2 %1383  ;;  %v635_v23 = vpop.f32.mrf.mxu2  ;;  %3974 = vtanh.f32 %v1025_v26  ;;  %v1280_v40 = vmul.f32 %v5423_v4, %v3971_v43 }
 0x284   :  { %3976 = vtanh.f32 %v1023_v55  ;;  %v1026_v3 = vadd.f32 %v5098_v56, %v874_v30 }
 0x286   :  { %1487 = vadd.xlane.f32.xlu0 %v1278_v44  ;;  %v875_v44 = vadd.f32 %v5438_v16, %v5396_v6 }
 0x287   :  { %1489 = vadd.xlane.f32.xlu1 %v1279_v58  ;;  %v5486_v58 = vpop.f32.mrf.mxu3 }
 0x288   :  { %1485 = vadd.xlane.f32.xlu2 %v1277_v24  ;;  %v1027_v6 = vadd.f32 %v5098_v56, %v875_v44  ;;  %v3973_v26 = vpop.eup %3972 }
 0x289   :  { %v5476_v49 = vpop.xlane.xlu0 %1403  ;;  %v3975_v33 = vpop.eup %3974  ;;  %v1284_v48 = vmul.f32 %v5423_v4, %v3973_v26 }
 0x28a   :  { %6916 = vst [vmem:[#allocation34_spill] sm:$0xff] %v5476_v49  ;;  %v5478_v25 = vpop.xlane.xlu1 %1405  ;;  %3978 = vtanh.f32 %v1027_v6  ;;  %v1285_v55 = vmul.f32 %v5423_v4, %v3975_v33  ;;  %v877_v6 = vadd.f32 %v5438_v16, %v5447_v51 }
 0x28b   :  { %6917 = vst [vmem:[#allocation35_spill] sm:$0xff] %v5478_v25  ;;  %v5489_v49 = vpop.xlane.xlu2 %1401  ;;  %v638_v46 = vpop.f32.mrf.mxu2  ;;  %3980 = vtanh.f32 %v1028_v2 }
 0x28c   :  { %v879_v44 = vadd.f32 %v5438_v16, %v638_v46  ;;  %3982 = vtanh.f32 %v1026_v3 }
 0x28e   :  { %1493 = vadd.xlane.f32.xlu0 %v1281_v5  ;;  %v878_v5 = vadd.f32 %v5438_v16, %v635_v23  ;;  %v1031_v46 = vadd.f32 %v5098_v56, %v879_v44 }
 0x28f   :  { %1495 = vadd.xlane.f32.xlu1 %v1282_v9  ;;  %v3977_v9 = vpop.eup %3976 }
 0x290   :  { %1491 = vadd.xlane.f32.xlu2 %v1280_v40  ;;  %v1030_v23 = vadd.f32 %v5098_v56, %v878_v5  ;;  %v3979_v2 = vpop.eup %3978  ;;  %v1283_v30 = vmul.f32 %v5423_v4, %v3977_v9  ;;  %v1029_v5 = vadd.f32 %v5098_v56, %v877_v6  ;;  %v6924_v6 = vld [vmem:[#allocation39_spill] sm:$0xff] }
 0x291   :  { %v5496_v24 = vpop.xlane.xlu0 %1409  ;;  %v3981_v40 = vpop.eup %3980 }
 0x292   :  { %6918 = vst [vmem:[#allocation33_spill] sm:$0xff] %v5496_v24  ;;  %v5498_v25 = vpop.xlane.xlu1 %1411  ;;  %v5507_v24 = vpop.f32.mrf.mxu3  ;;  %3984 = vtanh.f32 %v1030_v23  ;;  %v1288_v51 = vmul.f32 %v5423_v4, %v3981_v40 }
 0x293   :  { %6919 = vst [vmem:[#allocation38_spill] sm:$0xff] %v5498_v25  ;;  %v5505_v43 = vpop.xlane.xlu2 %1407  ;;  %3986 = vtanh.f32 %v1031_v46  ;;  %v5573_v25 = vpop.f32.mrf.mxu0 }
 0x294   :  { %6920 = vst [vmem:[#allocation36_spill] sm:$0xff] %v5505_v43  ;;  %3988 = vtanh.f32 %v1029_v5  ;;  %v6926_v5 = vld [vmem:[#allocation40_spill] sm:$0xff] }
 0x295   :  { %3990 = vtanh.f32 %v5170_v52 }
 0x296   :  { %1499 = vadd.xlane.f32.xlu0 %v1284_v48  ;;  %v1287_v48 = vmul.f32 %v5423_v4, %v3979_v2  ;;  %3992 = vtanh.f32 %v6924_v6  ;;  %v6927_v6 = vld [vmem:[#allocation37_spill] sm:$0xff] }
 0x297   :  { %1501 = vadd.xlane.f32.xlu1 %v1285_v55  ;;  %v3983_v55 = vpop.eup %3982  ;;  %3994 = vtanh.f32 %v6926_v5 }
 0x298   :  { %1497 = vadd.xlane.f32.xlu2 %v1283_v30  ;;  %v3985_v3 = vpop.eup %3984  ;;  %3996 = vtanh.f32 %v5188_v41 }
 0x299   :  { %v5514_v26 = vpop.xlane.xlu0 %1415  ;;  %v3987_v23 = vpop.eup %3986  ;;  %v1290_v56 = vmul.f32 %v5423_v4, %v3985_v3  ;;  %3998 = vtanh.f32 %v6927_v6 }
 0x29a   :  { %6921 = vst [vmem:[#allocation48_spill] sm:$0xff] %v5514_v26  ;;  %v5516_v33 = vpop.xlane.xlu1 %1417  ;;  %v5523_v9 = vpop.f32.mrf.mxu3  ;;  %v1291_v2 = vmul.f32 %v5423_v4, %v3987_v23  ;;  %4000 = vtanh.f32 %v5197_v19 }
 0x29b   :  { %6922 = vst [vmem:[#allocation49_spill] sm:$0xff] %v5516_v33  ;;  %v5521_v44 = vpop.xlane.xlu2 %1413  ;;  %v1286_v33 = vmul.f32 %v5423_v4, %v3983_v55  ;;  %v3989_v40 = vpop.eup %3988  ;;  %4002 = vtanh.f32 %v5204_v21 }
 0x29c   :  { %6923 = vst [vmem:[#allocation47_spill] sm:$0xff] %v5521_v44  ;;  %v1289_v55 = vmul.f32 %v5423_v4, %v3989_v40  ;;  %4004 = vtanh.f32 %v5209_v10 }
 0x29d   :  { %4006 = vtanh.f32 %v5216_v59 }
 0x29e   :  { %1505 = vadd.xlane.f32.xlu0 %v1287_v48 }
 0x29f   :  { %1507 = vadd.xlane.f32.xlu1 %v1288_v51  ;;  %v3991_v51 = vpop.eup %3990 }
 0x2a0   :  { %1503 = vadd.xlane.f32.xlu2 %v1286_v33  ;;  %v3993_v33 = vpop.eup %3992  ;;  %v1293_v23 = vmul.f32 %v5423_v4, %v3991_v51  ;;  %v6929_v51 = vld [vmem:[#allocation53_spill] sm:$0xff] }
 0x2a1   :  { %v5526_v30 = vpop.xlane.xlu0 %1421  ;;  %v890_v6 = vadd.f32 %v5438_v16, %v6929_v51 }
 0x2a2   :  { %v5528_v46 = vpop.xlane.xlu1 %1423  ;;  %v5542_v3 = vpop.f32.mrf.mxu3 }
 0x2a3   :  { %v5534_v48 = vpop.xlane.xlu2 %1419  ;;  %v1042_v43 = vadd.f32 %v5153_v1, %v890_v6 }
 0x2a4   :  { %6925 = vst [vmem:[#allocation50_spill] sm:$0xff] %v5534_v48 }
 0x2a5   :  { %4008 = vtanh.f32 %v1042_v43 }
 0x2a6   :  { %1511 = vadd.xlane.f32.xlu0 %v1290_v56  ;;  %v1294_v56 = vmul.f32 %v5423_v4, %v3993_v33  ;;  %4010 = vtanh.f32 %v5226_v35 }
 0x2a7   :  { %1513 = vadd.xlane.f32.xlu1 %v1291_v2  ;;  %v3995_v2 = vpop.eup %3994 }
 0x2a8   :  { %1509 = vadd.xlane.f32.xlu2 %v1289_v55  ;;  %v3997_v40 = vpop.eup %3996  ;;  %v1292_v48 = vmul.f32 %v5423_v4, %v3995_v2 }
 0x2a9   :  { %v5538_v44 = vpop.xlane.xlu0 %1427  ;;  %v3999_v55 = vpop.eup %3998  ;;  %v1296_v33 = vmul.f32 %v5423_v4, %v3997_v40 }
 0x2aa   :  { %v5540_v52 = vpop.xlane.xlu1 %1429  ;;  %v1297_v19 = vmul.f32 %v5423_v4, %v3999_v55 }
 0x2ab   :  { %v5548_v5 = vpop.xlane.xlu2 %1425 }
 0x2ae   :  { %1517 = vadd.xlane.f32.xlu0 %v1293_v23  ;;  %v5561_v23 = vpop.f32.mrf.mxu3 }
 0x2af   :  { %1519 = vadd.xlane.f32.xlu1 %v1294_v56  ;;  %v4001_v56 = vpop.eup %4000 }
 0x2b0   :  { %1515 = vadd.xlane.f32.xlu2 %v1292_v48  ;;  %v4003_v21 = vpop.eup %4002  ;;  %v1295_v40 = vmul.f32 %v5423_v4, %v4001_v56 }
 0x2b1   :  { %v5552_v26 = vpop.xlane.xlu0 %1433  ;;  %v4005_v51 = vpop.eup %4004 }
 0x2b2   :  { %v5554_v41 = vpop.xlane.xlu1 %1435  ;;  %v1300_v59 = vmul.f32 %v5423_v4, %v4005_v51  ;;  %v4007_v6 = vpop.eup %4006 }
 0x2b3   :  { %6928 = vst [vmem:[#allocation52_spill] sm:$0xff] %v5554_v41  ;;  %v5564_v2 = vpop.xlane.xlu2 %1431  ;;  %v6930_v41 = vld [vmem:[#allocation51_spill] sm:$0xff] }
 0x2b4   :  { %v889_v48 = vadd.f32 %v5438_v16, %v6930_v41 }
 0x2b6   :  { %1523 = vadd.xlane.f32.xlu0 %v1296_v33  ;;  %v1299_v33 = vmul.f32 %v5423_v4, %v4003_v21  ;;  %v1041_v41 = vadd.f32 %v5153_v1, %v889_v48  ;;  %v5583_v56 = vpop.f32.mrf.mxu3  ;;  %v5591_v1 = vpop.f32.mrf.mxu0 }
 0x2b7   :  { %1525 = vadd.xlane.f32.xlu1 %v1297_v19 }
 0x2b8   :  { %1521 = vadd.xlane.f32.xlu2 %v1295_v40  ;;  %4012 = vtanh.f32 %v1041_v41  ;;  %v1298_v40 = vmul.f32 %v5423_v4, %v4007_v6 }
 0x2b9   :  { %v5571_v10 = vpop.xlane.xlu0 %1439  ;;  %4014 = vtanh.f32 %v5236_v11 }
 0x2ba   :  { %6931 = vst [vmem:[#allocation57_spill] sm:$0xff] %v5571_v10  ;;  %v5575_v55 = vpop.xlane.xlu1 %1441  ;;  %v4009_v10 = vpop.eup %4008  ;;  %4016 = vtanh.f32 %v5243_v39  ;;  %v899_v39 = vadd.f32 %v5438_v16, %v5409_v45 }
 0x2bb   :  { %6932 = vst [vmem:[#allocation54_spill] sm:$0xff] %v5575_v55  ;;  %v5581_v19 = vpop.xlane.xlu2 %1437  ;;  %v4011_v21 = vpop.eup %4010  ;;  %v1302_v35 = vmul.f32 %v5423_v4, %v4009_v10  ;;  %4018 = vtanh.f32 %v5246_v53 }
 0x2bc   :  { %v1303_v48 = vmul.f32 %v5423_v4, %v4011_v21  ;;  %4020 = vtanh.f32 %v5251_v22  ;;  %v900_v21 = vadd.f32 %v5438_v16, %v5431_v8  ;;  %v1051_v45 = vadd.f32 %v5232_v28, %v899_v39 }
 0x2bd   :  { %v903_v39 = vadd.f32 %v5438_v16, %v5507_v24 }
 0x2be   :  { %1529 = vadd.xlane.f32.xlu0 %v1299_v33  ;;  %v4013_v51 = vpop.eup %4012  ;;  %v1052_v22 = vadd.f32 %v5232_v28, %v900_v21 }
 0x2bf   :  { %1531 = vadd.xlane.f32.xlu1 %v1300_v59  ;;  %v4015_v41 = vpop.eup %4014  ;;  %v5599_v59 = vpop.f32.mrf.mxu3  ;;  %v1301_v11 = vmul.f32 %v5423_v4, %v4013_v51  ;;  %v1055_v24 = vadd.f32 %v5232_v28, %v903_v39 }
 0x2c0   :  { %1527 = vadd.xlane.f32.xlu2 %v1298_v40  ;;  %v4017_v40 = vpop.eup %4016  ;;  %v1305_v53 = vmul.f32 %v5423_v4, %v4015_v41 }
 0x2c1   :  { %v5586_v43 = vpop.xlane.xlu0 %1445  ;;  %v4019_v51 = vpop.eup %4018 }
 0x2c2   :  { %6933 = vst [vmem:[#allocation58_spill] sm:$0xff] %v5586_v43  ;;  %v5588_v55 = vpop.xlane.xlu1 %1447  ;;  %v4021_v8 = vpop.eup %4020  ;;  %v1304_v41 = vmul.f32 %v5423_v4, %v4019_v51  ;;  %v902_v43 = vadd.f32 %v5438_v16, %v5486_v58  ;;  %v901_v58 = vadd.f32 %v5438_v16, %v5460_v42  ;;  %v906_v42 = vadd.f32 %v5438_v16, %v5561_v23 }
 0x2c3   :  { %6934 = vst [vmem:[#allocation59_spill] sm:$0xff] %v5588_v55  ;;  %v5596_v33 = vpop.xlane.xlu2 %1443 }
 0x2c4   :  { %6935 = vst [vmem:[#allocation39_spill] sm:$0xff] %v5596_v33  ;;  %v1054_v51 = vadd.f32 %v5232_v28, %v902_v43  ;;  %v905_v43 = vadd.f32 %v5438_v16, %v5542_v3  ;;  %v1053_v39 = vadd.f32 %v5232_v28, %v901_v58  ;;  %v1058_v23 = vadd.f32 %v5232_v28, %v906_v42 }
 0x2c6   :  { %1535 = vadd.xlane.f32.xlu0 %v1302_v35  ;;  %v6938_v35 = vld [vmem:[#allocation42_spill] sm:$0xff]  ;;  %v1057_v3 = vadd.f32 %v5232_v28, %v905_v43 }
 0x2c7   :  { %1537 = vadd.xlane.f32.xlu1 %v1303_v48  ;;  %4022 = vtanh.f32 %v6938_v35  ;;  %v1306_v48 = vmul.f32 %v5423_v4, %v4017_v40 }
 0x2c8   :  { %1533 = vadd.xlane.f32.xlu2 %v1301_v11  ;;  %4024 = vtanh.f32 %v5263_v63  ;;  %v1308_v63 = vmul.f32 %v5423_v4, %v4021_v8 }
 0x2c9   :  { %v5602_v6 = vpop.xlane.xlu0 %1451  ;;  %4026 = vtanh.f32 %v1051_v45 }
 0x2ca   :  { %6936 = vst [vmem:[#allocation40_spill] sm:$0xff] %v5602_v6  ;;  %v5604_v10 = vpop.xlane.xlu1 %1453  ;;  %v5614_v6 = vpop.f32.mrf.mxu0  ;;  %4028 = vtanh.f32 %v1052_v22 }
 0x2cb   :  { %6937 = vst [vmem:[#allocation37_spill] sm:$0xff] %v5604_v10  ;;  %v5616_v55 = vpop.xlane.xlu2 %1449  ;;  %4030 = vtanh.f32 %v5269_v27 }
 0x2cc   :  { %6939 = vst [vmem:[#allocation53_spill] sm:$0xff] %v5616_v55  ;;  %v728_v55 = vpop.f32.mrf.mxu3  ;;  %4032 = vtanh.f32 %v1054_v51  ;;  %v904_v51 = vadd.f32 %v5438_v16, %v5523_v9 }
 0x2cd   :  { %v4023_v35 = vpop.eup %4022  ;;  %4034 = vtanh.f32 %v1055_v24  ;;  %v909_v9 = vadd.f32 %v5438_v16, %v728_v55 }
 0x2ce   :  { %1541 = vadd.xlane.f32.xlu0 %v1305_v53  ;;  %v1309_v21 = vmul.f32 %v5423_v4, %v4023_v35  ;;  %v4025_v53 = vpop.eup %4024  ;;  %4036 = vtanh.f32 %v1053_v39  ;;  %v1056_v42 = vadd.f32 %v5232_v28, %v904_v51 }
 0x2cf   :  { %1543 = vadd.xlane.f32.xlu1 %v1306_v48  ;;  %v4027_v45 = vpop.eup %4026  ;;  %v1307_v22 = vmul.f32 %v5423_v4, %v4025_v53  ;;  %4038 = vtanh.f32 %v1057_v3  ;;  %v1061_v55 = vadd.f32 %v5232_v28, %v909_v9 }
 0x2d0   :  { %1539 = vadd.xlane.f32.xlu2 %v1304_v41  ;;  %v4029_v35 = vpop.eup %4028  ;;  %v1311_v27 = vmul.f32 %v5423_v4, %v4027_v45  ;;  %4040 = vtanh.f32 %v1058_v23 }
 0x2d1   :  { %v5622_v11 = vpop.xlane.xlu0 %1457  ;;  %v4031_v53 = vpop.eup %4030  ;;  %4042 = vtanh.f32 %v1056_v42 }
 0x2d2   :  { %6940 = vst [vmem:[#allocation51_spill] sm:$0xff] %v5622_v11  ;;  %v5624_v40 = vpop.xlane.xlu1 %1459  ;;  %v5637_v41 = vpop.f32.mrf.mxu0  ;;  %v1310_v24 = vmul.f32 %v5423_v4, %v4031_v53 }
 0x2d3   :  { %6941 = vst [vmem:[#allocation42_spill] sm:$0xff] %v5624_v40  ;;  %v5632_v48 = vpop.xlane.xlu2 %1455  ;;  %v4033_v45 = vpop.eup %4032 }
 0x2d4   :  { %v1314_v43 = vmul.f32 %v5423_v4, %v4033_v45 }
 0x2d6   :  { %1547 = vadd.xlane.f32.xlu0 %v1308_v63  ;;  %v731_v63 = vpop.f32.mrf.mxu3 }
 0x2d7   :  { %1549 = vadd.xlane.f32.xlu1 %v1309_v21  ;;  %v1312_v21 = vmul.f32 %v5423_v4, %v4029_v35 }
 0x2d8   :  { %1545 = vadd.xlane.f32.xlu2 %v1307_v22  ;;  %v4035_v22 = vpop.eup %4034 }
 0x2d9   :  { %v5642_v8 = vpop.xlane.xlu0 %1463  ;;  %v1315_v39 = vmul.f32 %v5423_v4, %v4035_v22  ;;  %v815_v22 = vadd.f32 %v5438_v16, %v5573_v25  ;;  %v910_v25 = vadd.f32 %v5438_v16, %v731_v63 }
 0x2da   :  { %6942 = vst [vmem:[#allocation60_spill] sm:$0xff] %v5642_v8  ;;  %v5644_v40 = vpop.xlane.xlu1 %1465  ;;  %v5662_v35 = vpop.f32.mrf.mxu0 }
 0x2db   :  { %6943 = vst [vmem:[#allocation61_spill] sm:$0xff] %v5644_v40  ;;  %v5653_v8 = vpop.xlane.xlu2 %1461 }
 0x2dc   :  { %6944 = vst [vmem:[#allocation62_spill] sm:$0xff] %v5653_v8 }
 0x2de   :  { %1553 = vadd.xlane.f32.xlu0 %v1311_v27  ;;  %v908_v27 = vadd.f32 %v5438_v16, %v5599_v59  ;;  %v907_v59 = vadd.f32 %v5438_v16, %v5583_v56  ;;  %v816_v56 = vadd.f32 %v5438_v16, %v5591_v1 }
 0x2df   :  { %1555 = vadd.xlane.f32.xlu1 %v1312_v21  ;;  %v4037_v21 = vpop.eup %4036 }
 0x2e0   :  { %1551 = vadd.xlane.f32.xlu2 %v1310_v24  ;;  %v4039_v3 = vpop.eup %4038  ;;  %v1313_v23 = vmul.f32 %v5423_v4, %v4037_v21 }
 0x2e1   :  { %v5660_v58 = vpop.xlane.xlu0 %1469  ;;  %v4041_v45 = vpop.eup %4040  ;;  %v1317_v9 = vmul.f32 %v5423_v4, %v4039_v3 }
 0x2e2   :  { %6945 = vst [vmem:[#allocation63_spill] sm:$0xff] %v5660_v58  ;;  %v5664_v40 = vpop.xlane.xlu1 %1471  ;;  %v734_v58 = vpop.f32.mrf.mxu3  ;;  %v1318_v42 = vmul.f32 %v5423_v4, %v4041_v45 }
 0x2e3   :  { %6946 = vst [vmem:[#allocation64_spill] sm:$0xff] %v5664_v40  ;;  %v5672_v53 = vpop.xlane.xlu2 %1467  ;;  %v1060_v40 = vadd.f32 %v5232_v28, %v908_v27  ;;  %v461_v27 = vpop.f32.mrf.mxu0 }
 0x2e4   :  { %6947 = vst [vmem:[#allocation65_spill] sm:$0xff] %v5672_v53 }
 0x2e5   :  { %4044 = vtanh.f32 %v1060_v40 }
 0x2e6   :  { %1559 = vadd.xlane.f32.xlu0 %v1314_v43  ;;  %4046 = vtanh.f32 %v1061_v55  ;;  %v1059_v43 = vadd.f32 %v5232_v28, %v907_v59 }
 0x2e7   :  { %1561 = vadd.xlane.f32.xlu1 %v1315_v39  ;;  %v4043_v39 = vpop.eup %4042 }
 0x2e8   :  { %1557 = vadd.xlane.f32.xlu2 %v1313_v23  ;;  %4048 = vtanh.f32 %v1059_v43  ;;  %v1316_v3 = vmul.f32 %v5423_v4, %v4043_v39 }
 0x2e9   :  { %v5679_v51 = vpop.xlane.xlu0 %1475 }
 0x2ea   :  { %6948 = vst [vmem:[#allocation66_spill] sm:$0xff] %v5679_v51  ;;  %v5681_v24 = vpop.xlane.xlu1 %1477  ;;  %v737_v55 = vpop.f32.mrf.mxu3 }
 0x2eb   :  { %6949 = vst [vmem:[#allocation67_spill] sm:$0xff] %v5681_v24  ;;  %v5690_v21 = vpop.xlane.xlu2 %1473  ;;  %v6951_v24 = vld [vmem:[#allocation56_spill] sm:$0xff]  ;;  %v4045_v1 = vpop.eup %4044  ;;  %v912_v63 = vadd.f32 %v5438_v16, %v737_v55 }
 0x2ec   :  { %6950 = vst [vmem:[#allocation68_spill] sm:$0xff] %v5690_v21  ;;  %v967_v51 = vadd.f32 %v6951_v24, %v815_v22  ;;  %v968_v40 = vadd.f32 %v6951_v24, %v816_v56  ;;  %v4047_v59 = vpop.eup %4046  ;;  %v1062_v22 = vadd.f32 %v5232_v28, %v910_v25  ;;  %v1320_v24 = vmul.f32 %v5423_v4, %v4045_v1 }
 0x2ed   :  { %v1321_v56 = vmul.f32 %v5423_v4, %v4047_v59 }
 0x2ee   :  { %1565 = vadd.xlane.f32.xlu0 %v1317_v9  ;;  %4050 = vtanh.f32 %v967_v51  ;;  %v911_v9 = vadd.f32 %v5438_v16, %v734_v58  ;;  %v4049_v43 = vpop.eup %4048  ;;  %v817_v58 = vadd.f32 %v5438_v16, %v5614_v6  ;;  %v1064_v51 = vadd.f32 %v5232_v28, %v912_v63 }
 0x2ef   :  { %1567 = vadd.xlane.f32.xlu1 %v1318_v42  ;;  %4052 = vtanh.f32 %v968_v40  ;;  %v464_v42 = vpop.f32.mrf.mxu0  ;;  %v1319_v40 = vmul.f32 %v5423_v4, %v4049_v43 }
 0x2f0   :  { %1563 = vadd.xlane.f32.xlu2 %v1316_v3  ;;  %4054 = vtanh.f32 %v1062_v22  ;;  %v818_v3 = vadd.f32 %v5438_v16, %v5637_v41  ;;  %v969_v22 = vadd.f32 %v4870_v17, %v817_v58  ;;  %v820_v58 = vadd.f32 %v5438_v16, %v461_v27 }
 0x2f1   :  { %v5696_v23 = vpop.xlane.xlu0 %1481 }
 0x2f2   :  { %6952 = vst [vmem:[#allocation56_spill] sm:$0xff] %v5696_v23  ;;  %v5698_v45 = vpop.xlane.xlu1 %1483 }
 0x2f3   :  { %6953 = vst [vmem:[#allocation69_spill] sm:$0xff] %v5698_v45  ;;  %v5705_v39 = vpop.xlane.xlu2 %1479  ;;  %v1063_v45 = vadd.f32 %v5232_v28, %v911_v9  ;;  %v819_v9 = vadd.f32 %v5438_v16, %v5662_v35 }
 0x2f4   :  { %6954 = vst [vmem:[#allocation70_spill] sm:$0xff] %v5705_v39  ;;  %v4051_v25 = vpop.eup %4050 }
 0x2f5   :  { %v4053_v55 = vpop.eup %4052  ;;  %4056 = vtanh.f32 %v1063_v45  ;;  %v1227_v28 = vmul.f32 %v5423_v4, %v4051_v25  ;;  %v971_v41 = vadd.f32 %v4870_v17, %v819_v9 }
 0x2f6   :  { %1571 = vadd.xlane.f32.xlu0 %v1320_v24  ;;  %v6831_v24 = vlaneseq  ;;  %4058 = vtanh.f32 %v1064_v51  ;;  %v1228_v6 = vmul.f32 %v5423_v4, %v4053_v55  ;;  %v4055_v63 = vpop.eup %4054 }
 0x2f7   :  { %1573 = vadd.xlane.f32.xlu1 %v1321_v56  ;;  %v970_v56 = vadd.f32 %v4870_v17, %v818_v3  ;;  %4060 = vtanh.f32 %v969_v22  ;;  %v467_v51 = vpop.f32.mrf.mxu0  ;;  %v1322_v3 = vmul.f32 %v5423_v4, %v4055_v63 }
 0x2f8   :  { %1569 = vadd.xlane.f32.xlu2 %v1319_v40  ;;  %v5722_v45 = vand.u32 127, %v6831_v24  ;;  %v821_v24 = vadd.f32 %v5438_v16, %v464_v42  ;;  %v822_v22 = vadd.f32 %v5438_v16, %v467_v51 }
 0x2f9   :  { %v1488_v1 = vpop.xlane.xlu0 %1487  ;;  %4062 = vtanh.f32 %v970_v56 }
 0x2fa   :  { %v1490_v59 = vpop.xlane.xlu1 %1489  ;;  %v1669_v35 = vadd.f32 %v5305_v31, %v1488_v1  ;;  %v5728_v55 = vadd.s32 4294967288, %v5722_v45  ;;  %4064 = vtanh.f32 %v971_v41  ;;  %v5738_v63 = vadd.s32 4294967280, %v5722_v45 }
 0x2fb   :  { %v1486_v43 = vpop.xlane.xlu2 %1485  ;;  %v4057_v25 = vpop.eup %4056  ;;  %v1670_v1 = vadd.f32 %v5305_v31, %v1490_v59  ;;  %v973_v41 = vadd.f32 %v4870_v17, %v821_v24  ;;  %v5745_v16 = vadd.s32 4294967264, %v5722_v45  ;;  %v5750_v51 = vadd.s32 4294967272, %v5722_v45 }
 0x2fc   :  { %v1668_v40 = vadd.f32 %v5305_v31, %v1486_v43  ;;  %v4059_v9 = vpop.eup %4058  ;;  %v2033_v27 = vperm.slane %v1669_v35, %v5728_v55  ;;  %v972_v43 = vadd.f32 %v4870_v17, %v820_v58  ;;  %v1323_v42 = vmul.f32 %v5423_v4, %v4057_v25 }
 0x2fd   :  { %v1324_v59 = vmul.f32 %v5423_v4, %v4059_v9  ;;  %v4061_v39 = vpop.eup %4060  ;;  %v2035_v35 = vperm.slane %v1670_v1, %v5738_v63  ;;  %v974_v58 = vadd.f32 %v4870_v17, %v822_v22 }
 0x2fe   :  { %1385 = vadd.xlane.f32.xlu0 %v1227_v28  ;;  %4066 = vtanh.f32 %v972_v43 }
 0x2ff   :  { %1387 = vadd.xlane.f32.xlu1 %v1228_v6  ;;  %v2032_v6 = vperm.slane %v1668_v40, %v5722_v45  ;;  %4068 = vtanh.f32 %v973_v41 }
 0x300   :  { %1575 = vadd.xlane.f32.xlu2 %v1322_v3  ;;  %4070 = vtanh.f32 %v974_v58 }
 0x301   :  { %v1494_v28 = vpop.xlane.xlu0 %1493  ;;  %v2034_v25 = vsel %vm1850_vm0, %v2033_v27, %v2032_v6 }
 0x302   :  { %v1496_v23 = vpop.xlane.xlu1 %1495  ;;  %v1672_v56 = vadd.f32 %v5305_v31, %v1494_v28  ;;  %v4063_v28 = vpop.eup %4062  ;;  %v2036_v17 = vsel %vm1854_vm1, %v2035_v35, %v2034_v25  ;;  %v5768_v35 = vadd.s32 4294967240, %v5722_v45  ;;  %v5771_v25 = vadd.s32 4294967248, %v5722_v45 }
 0x303   :  { %v1492_v40 = vpop.xlane.xlu2 %1491  ;;  %v4065_v9 = vpop.eup %4064  ;;  %v1673_v6 = vadd.f32 %v5305_v31, %v1496_v23 }
 0x304   :  { %v1671_v3 = vadd.f32 %v5305_v31, %v1492_v40  ;;  %v2039_v24 = vperm.slane %v1672_v56, %v5745_v16  ;;  %v4067_v41 = vpop.eup %4066  ;;  %v5765_v40 = vadd.s32 4294967256, %v5722_v45 }
 0x306   :  { %1577 = vadd.xlane.f32.xlu0 %v1323_v42  ;;  %v2037_v1 = vperm.slane %v1671_v3, %v5750_v51  ;;  %v1229_v42 = vmul.f32 %v5423_v4, %v4061_v39  ;;  %v1231_v39 = vmul.f32 %v5423_v4, %v4065_v9  ;;  %v2041_v3 = vperm.slane %v1673_v6, %v5765_v40 }
 0x307   :  { %1579 = vadd.xlane.f32.xlu1 %v1324_v59  ;;  %v1230_v59 = vmul.f32 %v5423_v4, %v4063_v28 }
 0x308   :  { %v2038_v27 = vsel %vm1858_vm2, %v2037_v1, %v2036_v17  ;;  %1389 = vadd.xlane.f32.xlu2 %v1229_v42  ;;  %v1232_v1 = vmul.f32 %v5423_v4, %v4067_v41  ;;  %v5786_v41 = vadd.s32 4294967232, %v5722_v45 }
 0x309   :  { %v1500_v21 = vpop.xlane.xlu0 %1499  ;;  %v2040_v43 = vsel %vm1862_vm3, %v2039_v24, %v2038_v27 }
 0x30a   :  { %v1502_v22 = vpop.xlane.xlu1 %1501  ;;  %v1675_v56 = vadd.f32 %v5305_v31, %v1500_v21  ;;  %v4069_v21 = vpop.eup %4068  ;;  %v2042_v17 = vsel %vm1866_vm4, %v2041_v3, %v2040_v43  ;;  %v5789_v43 = vadd.s32 4294967216, %v5722_v45 }
 0x30b   :  { %v1498_v58 = vpop.xlane.xlu2 %1497  ;;  %v4071_v24 = vpop.eup %4070 }
 0x30c   :  { %v1674_v23 = vadd.f32 %v5305_v31, %v1498_v58  ;;  %v2045_v28 = vperm.slane %v1675_v56, %v5768_v35  ;;  %v1233_v58 = vmul.f32 %v5423_v4, %v4069_v21 }
 0x30e   :  { %1391 = vadd.xlane.f32.xlu0 %v1230_v59  ;;  %v2043_v9 = vperm.slane %v1674_v23, %v5771_v25  ;;  %v1234_v23 = vmul.f32 %v5423_v4, %v4071_v24 }
 0x30f   :  { %1393 = vadd.xlane.f32.xlu1 %v1231_v39  ;;  %v1676_v39 = vadd.f32 %v5305_v31, %v1502_v22 }
 0x310   :  { %v2044_v59 = vsel %vm1870_vm5, %v2043_v9, %v2042_v17  ;;  %1395 = vadd.xlane.f32.xlu2 %v1232_v1  ;;  %v5792_v9 = vadd.s32 4294967224, %v5722_v45 }
 0x311   :  { %v1506_v42 = vpop.xlane.xlu0 %1505  ;;  %v2046_v6 = vsel %vm1874_vm6, %v2045_v28, %v2044_v59  ;;  %v2047_v28 = vperm.slane %v1676_v39, %v5786_v41 }
 0x312   :  { %v1508_v27 = vpop.xlane.xlu1 %1507  ;;  %v1678_v56 = vadd.f32 %v5305_v31, %v1506_v42 }
 0x313   :  { %v1504_v3 = vpop.xlane.xlu2 %1503  ;;  %v2048_v1 = vsel %vm1878_vm7, %v2047_v28, %v2046_v6  ;;  %v1679_v59 = vadd.f32 %v5305_v31, %v1508_v27  ;;  %v5812_v6 = vadd.s32 4294967200, %v5722_v45 }
 0x314   :  { %v1677_v22 = vadd.f32 %v5305_v31, %v1504_v3  ;;  %v2051_v21 = vperm.slane %v1678_v56, %v5789_v43  ;;  %v5806_v56 = vadd.s32 4294967208, %v5722_v45 }
 0x316   :  { %1397 = vadd.xlane.f32.xlu0 %v1233_v58  ;;  %v2049_v4 = vperm.slane %v1677_v22, %v5792_v9  ;;  %v2053_v28 = vperm.slane %v1679_v59, %v5806_v56 }
 0x317   :  { %1399 = vadd.xlane.f32.xlu1 %v1234_v23  ;;  %v5809_v23 = vadd.s32 4294967192, %v5722_v45 }
 0x318   :  { %v2050_v17 = vsel %vm1882_vm8, %v2049_v4, %v2048_v1 }
 0x319   :  { %v1512_v24 = vpop.xlane.xlu0 %1511  ;;  %v2052_v58 = vsel %vm1886_vm9, %v2051_v21, %v2050_v17 }
 0x31a   :  { %v5799_v42 = vpop.xlane.xlu1 %1513  ;;  %v1681_v39 = vadd.f32 %v5305_v31, %v1512_v24  ;;  %v2054_v24 = vsel %vm1890_vm10, %v2053_v28, %v2052_v58 }
 0x31b   :  { %6955 = vst [vmem:[#allocation71_spill] sm:$0xff] %v5799_v42  ;;  %v1510_v3 = vpop.xlane.xlu2 %1509 }
 0x31c   :  { %v1680_v22 = vadd.f32 %v5305_v31, %v1510_v3  ;;  %v2057_v27 = vperm.slane %v1681_v39, %v5809_v23 }
 0x31e   :  { %v2055_v21 = vperm.slane %v1680_v22, %v5812_v6 }
 0x320   :  { %v2056_v17 = vsel %vm1894_vm11, %v2055_v21, %v2054_v24 }
 0x321   :  { %v1518_v4 = vpop.xlane.xlu0 %1517  ;;  %v5821_v42 = vsel %vm1898_vm12, %v2057_v27, %v2056_v17 }
 0x322   :  { %v1520_v1 = vpop.xlane.xlu1 %1519  ;;  %6956 = vst [vmem:[#allocation72_spill] sm:$0xff] %v5821_v42  ;;  %v1684_v59 = vadd.f32 %v5305_v31, %v1518_v4 }
 0x323   :  { %v5823_v53 = vpop.xlane.xlu2 %1515  ;;  %v1685_v39 = vadd.f32 %v5305_v31, %v1520_v1 }
 0x324   :  { %6957 = vst [vmem:[#allocation73_spill] sm:$0xff] %v5823_v53  ;;  %v2063_v33 = vperm.slane %v1684_v59, %v5722_v45 }
 0x325   :  { %v2064_v58 = vperm.slane %v1685_v39, %v5728_v55 }
 0x327   :  { %v2065_v42 = vsel %vm1850_vm0, %v2064_v58, %v2063_v33 }
 0x329   :  { %v1524_v3 = vpop.xlane.xlu0 %1523 }
 0x32a   :  { %v1526_v8 = vpop.xlane.xlu1 %1525  ;;  %v1687_v22 = vadd.f32 %v5305_v31, %v1524_v3 }
 0x32b   :  { %v1522_v28 = vpop.xlane.xlu2 %1521  ;;  %v1688_v53 = vadd.f32 %v5305_v31, %v1526_v8  ;;  %v1589_v8 = vadd.f32 %v5305_v31, %v5325_v12  ;;  %v1590_v12 = vadd.f32 %v5305_v31, %v5313_v37 }
 0x32c   :  { %v1686_v21 = vadd.f32 %v5305_v31, %v1522_v28  ;;  %v2068_v27 = vperm.slane %v1687_v22, %v5750_v51 }
 0x32d   :  { %v2070_v28 = vperm.slane %v1688_v53, %v5745_v16  ;;  %v1588_v53 = vadd.f32 %v5305_v31, %v5311_v15 }
 0x32e   :  { %v2066_v24 = vperm.slane %v1686_v21, %v5738_v63 }
 0x330   :  { %v2067_v1 = vsel %vm1854_vm1, %v2066_v24, %v2065_v42 }
 0x331   :  { %v1530_v17 = vpop.xlane.xlu0 %1529  ;;  %v2069_v3 = vsel %vm1858_vm2, %v2068_v27, %v2067_v1 }
 0x332   :  { %v1532_v4 = vpop.xlane.xlu1 %1531  ;;  %v1690_v59 = vadd.f32 %v5305_v31, %v1530_v17  ;;  %v2071_v33 = vsel %vm1862_vm3, %v2070_v28, %v2069_v3  ;;  %v1849_v3 = vperm.slane %v1589_v8, %v5728_v55 }
 0x333   :  { %v1528_v39 = vpop.xlane.xlu2 %1527  ;;  %v1691_v27 = vadd.f32 %v5305_v31, %v1532_v4 }
 0x334   :  { %v1689_v11 = vadd.f32 %v5305_v31, %v1528_v39  ;;  %v2074_v22 = vperm.slane %v1690_v59, %v5771_v25 }
 0x335   :  { %v2076_v59 = vperm.slane %v1691_v27, %v5768_v35 }
 0x336   :  { %v2072_v21 = vperm.slane %v1689_v11, %v5765_v40 }
 0x338   :  { %v2073_v42 = vsel %vm1866_vm4, %v2072_v21, %v2071_v33  ;;  %v1591_v21 = vadd.f32 %v5305_v31, %v5327_v50  ;;  %v1604_v50 = vadd.f32 %v5305_v31, %v5389_v54 }
 0x339   :  { %v1536_v10 = vpop.xlane.xlu0 %1535  ;;  %v2075_v24 = vsel %vm1870_vm5, %v2074_v22, %v2073_v42 }
 0x33a   :  { %v1538_v58 = vpop.xlane.xlu1 %1537  ;;  %v1693_v17 = vadd.f32 %v5305_v31, %v1536_v10  ;;  %v1847_v10 = vperm.slane %v1588_v53, %v5722_v45  ;;  %v2077_v22 = vsel %vm1874_vm6, %v2076_v59, %v2075_v24  ;;  %v1592_v24 = vadd.f32 %v5305_v31, %v5319_v60 }
 0x33b   :  { %v1534_v1 = vpop.xlane.xlu2 %1533  ;;  %v1694_v8 = vadd.f32 %v5305_v31, %v1538_v58  ;;  %v1606_v59 = vadd.f32 %v5305_v31, %v5399_v61  ;;  %v1908_v61 = vperm.slane %v1604_v50, %v5722_v45  ;;  %v1609_v50 = vadd.f32 %v5305_v31, %v5413_v13 }
 0x33c   :  { %v1692_v11 = vadd.f32 %v5305_v31, %v1534_v1  ;;  %v2080_v39 = vperm.slane %v1693_v17, %v5792_v9  ;;  %v1851_v42 = vsel %vm1850_vm0, %v1849_v3, %v1847_v10  ;;  %v1853_v17 = vperm.slane %v1590_v12, %v5738_v63 }
 0x33d   :  { %v1857_v3 = vperm.slane %v1591_v21, %v5750_v51 }
 0x33e   :  { %v2078_v4 = vperm.slane %v1692_v11, %v5786_v41  ;;  %v1855_v1 = vsel %vm1854_vm1, %v1853_v17, %v1851_v42  ;;  %v1605_v11 = vadd.f32 %v5305_v31, %v5394_v62  ;;  %v1593_v62 = vadd.f32 %v5305_v31, %v5333_v14 }
 0x33f   :  { %v1859_v54 = vsel %vm1858_vm2, %v1857_v3, %v1855_v1  ;;  %v1911_v14 = vperm.slane %v1606_v59, %v5738_v63 }
 0x340   :  { %v2079_v33 = vsel %vm1878_vm7, %v2078_v4, %v2077_v22  ;;  %v1909_v21 = vperm.slane %v1605_v11, %v5728_v55 }
 0x341   :  { %v1542_v28 = vpop.xlane.xlu0 %1541  ;;  %v2081_v37 = vsel %vm1882_vm8, %v2080_v39, %v2079_v33  ;;  %v2082_v39 = vperm.slane %v1694_v8, %v5789_v43  ;;  %v1607_v33 = vadd.f32 %v5305_v31, %v5401_v29  ;;  %v1861_v8 = vperm.slane %v1592_v24, %v5745_v16 }
 0x342   :  { %v5860_v15 = vpop.xlane.xlu1 %1543  ;;  %v1696_v27 = vadd.f32 %v5305_v31, %v1542_v28  ;;  %v1594_v28 = vadd.f32 %v5305_v31, %v5337_v34  ;;  %v1595_v34 = vadd.f32 %v5305_v31, %v5339_v20  ;;  %v1865_v29 = vperm.slane %v1593_v62, %v5765_v40 }
 0x343   :  { %v1540_v53 = vpop.xlane.xlu2 %1539  ;;  %v2083_v10 = vsel %vm1886_vm9, %v2082_v39, %v2081_v37  ;;  %v1863_v37 = vsel %vm1862_vm3, %v1861_v8, %v1859_v54  ;;  %v1910_v1 = vsel %vm1850_vm0, %v1909_v21, %v1908_v61  ;;  %v1913_v24 = vperm.slane %v1607_v33, %v5750_v51 }
 0x344   :  { %v1695_v58 = vadd.f32 %v5305_v31, %v1540_v53  ;;  %v2086_v60 = vperm.slane %v1696_v27, %v5812_v6  ;;  %v1869_v17 = vperm.slane %v1594_v28, %v5771_v25  ;;  %v1912_v11 = vsel %vm1854_vm1, %v1911_v14, %v1910_v1  ;;  %v6959_v1 = vld [vmem:[#allocation41_spill] sm:$0xff] }
 0x345   :  { %v1608_v20 = vadd.f32 %v5305_v31, %v5407_v36  ;;  %v1873_v3 = vperm.slane %v1595_v34, %v5768_v35  ;;  %v1596_v54 = vadd.f32 %v5305_v31, %v5347_v18  ;;  %v1914_v36 = vsel %vm1858_vm2, %v1913_v24, %v1912_v11 }
 0x346   :  { %v2084_v12 = vperm.slane %v1695_v58, %v5806_v56  ;;  %v1867_v58 = vsel %vm1866_vm4, %v1865_v29, %v1863_v37  ;;  %v1917_v62 = vperm.slane %v1609_v50, %v5765_v40  ;;  %v1598_v61 = vadd.f32 %v5305_v31, %v5353_v38  ;;  %v6958_v37 = vld [vmem:[#allocation31_spill] sm:$0xff] }
 0x347   :  { %v1871_v39 = vsel %vm1870_vm5, %v1869_v17, %v1867_v58  ;;  %v1915_v28 = vperm.slane %v1608_v20, %v5745_v16  ;;  %v1612_v18 = vadd.f32 %v5305_v31, %v5434_v57  ;;  %v1611_v14 = vadd.f32 %v5305_v31, %v5428_v7  ;;  %v6960_v7 = vld [vmem:[#allocation43_spill] sm:$0xff] }
 0x348   :  { %v2085_v42 = vsel %vm1890_vm10, %v2084_v12, %v2083_v10  ;;  %v1610_v12 = vadd.f32 %v5305_v31, %v5415_v47  ;;  %v1875_v10 = vsel %vm1874_vm6, %v1873_v3, %v1871_v39  ;;  %v1885_v34 = vperm.slane %v1598_v61, %v5789_v43 }
 0x349   :  { %v5884_v4 = vpop.xlane.xlu0 %1547  ;;  %v5902_v27 = vsel %vm1894_vm11, %v2086_v60, %v2085_v42  ;;  %v1597_v60 = vadd.f32 %v5305_v31, %v5351_v32  ;;  %v1916_v47 = vsel %vm1862_vm3, %v1915_v28, %v1914_v36  ;;  %v1877_v42 = vperm.slane %v1596_v54, %v5786_v41  ;;  %v6961_v54 = vld [vmem:[#allocation45_spill] sm:$0xff] }
 0x34a   :  { %v5892_v22 = vpop.xlane.xlu1 %1549  ;;  %v1919_v21 = vperm.slane %v1610_v12, %v5771_v25  ;;  %v1918_v8 = vsel %vm1866_vm4, %v1917_v62, %v1916_v47  ;;  %v1613_v17 = vadd.f32 %v5305_v31, %v6958_v37  ;;  %v1600_v24 = vadd.f32 %v5305_v31, %v6959_v1 }
 0x34b   :  { %v5908_v53 = vpop.xlane.xlu2 %1545  ;;  %v1881_v32 = vperm.slane %v1597_v60, %v5792_v9  ;;  %v1879_v38 = vsel %vm1878_vm7, %v1877_v42, %v1875_v10  ;;  %v1923_v11 = vperm.slane %v1612_v18, %v5786_v41  ;;  %v1599_v58 = vadd.f32 %v5305_v31, %v6960_v7  ;;  %v6962_v10 = vld [vmem:[#allocation32_spill] sm:$0xff]  ;;  %v6965_v7 = vld [vmem:[#allocation46_spill] sm:$0xff] }
 0x34c   :  { %v1920_v50 = vsel %vm1870_vm5, %v1919_v21, %v1918_v8  ;;  %v1921_v3 = vperm.slane %v1611_v14, %v5768_v35  ;;  %v1636_v39 = vadd.f32 %v5305_v31, %v5526_v30  ;;  %v1637_v60 = vadd.f32 %v5305_v31, %v5528_v46  ;;  %v6963_v46 = vld [vmem:[#allocation55_spill] sm:$0xff] }
 0x34d   :  { %v1883_v57 = vsel %vm1882_vm8, %v1881_v32, %v1879_v38  ;;  %v1638_v12 = vadd.f32 %v5305_v31, %v5548_v5  ;;  %v1601_v36 = vadd.f32 %v5305_v31, %v6961_v54  ;;  %v1925_v28 = vperm.slane %v1613_v17, %v5792_v9 }
 0x34e   :  { %v1922_v62 = vsel %vm1874_vm6, %v1921_v3, %v1920_v50  ;;  %v1615_v61 = vadd.f32 %v5305_v31, %v6962_v10  ;;  %v1887_v32 = vsel %vm1886_vm9, %v1885_v34, %v1883_v57  ;;  %v1893_v30 = vperm.slane %v1600_v24, %v5812_v6  ;;  %v6964_v34 = vld [vmem:[#allocation30_spill] sm:$0xff] }
 0x34f   :  { %v1924_v47 = vsel %vm1878_vm7, %v1923_v11, %v1922_v62  ;;  %v1614_v21 = vadd.f32 %v5305_v31, %v6963_v46  ;;  %v1889_v18 = vperm.slane %v1599_v58, %v5806_v56  ;;  %v1970_v42 = vperm.slane %v1636_v39, %v5722_v45 }
 0x350   :  { %v1971_v8 = vperm.slane %v1637_v60, %v5728_v55  ;;  %v1639_v14 = vadd.f32 %v5305_v31, %v5538_v44  ;;  %v5989_v38 = vadd.s32 4294967184, %v5722_v45  ;;  %v1616_v37 = vadd.f32 %v5305_v31, %v6964_v34 }
 0x351   :  { %v5920_v59 = vpop.xlane.xlu0 %1553  ;;  %v1973_v17 = vperm.slane %v1638_v12, %v5738_v63  ;;  %v1891_v57 = vsel %vm1890_vm10, %v1889_v18, %v1887_v32  ;;  %v1897_v1 = vperm.slane %v1601_v36, %v5809_v23  ;;  %v1926_v24 = vsel %vm1882_vm8, %v1925_v28, %v1924_v47  ;;  %v6966_v12 = vld [vmem:[#allocation44_spill] sm:$0xff] }
 0x352   :  { %v5927_v13 = vpop.xlane.xlu1 %1555  ;;  %v1929_v50 = vperm.slane %v1615_v61, %v5806_v56  ;;  %v1895_v44 = vsel %vm1894_vm11, %v1893_v30, %v1891_v57  ;;  %v1602_v58 = vadd.f32 %v5305_v31, %v6965_v7  ;;  %v6004_v3 = vadd.s32 4294967176, %v5722_v45  ;;  %v6967_v57 = vld [vmem:[#allocation34_spill] sm:$0xff]  ;;  %v6969_v7 = vld [vmem:[#allocation33_spill] sm:$0xff] }
 0x353   :  { %v5942_v33 = vpop.xlane.xlu2 %1551  ;;  %v1927_v39 = vperm.slane %v1614_v21, %v5789_v43  ;;  %v1603_v54 = vadd.f32 %v5305_v31, %v6966_v12  ;;  %v1972_v36 = vsel %vm1850_vm0, %v1971_v8, %v1970_v42  ;;  %v1975_v62 = vperm.slane %v1639_v14, %v5750_v51 }
 0x354   :  { %v1641_v28 = vadd.f32 %v5305_v31, %v5564_v2  ;;  %v1931_v61 = vperm.slane %v1616_v37, %v5812_v6  ;;  %v1640_v32 = vadd.f32 %v5305_v31, %v5540_v52  ;;  %v1974_v30 = vsel %vm1854_vm1, %v1973_v17, %v1972_v36 }
 0x355   :  { %v1928_v10 = vsel %vm1886_vm9, %v1927_v39, %v1926_v24  ;;  %v1899_v47 = vsel %vm1898_vm12, %v1897_v1, %v1895_v44  ;;  %v1617_v21 = vadd.f32 %v5305_v31, %v5468_v0  ;;  %v1901_v18 = vperm.slane %v1602_v58, %v5989_v38  ;;  %v6968_v1 = vld [vmem:[#allocation35_spill] sm:$0xff] }
 0x356   :  { %v1930_v46 = vsel %vm1890_vm10, %v1929_v50, %v1928_v10  ;;  %v1642_v2 = vadd.f32 %v5305_v31, %v5552_v26  ;;  %v1976_v52 = vsel %vm1858_vm2, %v1975_v62, %v1974_v30  ;;  %v1979_v8 = vperm.slane %v1641_v28, %v5765_v40  ;;  %v6971_v62 = vld [vmem:[#allocation38_spill] sm:$0xff] }
 0x357   :  { %v1903_v14 = vsel %vm1902_vm13, %v1901_v18, %v1899_v47  ;;  %v1905_v34 = vperm.slane %v1603_v54, %v6004_v3  ;;  %v1932_v37 = vsel %vm1894_vm11, %v1931_v61, %v1930_v46  ;;  %v1977_v0 = vperm.slane %v1640_v32, %v5745_v16  ;;  %v6985_v18 = vld [vmem:[#allocation58_spill] sm:$0xff] }
 0x358   :  { %v1933_v17 = vperm.slane %v1617_v21, %v5809_v23  ;;  %v6038_v26 = vadd.f32 %v5305_v31, %v6967_v57  ;;  %v6042_v24 = vadd.f32 %v5305_v31, %v6968_v1  ;;  %v6046_v50 = vadd.f32 %v5305_v31, %v5489_v49  ;;  %v6973_v49 = vld [vmem:[#allocation52_spill] sm:$0xff] }
 0x359   :  { %v5952_v29 = vpop.xlane.xlu0 %1559  ;;  %v6052_v58 = vadd.f32 %v5305_v31, %v6969_v7  ;;  %v1981_v39 = vperm.slane %v1642_v2, %v5771_v25  ;;  %v1978_v12 = vsel %vm1862_vm3, %v1977_v0, %v1976_v52  ;;  %v1644_v54 = vadd.f32 %v5305_v31, %v5581_v19  ;;  %v6975_v19 = vld [vmem:[#allocation36_spill] sm:$0xff]  ;;  %v6977_v2 = vld [vmem:[#allocation57_spill] sm:$0xff]  ;;  %v6979_v0 = vld [vmem:[#allocation51_spill] sm:$0xff] }
 0x35a   :  { %v5959_v20 = vpop.xlane.xlu1 %1561  ;;  %v6062_v28 = vadd.f32 %v5305_v31, %v6971_v62  ;;  %v1643_v10 = vadd.f32 %v5305_v31, %v6973_v49  ;;  %v1980_v61 = vsel %vm1866_vm4, %v1979_v8, %v1978_v12  ;;  %v1653_v32 = vadd.f32 %v5305_v31, %v5632_v48  ;;  %v6978_v48 = vld [vmem:[#allocation37_spill] sm:$0xff]  ;;  %v6980_v49 = vld [vmem:[#allocation48_spill] sm:$0xff]  ;;  %v6984_v7 = vld [vmem:[#allocation39_spill] sm:$0xff] }
 0x35b   :  { %v5981_v5 = vpop.xlane.xlu2 %1557  ;;  %6970 = vst [vmem:[#allocation31_spill] sm:$0xff] %v6052_v58  ;;  %v6070_v30 = vsel %vm1906_vm14, %v1905_v34, %v1903_v14  ;;  %v6073_v47 = vsel %vm1898_vm12, %v1933_v17, %v1932_v37  ;;  %v6077_v46 = vadd.f32 %v5305_v31, %v6975_v19  ;;  %v1645_v52 = vadd.f32 %v5305_v31, %v6977_v2  ;;  %v6983_v2 = vld [vmem:[#allocation54_spill] sm:$0xff] }
 0x35c   :  { %6972 = vst [vmem:[#allocation41_spill] sm:$0xff] %v6062_v28  ;;  %v1652_v8 = vadd.f32 %v5305_v31, %v6978_v48  ;;  %v1982_v34 = vsel %vm1870_vm5, %v1981_v39, %v1980_v61  ;;  %v1985_v37 = vperm.slane %v1644_v54, %v5786_v41  ;;  %v1654_v17 = vadd.f32 %v5305_v31, %v6979_v0  ;;  %v6982_v61 = vld [vmem:[#allocation49_spill] sm:$0xff]  ;;  %v6988_v14 = vld [vmem:[#allocation42_spill] sm:$0xff] }
 0x35d   :  { %6974 = vst [vmem:[#allocation43_spill] sm:$0xff] %v6070_v30  ;;  %v1983_v12 = vperm.slane %v1643_v10, %v5768_v35  ;;  %v2002_v62 = vperm.slane %v1653_v32, %v5728_v55  ;;  %v6105_v54 = vadd.f32 %v5305_v31, %v6980_v49  ;;  %v6109_v19 = vadd.f32 %v5305_v31, %v6982_v61 }
 0x35e   :  { %6976 = vst [vmem:[#allocation45_spill] sm:$0xff] %v6077_v46  ;;  %v1646_v48 = vadd.f32 %v5305_v31, %v6983_v2  ;;  %v1987_v0 = vperm.slane %v1645_v52, %v5792_v9  ;;  %v1647_v32 = vadd.f32 %v5305_v31, %v6984_v7  ;;  %v2001_v1 = vperm.slane %v1652_v8, %v5722_v45 }
 0x35f   :  { %6981 = vst [vmem:[#allocation32_spill] sm:$0xff] %v6105_v54  ;;  %v1984_v10 = vsel %vm1874_vm6, %v1983_v12, %v1982_v34  ;;  %v1648_v61 = vadd.f32 %v5305_v31, %v6985_v18  ;;  %v2004_v21 = vperm.slane %v1654_v17, %v5738_v63  ;;  %v1698_v2 = vadd.f32 %v5305_v31, %v5908_v53  ;;  %v6986_v12 = vld [vmem:[#allocation62_spill] sm:$0xff]  ;;  %v6987_v17 = vld [vmem:[#allocation47_spill] sm:$0xff]  ;;  %v6990_v54 = vld [vmem:[#allocation60_spill] sm:$0xff] }
 0x360   :  { %v1986_v49 = vsel %vm1878_vm7, %v1985_v37, %v1984_v10  ;;  %v2003_v34 = vsel %vm1850_vm0, %v2002_v62, %v2001_v1  ;;  %v1656_v7 = vadd.f32 %v5305_v31, %v6986_v12  ;;  %v1697_v8 = vadd.f32 %v5305_v31, %v5860_v15  ;;  %v6989_v12 = vld [vmem:[#allocation59_spill] sm:$0xff] }
 0x361   :  { %v5998_v11 = vpop.xlane.xlu0 %1565  ;;  %v1699_v37 = vadd.f32 %v5305_v31, %v5884_v4  ;;  %v6139_v10 = vadd.f32 %v5305_v31, %v6987_v17  ;;  %v1989_v53 = vperm.slane %v1646_v48, %v5789_v43  ;;  %v1655_v1 = vadd.f32 %v5305_v31, %v6988_v14 }
 0x362   :  { %v6007_v60 = vpop.xlane.xlu1 %1567  ;;  %v1988_v62 = vsel %vm1882_vm8, %v1987_v0, %v1986_v49  ;;  %v1649_v15 = vadd.f32 %v5305_v31, %v6989_v12  ;;  %v1991_v30 = vperm.slane %v1647_v32, %v5806_v56  ;;  %v1701_v4 = vadd.f32 %v5305_v31, %v5942_v33  ;;  %v6991_v12 = vld [vmem:[#allocation40_spill] sm:$0xff] }
 0x363   :  { %v6027_v42 = vpop.xlane.xlu2 %1563  ;;  %v1993_v18 = vperm.slane %v1648_v61, %v5812_v6  ;;  %v2005_v17 = vsel %vm1854_vm1, %v2004_v21, %v2003_v34  ;;  %v1657_v48 = vadd.f32 %v5305_v31, %v6990_v54  ;;  %v2090_v28 = vperm.slane %v1698_v2, %v5989_v38 }
 0x364   :  { %v2008_v0 = vperm.slane %v1656_v7, %v5745_v16  ;;  %v2088_v49 = vperm.slane %v1697_v8, %v5809_v23  ;;  %v2092_v32 = vperm.slane %v1699_v37, %v6004_v3  ;;  %v1700_v33 = vadd.f32 %v5305_v31, %v5892_v22  ;;  %v6992_v7 = vld [vmem:[#allocation53_spill] sm:$0xff] }
 0x365   :  { %v1990_v61 = vsel %vm1886_vm9, %v1989_v53, %v1988_v62  ;;  %v6165_v21 = vadd.f32 %v5305_v31, %v6991_v12  ;;  %v2006_v54 = vperm.slane %v1655_v1, %v5750_v51  ;;  %v1702_v2 = vadd.f32 %v5305_v31, %v5920_v59  ;;  %v6993_v1 = vld [vmem:[#allocation65_spill] sm:$0xff] }
 0x366   :  { %v1992_v34 = vsel %vm1890_vm10, %v1991_v30, %v1990_v61  ;;  %v1650_v8 = vadd.f32 %v5305_v31, %v6992_v7  ;;  %v2095_v37 = vperm.slane %v1701_v4, %v5728_v55  ;;  %v2089_v22 = vsel %vm1898_vm12, %v2088_v49, %v5902_v27  ;;  %v6994_v61 = vld [vmem:[#allocation61_spill] sm:$0xff] }
 0x367   :  { %v2010_v53 = vperm.slane %v1657_v48, %v5765_v40  ;;  %v2007_v62 = vsel %vm1858_vm2, %v2006_v54, %v2005_v17  ;;  %v1659_v12 = vadd.f32 %v5305_v31, %v6993_v1  ;;  %v2091_v30 = vsel %vm1902_vm13, %v2090_v28, %v2089_v22  ;;  %v6995_v48 = vld [vmem:[#allocation63_spill] sm:$0xff]  ;;  %v6998_v17 = vld [vmem:[#allocation64_spill] sm:$0xff] }
 0x368   :  { %v1658_v7 = vadd.f32 %v5305_v31, %v6994_v61  ;;  %v2009_v4 = vsel %vm1862_vm3, %v2008_v0, %v2007_v62  ;;  %v2094_v46 = vperm.slane %v1700_v33, %v5722_v45  ;;  %v6190_v27 = vsel %vm1906_vm14, %v2092_v32, %v2091_v30 }
 0x369   :  { %v6048_v44 = vpop.xlane.xlu0 %1571  ;;  %v1660_v49 = vadd.f32 %v5305_v31, %v6995_v48  ;;  %v2097_v54 = vperm.slane %v1702_v2, %v5738_v63  ;;  %v1704_v28 = vadd.f32 %v5305_v31, %v5981_v5  ;;  %v1962_v22 = vperm.slane %v6139_v10, %v5812_v6  ;;  %v6996_v5 = vld [vmem:[#allocation50_spill] sm:$0xff] }
 0x36a   :  { %v6058_v36 = vpop.xlane.xlu1 %1573  ;;  %v1994_v0 = vsel %vm1894_vm11, %v1993_v18, %v1992_v34  ;;  %v1703_v32 = vadd.f32 %v5305_v31, %v5927_v13  ;;  %v2096_v33 = vsel %vm1850_vm0, %v2095_v37, %v2094_v46  ;;  %v1995_v62 = vperm.slane %v1649_v15, %v5809_v23 }
 0x36b   :  { %v6093_v57 = vpop.xlane.xlu2 %1569  ;;  %v1997_v1 = vperm.slane %v1650_v8, %v5989_v38  ;;  %v2011_v30 = vsel %vm1866_vm4, %v2010_v53, %v2009_v4  ;;  %v2014_v2 = vperm.slane %v1659_v12, %v5768_v35  ;;  %v6211_v48 = vadd.f32 %v5305_v31, %v6996_v5  ;;  %v6997_v12 = vld [vmem:[#allocation68_spill] sm:$0xff] }
 0x36c   :  { %v1999_v18 = vperm.slane %v6165_v21, %v6004_v3  ;;  %v2012_v13 = vperm.slane %v1658_v7, %v5771_v25  ;;  %v1705_v46 = vadd.f32 %v5305_v31, %v5952_v29  ;;  %v1996_v15 = vsel %vm1898_vm12, %v1995_v62, %v1994_v0 }
 0x36d   :  { %v2016_v34 = vperm.slane %v1660_v49, %v5786_v41  ;;  %v2098_v8 = vsel %vm1854_vm1, %v2097_v54, %v2096_v33  ;;  %v2101_v37 = vperm.slane %v1704_v28, %v5745_v16  ;;  %v1662_v4 = vadd.f32 %v5305_v31, %v6997_v12 }
 0x36e   :  { %v2013_v53 = vsel %vm1870_vm5, %v2012_v13, %v2011_v30  ;;  %v2099_v21 = vperm.slane %v1703_v32, %v5750_v51  ;;  %v1998_v29 = vsel %vm1902_vm13, %v1997_v1, %v1996_v15  ;;  %v1661_v0 = vadd.f32 %v5305_v31, %v6998_v17 }
 0x36f   :  { %v2015_v49 = vsel %vm1874_vm6, %v2014_v2, %v2013_v53  ;;  %v2103_v33 = vperm.slane %v1705_v46, %v5765_v40  ;;  %v1707_v32 = vadd.f32 %v5305_v31, %v6027_v42  ;;  %v1706_v17 = vadd.f32 %v5305_v31, %v5959_v20 }
 0x370   :  { %v2100_v62 = vsel %vm1858_vm2, %v2099_v21, %v2098_v8  ;;  %v2017_v15 = vsel %vm1878_vm7, %v2016_v34, %v2015_v49  ;;  %v2020_v46 = vperm.slane %v1662_v4, %v5789_v43  ;;  %v1708_v8 = vadd.f32 %v5305_v31, %v5998_v11  ;;  %v7000_v49 = vld [vmem:[#allocation70_spill] sm:$0xff] }
 0x371   :  { %v6118_v39 = vpop.xlane.xlu0 %1385  ;;  %v2102_v2 = vsel %vm1862_vm3, %v2101_v37, %v2100_v62  ;;  %v1968_v53 = vperm.slane %v6211_v48, %v6004_v3  ;;  %v6251_v12 = vsel %vm1906_vm14, %v1999_v18, %v1998_v29  ;;  %v2018_v20 = vperm.slane %v1661_v0, %v5792_v9  ;;  %v7001_v0 = vld [vmem:[#allocation67_spill] sm:$0xff] }
 0x372   :  { %v6126_v52 = vpop.xlane.xlu1 %1387  ;;  %v2104_v34 = vsel %vm1866_vm4, %v2103_v33, %v2102_v2  ;;  %v2107_v4 = vperm.slane %v1707_v32, %v5768_v35  ;;  %v1665_v18 = vadd.f32 %v5305_v31, %v7000_v49  ;;  %v2105_v29 = vperm.slane %v1706_v17, %v5771_v25 }
 0x373   :  { %v6155_v14 = vpop.xlane.xlu2 %1575  ;;  %v1709_v33 = vadd.f32 %v5305_v31, %v6007_v60 }
 0x374   :  { %v2106_v32 = vsel %vm1870_vm5, %v2105_v29, %v2104_v34 }
 0x375   :  { %v2108_v2 = vsel %vm1874_vm6, %v2107_v4, %v2106_v32 }
 0x379   :  { %v6174_v58 = vpop.xlane.xlu0 %1577 }
 0x37a   :  { %v6182_v59 = vpop.xlane.xlu1 %1579 }
 0x37b   :  { %v1390_v61 = vpop.xlane.xlu2 %1389 }
 0x37c   :  { %v1620_v7 = vadd.f32 %v5305_v31, %v1390_v61  ;;  %v6999_v61 = vld [vmem:[#allocation66_spill] sm:$0xff] }
 0x37d   :  { %v1663_v1 = vadd.f32 %v5305_v31, %v6999_v61 }
 0x37e   :  { %v1939_v42 = vperm.slane %v1620_v7, %v5722_v45 }
 0x37f   :  { %v2022_v7 = vperm.slane %v1663_v1, %v5806_v56 }
 0x381   :  { %v1392_v5 = vpop.xlane.xlu0 %1391 }
 0x382   :  { %v1621_v54 = vadd.f32 %v5305_v31, %v1392_v5  ;;  %v1394_v28 = vpop.xlane.xlu1 %1393  ;;  %v2019_v5 = vsel %vm1882_vm8, %v2018_v20, %v2017_v15 }
 0x383   :  { %v1622_v30 = vadd.f32 %v5305_v31, %v1394_v28  ;;  %v2109_v28 = vperm.slane %v1708_v8, %v5786_v41  ;;  %v7002_v8 = vld [vmem:[#allocation56_spill] sm:$0xff] }
 0x384   :  { %v1940_v13 = vperm.slane %v1621_v54, %v5728_v55  ;;  %v1396_v55 = vpop.xlane.xlu2 %1395  ;;  %v2021_v54 = vsel %vm1886_vm9, %v2020_v46, %v2019_v5 }
 0x385   :  { %v1942_v37 = vperm.slane %v1622_v30, %v5738_v63  ;;  %v1623_v11 = vadd.f32 %v5305_v31, %v1396_v55  ;;  %v1664_v63 = vadd.f32 %v5305_v31, %v7001_v0  ;;  %v1710_v30 = vadd.f32 %v5305_v31, %v6093_v57 }
 0x386   :  { %v1941_v21 = vsel %vm1850_vm0, %v1940_v13, %v1939_v42  ;;  %v1618_v13 = vadd.f32 %v5305_v31, %v6118_v39  ;;  %v2023_v46 = vsel %vm1890_vm10, %v2022_v7, %v2021_v54  ;;  %v1666_v42 = vadd.f32 %v5305_v31, %v7002_v8 }
 0x387   :  { %v1943_v61 = vsel %vm1854_vm1, %v1942_v37, %v1941_v21  ;;  %v1944_v15 = vperm.slane %v1623_v11, %v5750_v51  ;;  %v2026_v57 = vperm.slane %v1665_v18, %v5809_v23  ;;  %v2024_v37 = vperm.slane %v1664_v63, %v5812_v6  ;;  %v7005_v63 = vld [vmem:[#allocation71_spill] sm:$0xff] }
 0x388   :  { %v1711_v55 = vadd.f32 %v5305_v31, %v6048_v44  ;;  %v2110_v34 = vsel %vm1878_vm7, %v2109_v28, %v2108_v2  ;;  %v2113_v4 = vperm.slane %v1710_v30, %v5789_v43  ;;  %v1619_v21 = vadd.f32 %v5305_v31, %v6126_v52  ;;  %v7008_v2 = vld [vmem:[#allocation45_spill] sm:$0xff] }
 0x389   :  { %v1398_v62 = vpop.xlane.xlu0 %1397  ;;  %v1945_v39 = vsel %vm1858_vm2, %v1944_v15, %v1943_v61  ;;  %v2111_v7 = vperm.slane %v1709_v33, %v5792_v9  ;;  %v1935_v5 = vperm.slane %v1618_v13, %v5989_v38  ;;  %v2028_v49 = vperm.slane %v1666_v42, %v5989_v38 }
 0x38a   :  { %v1624_v1 = vadd.f32 %v5305_v31, %v1398_v62  ;;  %v1400_v17 = vpop.xlane.xlu1 %1399  ;;  %v7004_v52 = vperm.slane %v6046_v50, %v5771_v25  ;;  %v1682_v54 = vadd.f32 %v5305_v31, %v7005_v63  ;;  %v2115_v28 = vperm.slane %v1711_v55, %v5806_v56 }
 0x38b   :  { %v1625_v60 = vadd.f32 %v5305_v31, %v1400_v17  ;;  %v2112_v33 = vsel %vm1882_vm8, %v2111_v7, %v2110_v34  ;;  %v7006_v62 = vperm.slane %v6038_v26, %v5768_v35  ;;  %v1713_v61 = vadd.f32 %v5305_v31, %v6155_v14  ;;  %v7015_v34 = vld [vmem:[#allocation32_spill] sm:$0xff] }
 0x38c   :  { %v1946_v20 = vperm.slane %v1624_v1, %v5745_v16  ;;  %v2025_v16 = vsel %vm1894_vm11, %v2024_v37, %v2023_v46  ;;  %v2114_v30 = vsel %vm1886_vm9, %v2113_v4, %v2112_v33  ;;  %v1937_v25 = vperm.slane %v1619_v21, %v6004_v3  ;;  %v7011_v46 = vld [vmem:[#allocation31_spill] sm:$0xff]  ;;  %v7019_v7 = vld [vmem:[#allocation72_spill] sm:$0xff] }
 0x38d   :  { %v1948_v51 = vperm.slane %v1625_v60, %v5765_v40  ;;  %v7003_v40 = vld [vmem:[#allocation69_spill] sm:$0xff]  ;;  %v2027_v29 = vsel %vm1898_vm12, %v2026_v57, %v2025_v16  ;;  %v7007_v50 = vperm.slane %v6042_v24, %v5786_v41  ;;  %v1712_v17 = vadd.f32 %v5305_v31, %v6058_v36 }
 0x38e   :  { %v1947_v11 = vsel %vm1862_vm3, %v1946_v20, %v1945_v39  ;;  %v1667_v18 = vadd.f32 %v5305_v31, %v7003_v40  ;;  %v1936_v35 = vsel %vm1902_vm13, %v1935_v5, %v6073_v47  ;;  %v1714_v26 = vadd.f32 %v5305_v31, %v6174_v58  ;;  %v7010_v24 = vld [vmem:[#allocation73_spill] sm:$0xff] }
 0x38f   :  { %v1949_v44 = vsel %vm1866_vm4, %v1948_v51, %v1947_v11  ;;  %v7009_v13 = vperm.slane %v7008_v2, %v5792_v9  ;;  %v2029_v41 = vsel %vm1902_vm13, %v2028_v49, %v2027_v29  ;;  %v1683_v60 = vadd.f32 %v5305_v31, %v7010_v24  ;;  %v7013_v9 = vld [vmem:[#allocation41_spill] sm:$0xff] }
 0x390   :  { %v1951_v0 = vsel %vm1870_vm5, %v7004_v52, %v1949_v44  ;;  %v2030_v15 = vperm.slane %v1667_v18, %v6004_v3  ;;  %v7012_v36 = vperm.slane %v7011_v46, %v5789_v43  ;;  %v2059_v8 = vperm.slane %v1682_v54, %v5989_v38 }
 0x391   :  { %v1953_v32 = vsel %vm1874_vm6, %v7006_v62, %v1951_v0  ;;  %v2116_v58 = vsel %vm1890_vm10, %v2115_v28, %v2114_v30  ;;  %v7014_v42 = vperm.slane %v7013_v9, %v5806_v56  ;;  %v2119_v20 = vperm.slane %v1713_v61, %v5809_v23  ;;  %v4088_v9 = vld [vmem:[#allocation4 + $0x8] sm:$0xff] }
 0x392   :  { %v1955_v1 = vsel %vm1878_vm7, %v7007_v50, %v1953_v32  ;;  %v1938_v37 = vsel %vm1906_vm14, %v1937_v25, %v1936_v35  ;;  %v1715_v55 = vadd.f32 %v5305_v31, %v6182_v59  ;;  %v2117_v39 = vperm.slane %v1712_v17, %v5812_v6 }
 0x393   :  { %v1957_v14 = vsel %vm1882_vm8, %v7009_v13, %v1955_v1  ;;  %v2121_v51 = vperm.slane %v1714_v26, %v5989_v38  ;;  %v7016_v56 = vperm.slane %v7015_v34, %v5809_v23  ;;  %vm2127_vm0 = vcmask 1042434  }
 0x394   :  { %v1959_v47 = vsel %vm1886_vm9, %v7012_v36, %v1957_v14  ;;  %v2061_v21 = vperm.slane %v1683_v60, %v6004_v3  ;;  %v7017_v31 = vperm.slane %v6109_v19, %v5989_v38  ;;  %v2031_v10 = vsel %vm1906_vm14, %v2030_v15, %v2029_v41 }
 0x395   :  { %v1961_v57 = vsel %vm1890_vm10, %v7014_v42, %v1959_v47  ;;  %vm2129_vm1 = vcmask 1043459   ;;  %v2118_v11 = vsel %vm1894_vm11, %v2117_v39, %v2116_v58  ;;  %vm2131_vm2 = vcmask 1044484  }
 0x396   :  { %v1963_v43 = vsel %vm1894_vm11, %v1962_v22, %v1961_v57  ;;  %v7018_v22 = vld [vmem:[#allocation43_spill] sm:$0xff]  ;;  %v2123_v16 = vperm.slane %v1715_v55, %v6004_v3  ;;  %v2120_v38 = vsel %vm1898_vm12, %v2119_v20, %v2118_v11  ;;  %vm2133_vm3 = vcmask 1045509   ;;  %v4089_v20 = vld [vmem:[#allocation4] sm:$0xff] }
 0x397   :  { %v1965_v4 = vsel %vm1898_vm12, %v7016_v56, %v1963_v43  ;;  %v2126_v6 = vsel %vm2125_vm15, %v1938_v37, %v7018_v22  ;;  %v2060_v5 = vsel %vm1902_vm13, %v2059_v8, %v7019_v7  ;;  %v2122_v44 = vsel %vm1902_vm13, %v2121_v51, %v2120_v38  ;;  %v4090_v55 = vld [vmem:[#allocation4 + $0x10] sm:$0xff]  ;;  %v4091_v51 = vld [vmem:[#allocation4 + $0x18] sm:$0xff] }
 0x398   :  { %v1967_v59 = vsel %vm1902_vm13, %v7017_v31, %v1965_v4  ;;  %vm2135_vm4 = vcmask 1046534   ;;  %vm2137_vm5 = vcmask 1047559   ;;  %vm1718_vm6 = vcmp.lt.s32.totalorder %v5722_v45, 8  ;;  %v4092_v31 = vld [vmem:[#allocation4 + $0x20] sm:$0xff]  ;;  %v4094_v38 = vld [vmem:[#allocation4 + $0x30] sm:$0xff] }
 0x399   :  { %v1969_v23 = vsel %vm1906_vm14, %v1968_v53, %v1967_v59  ;;  %v2062_v53 = vsel %vm1906_vm14, %v2061_v21, %v2060_v5  ;;  %v2124_v40 = vsel %vm1906_vm14, %v2123_v16, %v2122_v44  ;;  %v7020_v28 = vlaneseq }
 0x39a   :  { %v2128_v19 = vsel %vm2127_vm0, %v1969_v23, %v2126_v6  ;;  %v4093_v6 = vld [vmem:[#allocation4 + $0x28] sm:$0xff] }
 0x39b   :  { %v2130_v48 = vsel %vm2129_vm1, %v6251_v12, %v2128_v19  ;;  %v6391_v33 = vshrl.u32 %v7020_v28, 7  ;;  %v4098_v28 = vld [vmem:[#allocation4 + $0x50] sm:$0xff] }
 0x39c   :  { %v2132_v49 = vsel %vm2131_vm2, %v2031_v10, %v2130_v48 }
 0x39d   :  { %v2134_v3 = vsel %vm2133_vm3, %v2062_v53, %v2132_v49  ;;  %3702 = vset.pattern.permute.xlu0 %v6391_v33  ;;  %v6395_v45 = vadd.s32 8, %v6391_v33  ;;  %v6407_v25 = vadd.s32 24, %v6391_v33  ;;  %v6410_v50 = vadd.s32 40, %v6391_v33  ;;  %v4095_v53 = vld [vmem:[#allocation4 + $0x38] sm:$0xff] }
 0x39e   :  { %v2136_v18 = vsel %vm2135_vm4, %v6190_v27, %v2134_v3  ;;  %v6398_v27 = vadd.s32 16, %v6391_v33  ;;  %v6413_v1 = vadd.s32 64, %v6391_v33  ;;  %v6419_v17 = vadd.s32 32, %v6391_v33  ;;  %v4096_v3 = vld [vmem:[#allocation4 + $0x40] sm:$0xff] }
 0x39f   :  { %v2138_v29 = vsel %vm2137_vm5, %v2124_v40, %v2136_v18  ;;  %3703 = vset.pattern.permute.xlu1 %v6395_v45  ;;  %v6422_v35 = vadd.s32 56, %v6391_v33  ;;  %v6425_v26 = vadd.s32 104, %v6391_v33  ;;  %v6431_v2 = vadd.s32 48, %v6391_v33 }
 0x3a0   :  { %v2140_v52 = vsel %vm1718_vm6, %v2138_v29, -1e+30  ;;  %3704 = vset.pattern.permute.xlu2 %v6398_v27  ;;  %v6434_v13 = vadd.s32 80, %v6391_v33  ;;  %v6444_v15 = vadd.s32 72, %v6391_v33  ;;  %v6447_v41 = vadd.s32 96, %v6391_v33 }
 0x3a1   :  { %2141 = vmax.xlane.f32.xlu0 %v2140_v52  ;;  %v6454_v24 = vadd.s32 88, %v6391_v33  ;;  %v6457_v60 = vadd.s32 120, %v6391_v33  ;;  %v6464_v46 = vadd.s32 112, %v6391_v33 }
 0x414   :  { %v2142_v12 = vpop.xlane.xlu0 %2141 }
 0x415   :  { %v2143_v0 = vsub.f32 %v2140_v52, %v2142_v12  ;;  %v4097_v12 = vld [vmem:[#allocation4 + $0x48] sm:$0xff] }
 0x417   :  { %v2144_v63 = vmul.f32 1.442695, %v2143_v0 }
 0x419   :  { %4072 = vpow2.f32 %v2144_v63 }
 0x41f   :  { %v4073_v54 = vpop.eup %4072 }
 0x420   :  { %2146 = vadd.xlane.f32.xlu1 %v4073_v54 }
 0x493   :  { %v2147_v62 = vpop.xlane.xlu1 %2146 }
 0x494   :  { %4074 = vrcp.f32 %v2147_v62 }
 0x49a   :  { %v4075_v32 = vpop.eup %4074 }
 0x49b   :  { %v6402_v30 = vmul.f32 %v4075_v32, %v4073_v54 }
 0x49d   :  { %v2151_v61 = vperm.slane %v6402_v30, 0  ;;  %2150 = vst [vmem:[#allocation22] sm:$0xff] %v6402_v30  ;;  %v6440_v14 = vperm.slane %v6402_v30, 1  ;;  %v6470_v36 = vperm.slane %v6402_v30, 2  ;;  %v6490_v5 = vperm.slane %v6402_v30, 3 }
 0x49f   :  { %2168 = vperm.xlu2 %3704, %v2151_v61   ;;  %2162 = vperm.xlu1 %3703, %v2151_v61  }
 0x4a0   :  { %2156 = vperm.xlu0 %3702, %v2151_v61  }
 0x4a7   :  { %3705 = vset.pattern.permute.xlu2 %v6407_v25  ;;  %3707 = vset.pattern.permute.xlu1 %v6410_v50 }
 0x4a8   :  { %3710 = vset.pattern.permute.xlu0 %v6413_v1 }
 0x4af   :  { %2174 = vperm.xlu2 %3705, %v2151_v61   ;;  %2186 = vperm.xlu1 %3707, %v2151_v61  }
 0x4b0   :  { %2204 = vperm.xlu0 %3710, %v2151_v61  }
 0x4b7   :  { %3706 = vset.pattern.permute.xlu2 %v6419_v17  ;;  %3709 = vset.pattern.permute.xlu1 %v6422_v35 }
 0x4b8   :  { %3715 = vset.pattern.permute.xlu0 %v6425_v26 }
 0x4bf   :  { %2180 = vperm.xlu2 %3706, %v2151_v61   ;;  %2198 = vperm.xlu1 %3709, %v2151_v61  }
 0x4c0   :  { %2234 = vperm.xlu0 %3715, %v2151_v61  }
 0x4c7   :  { %3708 = vset.pattern.permute.xlu2 %v6431_v2  ;;  %3712 = vset.pattern.permute.xlu1 %v6434_v13 }
 0x4c8   :  { %3720 = vset.pattern.permute.xlu0 %v6398_v27 }
 0x4cf   :  { %2192 = vperm.xlu2 %3708, %v2151_v61   ;;  %2216 = vperm.xlu1 %3712, %v2151_v61  }
 0x4d0   :  { %2265 = vperm.xlu0 %3720, %v6440_v14  }
 0x4d7   :  { %3711 = vset.pattern.permute.xlu2 %v6444_v15  ;;  %3714 = vset.pattern.permute.xlu1 %v6447_v41 }
 0x4d8   :  { %3725 = vset.pattern.permute.xlu0 %v6422_v35 }
 0x4df   :  { %2210 = vperm.xlu2 %3711, %v2151_v61   ;;  %2228 = vperm.xlu1 %3714, %v2151_v61  }
 0x4e0   :  { %2295 = vperm.xlu0 %3725, %v6440_v14  }
 0x4e7   :  { %3713 = vset.pattern.permute.xlu2 %v6454_v24  ;;  %3717 = vset.pattern.permute.xlu1 %v6457_v60 }
 0x4e8   :  { %3730 = vset.pattern.permute.xlu0 %v6447_v41 }
 0x4ef   :  { %2222 = vperm.xlu2 %3713, %v2151_v61   ;;  %2246 = vperm.xlu1 %3717, %v2151_v61  }
 0x4f0   :  { %2325 = vperm.xlu0 %3730, %v6440_v14  }
 0x4f7   :  { %3716 = vset.pattern.permute.xlu2 %v6464_v46  ;;  %3719 = vset.pattern.permute.xlu1 %v6395_v45 }
 0x4f8   :  { %3735 = vset.pattern.permute.xlu0 %v6395_v45 }
 0x4f9   :  { %v2169_v47 = vpop.permute.xlu2 %2168 }
 0x4fa   :  { %v2929_v43 = vmul.f32 %v4090_v55, %v2169_v47  ;;  %v4099_v47 = vld [vmem:[#allocation4 + $0x58] sm:$0xff] }
 0x4ff   :  { %2240 = vperm.xlu2 %3716, %v2151_v61   ;;  %2259 = vperm.xlu1 %3719, %v6440_v14  }
 0x500   :  { %2356 = vperm.xlu0 %3735, %v6470_v36  }
 0x507   :  { %3718 = vset.pattern.permute.xlu2 %v6391_v33  ;;  %3722 = vset.pattern.permute.xlu1 %v6419_v17 }
 0x508   :  { %3740 = vset.pattern.permute.xlu0 %v6431_v2 }
 0x509   :  { %v2175_v8 = vpop.permute.xlu2 %2174 }
 0x50a   :  { %v2930_v34 = vmul.f32 %v4091_v51, %v2175_v8 }
 0x50f   :  { %2253 = vperm.xlu2 %3718, %v6440_v14   ;;  %2277 = vperm.xlu1 %3722, %v6440_v14  }
 0x510   :  { %2386 = vperm.xlu0 %3740, %v6470_v36  }
 0x511   :  { %v2163_v58 = vpop.permute.xlu1 %2162 }
 0x512   :  { %v2928_v42 = vmul.f32 %v4088_v9, %v2163_v58  ;;  %v2157_v57 = vpop.permute.xlu0 %2156 }
 0x513   :  { %v2927_v37 = vmul.f32 %v4089_v20, %v2157_v57  ;;  %v4100_v57 = vld [vmem:[#allocation4 + $0x60] sm:$0xff] }
 0x515   :  { %v3055_v39 = vadd.f32 %v2928_v42, %v2927_v37  ;;  %v4101_v37 = vld [vmem:[#allocation4 + $0x68] sm:$0xff] }
 0x517   :  { %v3056_v56 = vadd.f32 %v3055_v39, %v2929_v43  ;;  %3721 = vset.pattern.permute.xlu2 %v6407_v25  ;;  %3724 = vset.pattern.permute.xlu1 %v6431_v2 }
 0x518   :  { %3745 = vset.pattern.permute.xlu0 %v6454_v24 }
 0x519   :  { %v2181_v4 = vpop.permute.xlu2 %2180  ;;  %v3057_v21 = vadd.f32 %v3056_v56, %v2930_v34  ;;  %v4102_v34 = vld [vmem:[#allocation4 + $0x70] sm:$0xff] }
 0x51a   :  { %v2931_v59 = vmul.f32 %v4092_v31, %v2181_v4 }
 0x51c   :  { %v3058_v10 = vadd.f32 %v3057_v21, %v2931_v59  ;;  %v6511_v21 = vperm.slane %v6402_v30, 4  ;;  %v4103_v59 = vld [vmem:[#allocation4 + $0x78] sm:$0xff] }
 0x51f   :  { %2271 = vperm.xlu2 %3721, %v6440_v14   ;;  %2289 = vperm.xlu1 %3724, %v6440_v14  }
 0x520   :  { %2416 = vperm.xlu0 %3745, %v6470_v36  }
 0x521   :  { %v2187_v22 = vpop.permute.xlu1 %2186 }
 0x522   :  { %v2932_v23 = vmul.f32 %v4093_v6, %v2187_v22  ;;  %v2205_v44 = vpop.permute.xlu0 %2204  ;;  %v6519_v6 = vperm.slane %v6402_v30, 6 }
 0x523   :  { %v2935_v40 = vmul.f32 %v4096_v3, %v2205_v44  ;;  %v4105_v44 = vld [vmem:[#allocation4 + $0x88] sm:$0xff] }
 0x524   :  { %v3059_v11 = vadd.f32 %v3058_v10, %v2932_v23  ;;  %v6525_v23 = vperm.slane %v6402_v30, 7 }
 0x527   :  { %3723 = vset.pattern.permute.xlu2 %v6410_v50  ;;  %3727 = vset.pattern.permute.xlu1 %v6444_v15 }
 0x528   :  { %3750 = vset.pattern.permute.xlu0 %v6391_v33 }
 0x529   :  { %v2193_v16 = vpop.permute.xlu2 %2192 }
 0x52a   :  { %v2933_v19 = vmul.f32 %v4094_v38, %v2193_v16 }
 0x52c   :  { %v3060_v7 = vadd.f32 %v3059_v11, %v2933_v19  ;;  %v4104_v19 = vld [vmem:[#allocation4 + $0x80] sm:$0xff] }
 0x52f   :  { %2283 = vperm.xlu2 %3723, %v6440_v14   ;;  %2307 = vperm.xlu1 %3727, %v6440_v14  }
 0x530   :  { %2447 = vperm.xlu0 %3750, %v6490_v5  }
 0x531   :  { %v2199_v48 = vpop.permute.xlu1 %2198 }
 0x532   :  { %v2934_v49 = vmul.f32 %v4095_v53, %v2199_v48  ;;  %v2235_v9 = vpop.permute.xlu0 %2234  ;;  %v4106_v53 = vld [vmem:[#allocation4 + $0x90] sm:$0xff] }
 0x533   :  { %v2940_v55 = vmul.f32 %v4101_v37, %v2235_v9 }
 0x534   :  { %v3061_v18 = vadd.f32 %v3060_v7, %v2934_v49 }
 0x536   :  { %v3062_v29 = vadd.f32 %v3061_v18, %v2935_v40  ;;  %v4107_v18 = vld [vmem:[#allocation4 + $0x98] sm:$0xff] }
 0x537   :  { %3726 = vset.pattern.permute.xlu2 %v6413_v1  ;;  %3729 = vset.pattern.permute.xlu1 %v6454_v24 }
 0x538   :  { %3755 = vset.pattern.permute.xlu0 %v6410_v50 }
 0x539   :  { %v2211_v52 = vpop.permute.xlu2 %2210 }
 0x53a   :  { %v2936_v0 = vmul.f32 %v4097_v12, %v2211_v52  ;;  %v6534_v12 = vperm.slane %v6402_v30, 5 }
 0x53c   :  { %v3063_v63 = vadd.f32 %v3062_v29, %v2936_v0 }
 0x53f   :  { %2301 = vperm.xlu2 %3726, %v6440_v14   ;;  %2319 = vperm.xlu1 %3729, %v6440_v14  }
 0x540   :  { %2477 = vperm.xlu0 %3755, %v6490_v5  }
 0x541   :  { %v2217_v54 = vpop.permute.xlu1 %2216 }
 0x542   :  { %v2937_v62 = vmul.f32 %v4098_v28, %v2217_v54  ;;  %v2266_v16 = vpop.permute.xlu0 %2265 }
 0x543   :  { %v2945_v49 = vmul.f32 %v4106_v53, %v2266_v16 }
 0x544   :  { %v3064_v32 = vadd.f32 %v3063_v63, %v2937_v62  ;;  %v4108_v63 = vld [vmem:[#allocation4 + $0xa0] sm:$0xff] }
 0x547   :  { %3728 = vset.pattern.permute.xlu2 %v6434_v13  ;;  %3732 = vset.pattern.permute.xlu1 %v6464_v46 }
 0x548   :  { %3760 = vset.pattern.permute.xlu0 %v6434_v13 }
 0x549   :  { %v2223_v61 = vpop.permute.xlu2 %2222 }
 0x54a   :  { %v2938_v8 = vmul.f32 %v4099_v47, %v2223_v61 }
 0x54c   :  { %v3065_v58 = vadd.f32 %v3064_v32, %v2938_v8  ;;  %v4109_v32 = vld [vmem:[#allocation4 + $0xa8] sm:$0xff] }
 0x54f   :  { %2313 = vperm.xlu2 %3728, %v6440_v14   ;;  %2337 = vperm.xlu1 %3732, %v6440_v14  }
 0x550   :  { %2507 = vperm.xlu0 %3760, %v6490_v5  }
 0x551   :  { %v2229_v42 = vpop.permute.xlu1 %2228 }
 0x552   :  { %v2939_v20 = vmul.f32 %v4100_v57, %v2229_v42  ;;  %v2296_v47 = vpop.permute.xlu0 %2295  ;;  %v4111_v42 = vld [vmem:[#allocation4 + $0xb8] sm:$0xff] }
 0x553   :  { %v2950_v57 = vmul.f32 %v4111_v42, %v2296_v47 }
 0x554   :  { %v3066_v43 = vadd.f32 %v3065_v58, %v2939_v20  ;;  %v4110_v58 = vld [vmem:[#allocation4 + $0xb0] sm:$0xff] }
 0x556   :  { %v3067_v39 = vadd.f32 %v3066_v43, %v2940_v55  ;;  %v4112_v43 = vld [vmem:[#allocation4 + $0xc0] sm:$0xff] }
 0x557   :  { %3731 = vset.pattern.permute.xlu2 %v6425_v26  ;;  %3734 = vset.pattern.permute.xlu1 %v6391_v33 }
 0x558   :  { %3765 = vset.pattern.permute.xlu0 %v6395_v45 }
 0x559   :  { %v2241_v51 = vpop.permute.xlu2 %2240 }
 0x55a   :  { %v2941_v56 = vmul.f32 %v4102_v34, %v2241_v51 }
 0x55c   :  { %v3068_v4 = vadd.f32 %v3067_v39, %v2941_v56  ;;  %v4113_v56 = vld [vmem:[#allocation4 + $0xc8] sm:$0xff] }
 0x55f   :  { %2331 = vperm.xlu2 %3731, %v6440_v14   ;;  %2350 = vperm.xlu1 %3734, %v6470_v36  }
 0x560   :  { %2550 = vperm.xlu0 %3765, %v6511_v21  }
 0x561   :  { %v2247_v31 = vpop.permute.xlu1 %2246 }
 0x562   :  { %v2942_v10 = vmul.f32 %v4103_v59, %v2247_v31 }
 0x564   :  { %v6516_v22 = vadd.f32 %v3068_v4, %v2942_v10  ;;  %v4114_v10 = vld [vmem:[#allocation4 + $0xd0] sm:$0xff] }
 0x567   :  { %3733 = vset.pattern.permute.xlu2 %v6457_v60  ;;  %3737 = vset.pattern.permute.xlu1 %v6407_v25 }
 0x568   :  { %2744 = vperm.xlu0 %3765, %v6519_v6  }
 0x569   :  { %v2254_v11 = vpop.permute.xlu2 %2253 }
 0x56a   :  { %v2943_v7 = vmul.f32 %v4104_v19, %v2254_v11 }
 0x56f   :  { %2343 = vperm.xlu2 %3733, %v6440_v14   ;;  %2368 = vperm.xlu1 %3737, %v6470_v36  }
 0x570   :  { %2841 = vperm.xlu0 %3765, %v6525_v23  }
 0x571   :  { %v2260_v38 = vpop.permute.xlu1 %2259 }
 0x572   :  { %v2944_v48 = vmul.f32 %v4105_v44, %v2260_v38  ;;  %v2326_v38 = vpop.permute.xlu0 %2325 }
 0x574   :  { %v3076_v3 = vadd.f32 %v2944_v48, %v2943_v7  ;;  %v4115_v7 = vld [vmem:[#allocation4 + $0xd8] sm:$0xff]  ;;  %v4116_v48 = vld [vmem:[#allocation4 + $0xe0] sm:$0xff] }
 0x575   :  { %v2955_v53 = vmul.f32 %v4116_v48, %v2326_v38 }
 0x576   :  { %v3077_v40 = vadd.f32 %v3076_v3, %v2945_v49 }
 0x577   :  { %3736 = vset.pattern.permute.xlu2 %v6398_v27  ;;  %3739 = vset.pattern.permute.xlu1 %v6410_v50 }
 0x578   :  { %3772 = vset.pattern.permute.xlu0 %v6407_v25 }
 0x579   :  { %v2272_v14 = vpop.permute.xlu2 %2271 }
 0x57a   :  { %v2946_v29 = vmul.f32 %v4107_v18, %v2272_v14  ;;  %v4117_v14 = vld [vmem:[#allocation4 + $0xe8] sm:$0xff] }
 0x57c   :  { %v3078_v52 = vadd.f32 %v3077_v40, %v2946_v29 }
 0x57f   :  { %2362 = vperm.xlu2 %3736, %v6470_v36   ;;  %2380 = vperm.xlu1 %3739, %v6470_v36  }
 0x580   :  { %2659 = vperm.xlu0 %3772, %v6534_v12  }
 0x581   :  { %v2278_v0 = vpop.permute.xlu1 %2277 }
 0x582   :  { %v2947_v54 = vmul.f32 %v4108_v63, %v2278_v0  ;;  %v4118_v0 = vld [vmem:[#allocation4 + $0xf0] sm:$0xff] }
 0x584   :  { %v3079_v28 = vadd.f32 %v3078_v52, %v2947_v54  ;;  %v3070_v54 = vrot.slane %v6516_v22, 4 }
 0x587   :  { %3738 = vset.pattern.permute.xlu2 %v6419_v17  ;;  %3742 = vset.pattern.permute.xlu1 %v6413_v1 }
 0x588   :  { %2853 = vperm.xlu0 %3772, %v6525_v23  }
 0x589   :  { %v2284_v62 = vpop.permute.xlu2 %2283 }
 0x58a   :  { %v2948_v30 = vmul.f32 %v4109_v32, %v2284_v62  ;;  %v3071_v62 = vadd.f32 %v3070_v54, %v6516_v22 }
 0x58c   :  { %v3080_v61 = vadd.f32 %v3079_v28, %v2948_v30  ;;  %v4119_v30 = vld [vmem:[#allocation4 + $0xf8] sm:$0xff]  ;;  %v3072_v47 = vrot.slane %v3071_v62, 2 }
 0x58e   :  { %v3073_v42 = vadd.f32 %v3072_v47, %v3071_v62 }
 0x58f   :  { %2374 = vperm.xlu2 %3738, %v6470_v36   ;;  %2398 = vperm.xlu1 %3742, %v6470_v36  }
 0x590   :  { %3777 = vset.pattern.permute.xlu0 %v6410_v50 }
 0x591   :  { %v2290_v8 = vpop.permute.xlu1 %2289 }
 0x592   :  { %v2949_v9 = vmul.f32 %v4110_v58, %v2290_v8 }
 0x594   :  { %v3081_v20 = vadd.f32 %v3080_v61, %v2949_v9  ;;  %v2357_v9 = vpop.permute.xlu0 %2356 }
 0x596   :  { %v3082_v37 = vadd.f32 %v3081_v20, %v2950_v57 }
 0x597   :  { %3741 = vset.pattern.permute.xlu2 %v6422_v35  ;;  %3744 = vset.pattern.permute.xlu1 %v6434_v13 }
 0x598   :  { %2671 = vperm.xlu0 %3777, %v6534_v12  }
 0x599   :  { %v2302_v55 = vpop.permute.xlu2 %2301 }
 0x59a   :  { %v2951_v39 = vmul.f32 %v4112_v43, %v2302_v55  ;;  %v4121_v43 = vld [vmem:[#allocation4 + $0x100] sm:$0xff] }
 0x59c   :  { %v3083_v51 = vadd.f32 %v3082_v37, %v2951_v39  ;;  %v4120_v37 = vld [vmem:[#allocation4 + $0x108] sm:$0xff] }
 0x59d   :  { %v2960_v22 = vmul.f32 %v4120_v37, %v2357_v9 }
 0x59f   :  { %2392 = vperm.xlu2 %3741, %v6470_v36   ;;  %2410 = vperm.xlu1 %3744, %v6470_v36  }
 0x5a0   :  { %2865 = vperm.xlu0 %3777, %v6525_v23  }
 0x5a1   :  { %v2308_v34 = vpop.permute.xlu1 %2307 }
 0x5a2   :  { %v2952_v4 = vmul.f32 %v4113_v56, %v2308_v34 }
 0x5a4   :  { %v3084_v31 = vadd.f32 %v3083_v51, %v2952_v4  ;;  %v3074_v51 = vrot.slane %v3073_v42, 1 }
 0x5a7   :  { %3743 = vset.pattern.permute.xlu2 %v6444_v15  ;;  %3747 = vset.pattern.permute.xlu1 %v6425_v26 }
 0x5a8   :  { %3782 = vset.pattern.permute.xlu0 %v6422_v35 }
 0x5a9   :  { %v2314_v59 = vpop.permute.xlu2 %2313 }
 0x5aa   :  { %v2953_v11 = vmul.f32 %v4114_v10, %v2314_v59 }
 0x5ac   :  { %v3085_v16 = vadd.f32 %v3084_v31, %v2953_v11  ;;  %v4122_v11 = vld [vmem:[#allocation4 + $0x110] sm:$0xff] }
 0x5af   :  { %2404 = vperm.xlu2 %3743, %v6470_v36   ;;  %2428 = vperm.xlu1 %3747, %v6470_v36  }
 0x5b0   :  { %2683 = vperm.xlu0 %3782, %v6534_v12  }
 0x5b1   :  { %v2320_v19 = vpop.permute.xlu1 %2319 }
 0x5b2   :  { %v2954_v44 = vmul.f32 %v4115_v7, %v2320_v19  ;;  %v4123_v7 = vld [vmem:[#allocation4 + $0x118] sm:$0xff] }
 0x5b4   :  { %v3086_v49 = vadd.f32 %v3085_v16, %v2954_v44 }
 0x5b6   :  { %v3087_v3 = vadd.f32 %v3086_v49, %v2955_v53  ;;  %v4124_v49 = vld [vmem:[#allocation4 + $0x120] sm:$0xff] }
 0x5b7   :  { %3746 = vset.pattern.permute.xlu2 %v6447_v41  ;;  %3749 = vset.pattern.permute.xlu1 %v6457_v60 }
 0x5b8   :  { %2877 = vperm.xlu0 %3782, %v6525_v23  }
 0x5b9   :  { %v2332_v40 = vpop.permute.xlu2 %2331 }
 0x5ba   :  { %v2956_v18 = vmul.f32 %v4117_v14, %v2332_v40  ;;  %v2387_v14 = vpop.permute.xlu0 %2386 }
 0x5bc   :  { %v3088_v29 = vadd.f32 %v3087_v3, %v2956_v18 }
 0x5bf   :  { %2422 = vperm.xlu2 %3746, %v6470_v36   ;;  %2440 = vperm.xlu1 %3749, %v6470_v36  }
 0x5c0   :  { %3787 = vset.pattern.permute.xlu0 %v6444_v15 }
 0x5c1   :  { %v2338_v52 = vpop.permute.xlu1 %2337 }
 0x5c2   :  { %v2957_v63 = vmul.f32 %v4118_v0, %v2338_v52  ;;  %v4126_v0 = vld [vmem:[#allocation4 + $0x130] sm:$0xff] }
 0x5c4   :  { %v3089_v28 = vadd.f32 %v3088_v29, %v2957_v63  ;;  %v4125_v29 = vld [vmem:[#allocation4 + $0x128] sm:$0xff]  ;;  %v2965_v63 = vmul.f32 %v4126_v0, %v2387_v14 }
 0x5c7   :  { %3748 = vset.pattern.permute.xlu2 %v6464_v46  ;;  %3752 = vset.pattern.permute.xlu1 %v6398_v27 }
 0x5c8   :  { %2695 = vperm.xlu0 %3787, %v6534_v12  }
 0x5c9   :  { %v2344_v32 = vpop.permute.xlu2 %2343 }
 0x5ca   :  { %v2958_v61 = vmul.f32 %v4119_v30, %v2344_v32  ;;  %v4127_v32 = vld [vmem:[#allocation4 + $0x138] sm:$0xff] }
 0x5cc   :  { %v3090_v8 = vadd.f32 %v3089_v28, %v2958_v61 }
 0x5ce   :  { %v3091_v58 = vrot.slane %v3090_v8, 4 }
 0x5cf   :  { %2434 = vperm.xlu2 %3748, %v6470_v36   ;;  %2459 = vperm.xlu1 %3752, %v6490_v5   ;;  %v3075_v36 = vadd.f32 %v3074_v51, %v3073_v42  ;;  %v4131_v51 = vld [vmem:[#allocation4 + $0x158] sm:$0xff] }
 0x5d0   :  { %v3092_v57 = vadd.f32 %v3091_v58, %v3090_v8  ;;  %2889 = vperm.xlu0 %3787, %v6525_v23   ;;  %v4128_v8 = vld [vmem:[#allocation4 + $0x140] sm:$0xff] }
 0x5d1   :  { %v2351_v20 = vpop.permute.xlu1 %2350 }
 0x5d2   :  { %v3093_v55 = vrot.slane %v3092_v57, 2  ;;  %v2959_v39 = vmul.f32 %v4121_v43, %v2351_v20  ;;  %v4130_v43 = vld [vmem:[#allocation4 + $0x150] sm:$0xff] }
 0x5d4   :  { %v3094_v34 = vadd.f32 %v3093_v55, %v3092_v57  ;;  %v3097_v56 = vadd.f32 %v2960_v22, %v2959_v39  ;;  %v4129_v57 = vld [vmem:[#allocation4 + $0x148] sm:$0xff]  ;;  %v2417_v22 = vpop.permute.xlu0 %2416 }
 0x5d6   :  { %v3095_v4 = vrot.slane %v3094_v34, 1 }
 0x5d7   :  { %3751 = vset.pattern.permute.xlu2 %v6395_v45  ;;  %3754 = vset.pattern.permute.xlu1 %v6419_v17 }
 0x5d8   :  { %v3096_v31 = vadd.f32 %v3095_v4, %v3094_v34  ;;  %3792 = vset.pattern.permute.xlu0 %v6454_v24  ;;  %v2970_v34 = vmul.f32 %v4131_v51, %v2417_v22  ;;  %v4141_v51 = vld [vmem:[#allocation4 + $0x1a8] sm:$0xff] }
 0x5d9   :  { %v2363_v59 = vpop.permute.xlu2 %2362 }
 0x5da   :  { %v6575_v10 = vsel %vm2125_vm15, %v3096_v31, %v3075_v36  ;;  %v2961_v16 = vmul.f32 %v4122_v11, %v2363_v59  ;;  %v4132_v31 = vld [vmem:[#allocation4 + $0x160] sm:$0xff] }
 0x5dc   :  { %v3098_v38 = vadd.f32 %v3097_v56, %v2961_v16 }
 0x5df   :  { %2453 = vperm.xlu2 %3751, %v6490_v5   ;;  %2471 = vperm.xlu1 %3754, %v6490_v5  }
 0x5e0   :  { %2707 = vperm.xlu0 %3792, %v6534_v12  }
 0x5e1   :  { %v2369_v19 = vpop.permute.xlu1 %2368 }
 0x5e2   :  { %v2962_v44 = vmul.f32 %v4123_v7, %v2369_v19 }
 0x5e4   :  { %v3099_v48 = vadd.f32 %v3098_v38, %v2962_v44  ;;  %v4133_v38 = vld [vmem:[#allocation4 + $0x168] sm:$0xff] }
 0x5e7   :  { %3753 = vset.pattern.permute.xlu2 %v6407_v25  ;;  %3757 = vset.pattern.permute.xlu1 %v6422_v35 }
 0x5e8   :  { %2901 = vperm.xlu0 %3792, %v6525_v23  }
 0x5e9   :  { %v2375_v53 = vpop.permute.xlu2 %2374 }
 0x5ea   :  { %v2963_v3 = vmul.f32 %v4124_v49, %v2375_v53 }
 0x5ec   :  { %v3100_v40 = vadd.f32 %v3099_v48, %v2963_v3  ;;  %v4134_v48 = vld [vmem:[#allocation4 + $0x170] sm:$0xff] }
 0x5ef   :  { %2465 = vperm.xlu2 %3753, %v6490_v5   ;;  %2489 = vperm.xlu1 %3757, %v6490_v5  }
 0x5f0   :  { %3797 = vset.pattern.permute.xlu0 %v6464_v46 }
 0x5f1   :  { %v2381_v18 = vpop.permute.xlu1 %2380 }
 0x5f2   :  { %v2964_v52 = vmul.f32 %v4125_v29, %v2381_v18 }
 0x5f4   :  { %v3101_v54 = vadd.f32 %v3100_v40, %v2964_v52  ;;  %v4135_v40 = vld [vmem:[#allocation4 + $0x178] sm:$0xff]  ;;  %v2448_v52 = vpop.permute.xlu0 %2447 }
 0x5f6   :  { %v3102_v28 = vadd.f32 %v3101_v54, %v2965_v63  ;;  %v4136_v63 = vld [vmem:[#allocation4 + $0x180] sm:$0xff] }
 0x5f7   :  { %3756 = vset.pattern.permute.xlu2 %v6431_v2  ;;  %3759 = vset.pattern.permute.xlu1 %v6444_v15  ;;  %v2975_v54 = vmul.f32 %v4136_v63, %v2448_v52  ;;  %v4145_v52 = vld [vmem:[#allocation4 + $0x1c8] sm:$0xff] }
 0x5f8   :  { %2531 = vperm.xlu0 %3797, %v6490_v5  }
 0x5f9   :  { %v2393_v62 = vpop.permute.xlu2 %2392 }
 0x5fa   :  { %v2966_v30 = vmul.f32 %v4127_v32, %v2393_v62  ;;  %v4137_v62 = vld [vmem:[#allocation4 + $0x188] sm:$0xff] }
 0x5fc   :  { %v3103_v61 = vadd.f32 %v3102_v28, %v2966_v30 }
 0x5ff   :  { %2483 = vperm.xlu2 %3756, %v6490_v5   ;;  %2501 = vperm.xlu1 %3759, %v6490_v5  }
 0x600   :  { %3800 = vset.pattern.permute.xlu0 %v6457_v60 }
 0x601   :  { %v2399_v47 = vpop.permute.xlu1 %2398 }
 0x602   :  { %v2967_v58 = vmul.f32 %v4128_v8, %v2399_v47 }
 0x604   :  { %v3104_v9 = vadd.f32 %v3103_v61, %v2967_v58 }
 0x607   :  { %3758 = vset.pattern.permute.xlu2 %v6413_v1  ;;  %3762 = vset.pattern.permute.xlu1 %v6447_v41 }
 0x608   :  { %2537 = vperm.xlu0 %3800, %v6490_v5  }
 0x609   :  { %v2405_v42 = vpop.permute.xlu2 %2404 }
 0x60a   :  { %v2968_v20 = vmul.f32 %v4129_v57, %v2405_v42 }
 0x60c   :  { %v3105_v37 = vadd.f32 %v3104_v9, %v2968_v20  ;;  %v4139_v20 = vld [vmem:[#allocation4 + $0x198] sm:$0xff] }
 0x60f   :  { %2495 = vperm.xlu2 %3758, %v6490_v5   ;;  %2519 = vperm.xlu1 %3762, %v6490_v5  }
 0x610   :  { %2731 = vperm.xlu0 %3800, %v6534_v12  }
 0x611   :  { %v2411_v55 = vpop.permute.xlu1 %2410 }
 0x612   :  { %v2969_v39 = vmul.f32 %v4130_v43, %v2411_v55  ;;  %v2478_v55 = vpop.permute.xlu0 %2477 }
 0x614   :  { %v3106_v56 = vadd.f32 %v3105_v37, %v2969_v39  ;;  %v4140_v39 = vld [vmem:[#allocation4 + $0x1a0] sm:$0xff] }
 0x616   :  { %v3107_v4 = vadd.f32 %v3106_v56, %v2970_v34  ;;  %v2980_v34 = vmul.f32 %v4141_v51, %v2478_v55  ;;  %v4150_v55 = vld [vmem:[#allocation4 + $0x208] sm:$0xff] }
 0x617   :  { %3761 = vset.pattern.permute.xlu2 %v6454_v24  ;;  %3764 = vset.pattern.permute.xlu1 %v6391_v33 }
 0x618   :  { %2925 = vperm.xlu0 %3800, %v6525_v23  }
 0x619   :  { %v2423_v36 = vpop.permute.xlu2 %2422 }
 0x61a   :  { %v2971_v59 = vmul.f32 %v4132_v31, %v2423_v36 }
 0x61c   :  { %v3108_v11 = vadd.f32 %v3107_v4, %v2971_v59  ;;  %v2508_v4 = vpop.permute.xlu0 %2507  ;;  %v4142_v59 = vld [vmem:[#allocation4 + $0x1b0] sm:$0xff] }
 0x61f   :  { %2513 = vperm.xlu2 %3761, %v6490_v5   ;;  %2544 = vperm.xlu1 %3764, %v6511_v21  }
 0x621   :  { %v2429_v16 = vpop.permute.xlu1 %2428 }
 0x622   :  { %v2972_v19 = vmul.f32 %v4133_v38, %v2429_v16 }
 0x624   :  { %v3109_v7 = vadd.f32 %v3108_v11, %v2972_v19  ;;  %v2551_v38 = vpop.permute.xlu0 %2550 }
 0x627   :  { %3763 = vset.pattern.permute.xlu2 %v6425_v26  ;;  %3767 = vset.pattern.permute.xlu1 %v6395_v45 }
 0x629   :  { %v2435_v44 = vpop.permute.xlu2 %2434 }
 0x62a   :  { %v2973_v53 = vmul.f32 %v4134_v48, %v2435_v44 }
 0x62c   :  { %v3110_v49 = vadd.f32 %v3109_v7, %v2973_v53  ;;  %v4143_v7 = vld [vmem:[#allocation4 + $0x1b8] sm:$0xff]  ;;  %v6623_v53 = vpop.permute.xlu0 %2744 }
 0x62f   :  { %2525 = vperm.xlu2 %3763, %v6490_v5   ;;  %2647 = vperm.xlu1 %3767, %v6534_v12  }
 0x631   :  { %v2441_v3 = vpop.permute.xlu1 %2440 }
 0x632   :  { %v2974_v14 = vmul.f32 %v4135_v40, %v2441_v3  ;;  %v4144_v3 = vld [vmem:[#allocation4 + $0x1c0] sm:$0xff] }
 0x634   :  { %v3111_v18 = vadd.f32 %v3110_v49, %v2974_v14 }
 0x636   :  { %v3112_v29 = vrot.slane %v3111_v18, 4 }
 0x637   :  { %3766 = vset.pattern.permute.xlu2 %v6391_v33  ;;  %3769 = vset.pattern.permute.xlu1 %v6391_v33  ;;  %v4138_v33 = vld [vmem:[#allocation4 + $0x190] sm:$0xff] }
 0x638   :  { %v3113_v0 = vadd.f32 %v3112_v29, %v3111_v18  ;;  %v6629_v18 = vpop.permute.xlu0 %2841 }
 0x639   :  { %v2454_v45 = vpop.permute.xlu2 %2453 }
 0x63a   :  { %v3114_v28 = vrot.slane %v3113_v0, 2  ;;  %v2976_v32 = vmul.f32 %v4137_v62, %v2454_v45  ;;  %v4146_v45 = vld [vmem:[#allocation4 + $0x1d0] sm:$0xff] }
 0x63b   :  { %v2985_v63 = vmul.f32 %v4146_v45, %v2508_v4  ;;  %v4157_v45 = vld [vmem:[#allocation4 + $0x300] sm:$0xff] }
 0x63c   :  { %v3115_v5 = vadd.f32 %v3114_v28, %v3113_v0  ;;  %v3118_v30 = vadd.f32 %v2976_v32, %v2975_v54 }
 0x63e   :  { %v3116_v61 = vrot.slane %v3115_v5, 1 }
 0x63f   :  { %2641 = vperm.xlu2 %3766, %v6534_v12   ;;  %2738 = vperm.xlu1 %3769, %v6519_v6  }
 0x640   :  { %v3117_v47 = vadd.f32 %v3116_v61, %v3115_v5  ;;  %v6633_v62 = vpop.permute.xlu0 %2659  ;;  %v4147_v5 = vld [vmem:[#allocation4 + $0x1d8] sm:$0xff] }
 0x641   :  { %v2460_v8 = vpop.permute.xlu1 %2459 }
 0x642   :  { %v6613_v58 = vsel %vm2127_vm0, %v3117_v47, %v6575_v10  ;;  %v2977_v9 = vmul.f32 %v4138_v33, %v2460_v8  ;;  %v4148_v47 = vld [vmem:[#allocation4 + $0x1e0] sm:$0xff] }
 0x644   :  { %v3119_v42 = vadd.f32 %v3118_v30, %v2977_v9 }
 0x647   :  { %3768 = vset.pattern.permute.xlu2 %v6398_v27  ;;  %2835 = vperm.xlu1 %3769, %v6525_v23  }
 0x648   :  { %v6637_v33 = vpop.permute.xlu0 %2853 }
 0x649   :  { %v2466_v57 = vpop.permute.xlu2 %2465 }
 0x64a   :  { %v2978_v37 = vmul.f32 %v4139_v20, %v2466_v57  ;;  %v4149_v57 = vld [vmem:[#allocation4 + $0x1e8] sm:$0xff] }
 0x64c   :  { %v3120_v22 = vadd.f32 %v3119_v42, %v2978_v37 }
 0x64f   :  { %2556 = vperm.xlu2 %3768, %v6511_v21   ;;  %3771 = vset.pattern.permute.xlu1 %v6398_v27 }
 0x650   :  { %v6641_v37 = vpop.permute.xlu0 %2671 }
 0x651   :  { %v2472_v43 = vpop.permute.xlu1 %2471 }
 0x652   :  { %v2979_v10 = vmul.f32 %v4140_v39, %v2472_v43  ;;  %v2992_v43 = vmul.f32 %v4150_v55, %v2551_v38  ;;  %v4151_v39 = vld [vmem:[#allocation4 + $0x200] sm:$0xff] }
 0x654   :  { %v3121_v56 = vadd.f32 %v3120_v22, %v2979_v10 }
 0x656   :  { %v3122_v36 = vadd.f32 %v3121_v56, %v2980_v34 }
 0x657   :  { %2653 = vperm.xlu2 %3768, %v6534_v12   ;;  %2750 = vperm.xlu1 %3771, %v6519_v6  }
 0x658   :  { %v6647_v34 = vpop.permute.xlu0 %2865 }
 0x659   :  { %v2484_v31 = vpop.permute.xlu2 %2483 }
 0x65a   :  { %v2981_v11 = vmul.f32 %v4142_v59, %v2484_v31  ;;  %v4152_v31 = vld [vmem:[#allocation4 + $0x280] sm:$0xff] }
 0x65c   :  { %v3123_v16 = vadd.f32 %v3122_v36, %v2981_v11  ;;  %v4153_v11 = vld [vmem:[#allocation4 + $0x288] sm:$0xff] }
 0x65f   :  { %3770 = vset.pattern.permute.xlu2 %v6407_v25  ;;  %3774 = vset.pattern.permute.xlu1 %v6419_v17 }
 0x660   :  { %v6651_v56 = vpop.permute.xlu0 %2683 }
 0x661   :  { %v2490_v19 = vpop.permute.xlu1 %2489 }
 0x662   :  { %v2982_v44 = vmul.f32 %v4143_v7, %v2490_v19 }
 0x664   :  { %v3124_v48 = vadd.f32 %v3123_v16, %v2982_v44  ;;  %v4154_v44 = vld [vmem:[#allocation4 + $0x210] sm:$0xff] }
 0x667   :  { %2562 = vperm.xlu2 %3770, %v6511_v21   ;;  %2568 = vperm.xlu1 %3774, %v6511_v21  }
 0x668   :  { %v6655_v19 = vpop.permute.xlu0 %2877 }
 0x669   :  { %v2496_v49 = vpop.permute.xlu2 %2495 }
 0x66a   :  { %v2983_v40 = vmul.f32 %v4144_v3, %v2496_v49 }
 0x66c   :  { %v3125_v14 = vadd.f32 %v3124_v48, %v2983_v40 }
 0x66f   :  { %3773 = vset.pattern.permute.xlu2 %v6398_v27  ;;  %2665 = vperm.xlu1 %3774, %v6534_v12  }
 0x670   :  { %v6659_v3 = vpop.permute.xlu0 %2695 }
 0x671   :  { %v2502_v29 = vpop.permute.xlu1 %2501 }
 0x672   :  { %v2984_v0 = vmul.f32 %v4145_v52, %v2502_v29  ;;  %v4156_v52 = vld [vmem:[#allocation4 + $0x290] sm:$0xff] }
 0x674   :  { %v3126_v54 = vadd.f32 %v3125_v14, %v2984_v0  ;;  %v4155_v14 = vld [vmem:[#allocation4 + $0x308] sm:$0xff] }
 0x675   :  { %v3024_v29 = vmul.f32 %v4155_v14, %v6623_v53 }
 0x676   :  { %v3127_v28 = vadd.f32 %v3126_v54, %v2985_v63 }
 0x677   :  { %2847 = vperm.xlu2 %3773, %v6525_v23   ;;  %2762 = vperm.xlu1 %3774, %v6519_v6  }
 0x679   :  { %v2514_v32 = vpop.permute.xlu2 %2513 }
 0x67a   :  { %v2986_v27 = vmul.f32 %v4147_v5, %v2514_v32  ;;  %v6666_v32 = vpop.permute.xlu0 %2889  ;;  %v4158_v5 = vld [vmem:[#allocation4 + $0x388] sm:$0xff] }
 0x67c   :  { %v3128_v30 = vadd.f32 %v3127_v28, %v2986_v27  ;;  %v3040_v27 = vmul.f32 %v4158_v5, %v6629_v18 }
 0x67f   :  { %3775 = vset.pattern.permute.xlu2 %v6407_v25  ;;  %3779 = vset.pattern.permute.xlu1 %v6431_v2 }
 0x681   :  { %v2520_v61 = vpop.permute.xlu1 %2519 }
 0x682   :  { %v2987_v8 = vmul.f32 %v4148_v47, %v2520_v61  ;;  %v6671_v53 = vpop.permute.xlu0 %2707 }
 0x684   :  { %v3129_v9 = vadd.f32 %v3128_v30, %v2987_v8  ;;  %v4159_v30 = vld [vmem:[#allocation4 + $0x380] sm:$0xff] }
 0x687   :  { %2756 = vperm.xlu2 %3775, %v6519_v6   ;;  %2580 = vperm.xlu1 %3779, %v6511_v21  }
 0x689   :  { %v2526_v42 = vpop.permute.xlu2 %2525 }
 0x68a   :  { %v2988_v20 = vmul.f32 %v4149_v57, %v2526_v42  ;;  %v4161_v57 = vld [vmem:[#allocation4 + $0x218] sm:$0xff] }
 0x68c   :  { %v6643_v22 = vadd.f32 %v3129_v9, %v2988_v20  ;;  %v4160_v9 = vld [vmem:[#allocation4 + $0x298] sm:$0xff] }
 0x68d   :  { %v3010_v42 = vmul.f32 %v4160_v9, %v6633_v62  ;;  %v4163_v62 = vld [vmem:[#allocation4 + $0x390] sm:$0xff]  ;;  %v4171_v9 = vld [vmem:[#allocation4 + $0x320] sm:$0xff] }
 0x68f   :  { %3776 = vset.pattern.permute.xlu2 %v6410_v50  ;;  %2677 = vperm.xlu1 %3779, %v6534_v12  }
 0x691   :  { %v2545_v25 = vpop.permute.xlu1 %2544 }
 0x692   :  { %v2991_v10 = vmul.f32 %v4151_v39, %v2545_v25 }
 0x694   :  { %v3139_v51 = vadd.f32 %v2992_v43, %v2991_v10  ;;  %v4162_v43 = vld [vmem:[#allocation4 + $0x310] sm:$0xff]  ;;  %v6676_v10 = vpop.permute.xlu0 %2901 }
 0x697   :  { %2574 = vperm.xlu2 %3776, %v6511_v21   ;;  %2774 = vperm.xlu1 %3779, %v6519_v6  }
 0x699   :  { %v2642_v4 = vpop.permute.xlu2 %2641 }
 0x69a   :  { %v3007_v59 = vmul.f32 %v4152_v31, %v2642_v4 }
 0x69c   :  { %v2532_v31 = vpop.permute.xlu0 %2531 }
 0x69f   :  { %3778 = vset.pattern.permute.xlu2 %v6419_v17  ;;  %3784 = vset.pattern.permute.xlu1 %v6413_v1 }
 0x6a1   :  { %v2648_v36 = vpop.permute.xlu1 %2647 }
 0x6a2   :  { %v3008_v16 = vmul.f32 %v4153_v11, %v2648_v36 }
 0x6a4   :  { %v3160_v38 = vadd.f32 %v3008_v16, %v3007_v59  ;;  %v4164_v16 = vld [vmem:[#allocation4 + $0x1f0] sm:$0xff] }
 0x6a7   :  { %2859 = vperm.xlu2 %3778, %v6525_v23   ;;  %2592 = vperm.xlu1 %3784, %v6511_v21  }
 0x6a9   :  { %v2557_v7 = vpop.permute.xlu2 %2556 }
 0x6aa   :  { %v2993_v48 = vmul.f32 %v4154_v44, %v2557_v7  ;;  %v4165_v7 = vld [vmem:[#allocation4 + $0x220] sm:$0xff] }
 0x6ac   :  { %v3140_v49 = vadd.f32 %v3139_v51, %v2993_v48  ;;  %v2538_v48 = vpop.permute.xlu0 %2537 }
 0x6af   :  { %3780 = vset.pattern.permute.xlu2 %v6410_v50  ;;  %2689 = vperm.xlu1 %3784, %v6534_v12  }
 0x6b1   :  { %v2654_v17 = vpop.permute.xlu2 %2653  ;;  %v2739_v40 = vpop.permute.xlu1 %2738 }
 0x6b2   :  { %v3009_v0 = vmul.f32 %v4156_v52, %v2654_v17  ;;  %v3023_v63 = vmul.f32 %v4157_v45, %v2739_v40  ;;  %v3239_v17 = vld [vmem:[#allocation15 + $0x78] sm:$0xff]  ;;  %v4166_v40 = vld [vmem:[#allocation4 + $0x1f8] sm:$0xff] }
 0x6b3   :  { %3292 = vmatpush.msrb.mxu3 %v3239_v17  ;;  %v2990_v14 = vmul.f32 %v4166_v40, %v2538_v48 }
 0x6b4   :  { %v3161_v54 = vadd.f32 %v3160_v38, %v3009_v0  ;;  %v3181_v28 = vadd.f32 %v3024_v29, %v3023_v63  ;;  %v2989_v38 = vmul.f32 %v4164_v16, %v2532_v31  ;;  %v4167_v29 = vld [vmem:[#allocation4 + $0x398] sm:$0xff] }
 0x6b5   :  { %v3042_v52 = vmul.f32 %v4167_v29, %v6637_v33 }
 0x6b6   :  { %v3162_v55 = vadd.f32 %v3161_v54, %v3010_v42  ;;  %v4168_v54 = vld [vmem:[#allocation4 + $0x318] sm:$0xff] }
 0x6b7   :  { %2768 = vperm.xlu2 %3780, %v6519_v6   ;;  %2786 = vperm.xlu1 %3784, %v6519_v6  }
 0x6b9   :  { %v2836_v50 = vpop.permute.xlu1 %2835 }
 0x6ba   :  { %v3039_v61 = vmul.f32 %v4159_v30, %v2836_v50  ;;  %v4169_v50 = vld [vmem:[#allocation4 + $0x2a0] sm:$0xff] }
 0x6bc   :  { %v3202_v47 = vadd.f32 %v3040_v27, %v3039_v61  ;;  %v4170_v27 = vld [vmem:[#allocation4 + $0x2a8] sm:$0xff] }
 0x6bd   :  { %v3012_v30 = vmul.f32 %v4170_v27, %v6641_v37 }
 0x6bf   :  { %3781 = vset.pattern.permute.xlu2 %v6422_v35  ;;  %3789 = vset.pattern.permute.xlu1 %v6434_v13 }
 0x6c1   :  { %v2563_v8 = vpop.permute.xlu2 %2562 }
 0x6c2   :  { %v2994_v20 = vmul.f32 %v4161_v57, %v2563_v8  ;;  %v3238_v57 = vld [vmem:[#allocation15 + $0x70] sm:$0xff] }
 0x6c3   :  { %3293 = vmatpush.msrb.mxu3 %v3238_v57 }
 0x6c4   :  { %v3141_v25 = vadd.f32 %v3140_v49, %v2994_v20  ;;  %v3131_v49 = vadd.f32 %v6643_v22, %v2989_v38 }
 0x6c6   :  { %v3132_v0 = vadd.f32 %v3131_v49, %v2990_v14  ;;  %v4175_v49 = vld [vmem:[#allocation4 + $0x2b0] sm:$0xff] }
 0x6c7   :  { %2586 = vperm.xlu2 %3781, %v6511_v21   ;;  %2604 = vperm.xlu1 %3789, %v6511_v21   ;;  %v3255_v14 = vld [vmem:[#allocation16 + $0x78] sm:$0xff] }
 0x6c8   :  { %v3133_v61 = vrot.slane %v3132_v0, 4  ;;  %3256 = vmatpush.msrb.mxu2 %v3255_v14 }
 0x6c9   :  { %v2751_v18 = vpop.permute.xlu1 %2750 }
 0x6ca   :  { %v3025_v39 = vmul.f32 %v4162_v43, %v2751_v18 }
 0x6cc   :  { %v3182_v51 = vadd.f32 %v3181_v28, %v3025_v39 }
 0x6cf   :  { %3783 = vset.pattern.permute.xlu2 %v6431_v2  ;;  %2701 = vperm.xlu1 %3789, %v6534_v12  }
 0x6d1   :  { %v2848_v4 = vpop.permute.xlu2 %2847 }
 0x6d2   :  { %v3041_v36 = vmul.f32 %v4163_v62, %v2848_v4 }
 0x6d4   :  { %v3203_v59 = vadd.f32 %v3202_v47, %v3041_v36  ;;  %v4173_v36 = vld [vmem:[#allocation4 + $0x230] sm:$0xff] }
 0x6d6   :  { %v3204_v22 = vadd.f32 %v3203_v59, %v3042_v52  ;;  %v3237_v59 = vld [vmem:[#allocation15 + $0x68] sm:$0xff]  ;;  %v4176_v52 = vld [vmem:[#allocation4 + $0x328] sm:$0xff] }
 0x6d7   :  { %2871 = vperm.xlu2 %3783, %v6525_v23   ;;  %2798 = vperm.xlu1 %3789, %v6519_v6  }
 0x6d8   :  { %3294 = vmatpush.msrb.mxu3 %v3237_v59  ;;  %v4184_v59 = vld [vmem:[#allocation4 + $0x338] sm:$0xff] }
 0x6d9   :  { %v2569_v11 = vpop.permute.xlu1 %2568 }
 0x6da   :  { %v2995_v44 = vmul.f32 %v4165_v7, %v2569_v11 }
 0x6dc   :  { %v3142_v2 = vadd.f32 %v3141_v25, %v2995_v44  ;;  %v4174_v44 = vld [vmem:[#allocation4 + $0x3a0] sm:$0xff] }
 0x6df   :  { %3785 = vset.pattern.permute.xlu2 %v6422_v35  ;;  %3794 = vset.pattern.permute.xlu1 %v6447_v41  ;;  %v3134_v41 = vadd.f32 %v3133_v61, %v3132_v0 }
 0x6e1   :  { %v2757_v45 = vpop.permute.xlu2 %2756  ;;  %v2666_v63 = vpop.permute.xlu1 %2665  ;;  %v3135_v20 = vrot.slane %v3134_v41, 2 }
 0x6e2   :  { %v3026_v28 = vmul.f32 %v4168_v54, %v2757_v45  ;;  %v3011_v5 = vmul.f32 %v4169_v50, %v2666_v63  ;;  %v3254_v63 = vld [vmem:[#allocation16 + $0x70] sm:$0xff]  ;;  %v4177_v50 = vld [vmem:[#allocation4 + $0x2b8] sm:$0xff] }
 0x6e3   :  { %v3136_v37 = vadd.f32 %v3135_v20, %v3134_v41  ;;  %3257 = vmatpush.msrb.mxu2 %v3254_v63  ;;  %v3252_v20 = vld [vmem:[#allocation16 + $0x60] sm:$0xff] }
 0x6e4   :  { %v3183_v47 = vadd.f32 %v3182_v51, %v3026_v28  ;;  %v3163_v8 = vadd.f32 %v3162_v55, %v3011_v5  ;;  %v4172_v55 = vld [vmem:[#allocation4 + $0x228] sm:$0xff]  ;;  %v3014_v5 = vmul.f32 %v4177_v50, %v6651_v56 }
 0x6e5   :  { %v3137_v39 = vrot.slane %v3136_v37, 1  ;;  %v3235_v28 = vld [vmem:[#allocation15 + $0x58] sm:$0xff]  ;;  %v3234_v56 = vld [vmem:[#allocation15 + $0x50] sm:$0xff] }
 0x6e6   :  { %v3164_v35 = vadd.f32 %v3163_v8, %v3012_v30 }
 0x6e7   :  { %2780 = vperm.xlu2 %3785, %v6519_v6   ;;  %2616 = vperm.xlu1 %3794, %v6511_v21   ;;  %v3138_v4 = vadd.f32 %v3137_v39, %v3136_v37  ;;  %v4183_v39 = vld [vmem:[#allocation4 + $0x3b0] sm:$0xff] }
 0x6e9   :  { %v2763_v33 = vpop.permute.xlu1 %2762  ;;  %v6695_v16 = vsel %vm2129_vm1, %v3138_v4, %v6613_v58  ;;  %v3236_v58 = vld [vmem:[#allocation15 + $0x60] sm:$0xff] }
 0x6ea   :  { %v3027_v42 = vmul.f32 %v4171_v9, %v2763_v33  ;;  %3295 = vmatpush.msrb.mxu3 %v3236_v58 }
 0x6ec   :  { %v3184_v25 = vadd.f32 %v3183_v47, %v3027_v42  ;;  %3296 = vmatpush.msrb.mxu3 %v3235_v28  ;;  %v4179_v47 = vld [vmem:[#allocation4 + $0x238] sm:$0xff] }
 0x6ee   :  { %3297 = vmatpush.msrb.mxu3 %v3234_v56 }
 0x6ef   :  { %3786 = vset.pattern.permute.xlu2 %v6444_v15  ;;  %2713 = vperm.xlu1 %3794, %v6534_v12  }
 0x6f1   :  { %v2575_v18 = vpop.permute.xlu2 %2574 }
 0x6f2   :  { %v2996_v43 = vmul.f32 %v4172_v55, %v2575_v18  ;;  %v4182_v18 = vld [vmem:[#allocation4 + $0x240] sm:$0xff] }
 0x6f4   :  { %v3143_v51 = vadd.f32 %v3142_v2, %v2996_v43 }
 0x6f7   :  { %2598 = vperm.xlu2 %3786, %v6511_v21   ;;  %2810 = vperm.xlu1 %3794, %v6519_v6  }
 0x6f9   :  { %v2581_v62 = vpop.permute.xlu1 %2580 }
 0x6fa   :  { %v2997_v31 = vmul.f32 %v4173_v36, %v2581_v62 }
 0x6fc   :  { %v3144_v11 = vadd.f32 %v3143_v51, %v2997_v31  ;;  %v3233_v31 = vld [vmem:[#allocation15 + $0x48] sm:$0xff] }
 0x6fd   :  { %3298 = vmatpush.msrb.mxu3 %v3233_v31 }
 0x6ff   :  { %3788 = vset.pattern.permute.xlu2 %v6413_v1  ;;  %2907 = vperm.xlu1 %3794, %v6525_v23  }
 0x701   :  { %v2860_v38 = vpop.permute.xlu2 %2859  ;;  %v2678_v7 = vpop.permute.xlu1 %2677 }
 0x702   :  { %v3043_v48 = vmul.f32 %v4174_v44, %v2860_v38  ;;  %v3013_v2 = vmul.f32 %v4175_v49, %v2678_v7  ;;  %v3250_v7 = vld [vmem:[#allocation16 + $0x50] sm:$0xff] }
 0x703   :  { %v4185_v49 = vld [vmem:[#allocation4 + $0x340] sm:$0xff] }
 0x704   :  { %v3205_v17 = vadd.f32 %v3204_v22, %v3043_v48  ;;  %v3165_v40 = vadd.f32 %v3164_v35, %v3013_v2  ;;  %v4178_v22 = vld [vmem:[#allocation4 + $0x330] sm:$0xff]  ;;  %v4180_v35 = vld [vmem:[#allocation4 + $0x2c0] sm:$0xff] }
 0x705   :  { %v3232_v48 = vld [vmem:[#allocation15 + $0x40] sm:$0xff] }
 0x706   :  { %v3166_v33 = vadd.f32 %v3165_v40, %v3014_v5  ;;  %3299 = vmatpush.msrb.mxu3 %v3232_v48  ;;  %v4186_v40 = vld [vmem:[#allocation4 + $0x248] sm:$0xff] }
 0x707   :  { %2883 = vperm.xlu2 %3788, %v6525_v23   ;;  %3799 = vset.pattern.permute.xlu1 %v6425_v26  ;;  %v3366_v48 = vld [vmem:[#allocation16 + $0xb8] sm:$0xff] }
 0x709   :  { %v2775_v1 = vpop.permute.xlu1 %2774 }
 0x70a   :  { %v3029_v27 = vmul.f32 %v4178_v22, %v2775_v1  ;;  %v3249_v1 = vld [vmem:[#allocation16 + $0x48] sm:$0xff]  ;;  %v3248_v22 = vld [vmem:[#allocation16 + $0x40] sm:$0xff] }
 0x70f   :  { %3790 = vset.pattern.permute.xlu2 %v6444_v15  ;;  %2816 = vperm.xlu1 %3799, %v6519_v6   ;;  %v3253_v15 = vld [vmem:[#allocation16 + $0x68] sm:$0xff] }
 0x710   :  { %3258 = vmatpush.msrb.mxu2 %v3253_v15 }
 0x711   :  { %v2769_v29 = vpop.permute.xlu2 %2768 }
 0x712   :  { %v3028_v0 = vmul.f32 %v4176_v52, %v2769_v29  ;;  %3259 = vmatpush.msrb.mxu2 %v3252_v20  ;;  %v3231_v29 = vld [vmem:[#allocation15 + $0x38] sm:$0xff]  ;;  %v4187_v52 = vld [vmem:[#allocation4 + $0x3b8] sm:$0xff] }
 0x713   :  { %3300 = vmatpush.msrb.mxu3 %v3231_v29  ;;  %v3374_v20 = vld [vmem:[#allocation16 + $0xf8] sm:$0xff] }
 0x714   :  { %v3185_v45 = vadd.f32 %v3184_v25, %v3028_v0  ;;  %v4181_v25 = vld [vmem:[#allocation4 + $0x3a8] sm:$0xff]  ;;  %v4188_v0 = vld [vmem:[#allocation4 + $0x250] sm:$0xff]  ;;  %3375 = vmatpush.msra.mxu1 %v3374_v20  ;;  %v3360_v20 = vld [vmem:[#allocation16 + $0x88] sm:$0xff] }
 0x715   :  { %v3044_v37 = vmul.f32 %v4181_v25, %v6647_v34 }
 0x716   :  { %v3186_v9 = vadd.f32 %v3185_v45, %v3029_v27  ;;  %v3230_v27 = vld [vmem:[#allocation15 + $0x30] sm:$0xff] }
 0x717   :  { %2792 = vperm.xlu2 %3790, %v6519_v6   ;;  %2913 = vperm.xlu1 %3799, %v6525_v23   ;;  %v3206_v4 = vadd.f32 %v3205_v17, %v3044_v37  ;;  %v3243_v37 = vld [vmem:[#allocation16 + $0x18] sm:$0xff] }
 0x718   :  { %3301 = vmatpush.msrb.mxu3 %v3230_v27  ;;  %v3362_v27 = vld [vmem:[#allocation16 + $0x98] sm:$0xff] }
 0x719   :  { %v2593_v54 = vpop.permute.xlu1 %2592 }
 0x71a   :  { %v2999_v55 = vmul.f32 %v4182_v18, %v2593_v54  ;;  %v4189_v54 = vld [vmem:[#allocation4 + $0x3c0] sm:$0xff]  ;;  %v3371_v18 = vld [vmem:[#allocation16 + $0xe0] sm:$0xff] }
 0x71f   :  { %3791 = vset.pattern.permute.xlu2 %v6454_v24  ;;  %3802 = vset.pattern.permute.xlu1 %v6464_v46 }
 0x721   :  { %v2587_v30 = vpop.permute.xlu2 %2586  ;;  %v2690_v61 = vpop.permute.xlu1 %2689 }
 0x722   :  { %v2998_v8 = vmul.f32 %v4179_v47, %v2587_v30  ;;  %v3015_v41 = vmul.f32 %v4180_v35, %v2690_v61  ;;  %v3247_v30 = vld [vmem:[#allocation16 + $0x38] sm:$0xff]  ;;  %v3229_v61 = vld [vmem:[#allocation15 + $0x28] sm:$0xff]  ;;  %v3246_v47 = vld [vmem:[#allocation16 + $0x30] sm:$0xff] }
 0x723   :  { %3302 = vmatpush.msrb.mxu3 %v3229_v61 }
 0x724   :  { %v3145_v42 = vadd.f32 %v3144_v11, %v2998_v8  ;;  %v6708_v57 = vadd.f32 %v3166_v33, %v3015_v41  ;;  %v3228_v33 = vld [vmem:[#allocation15 + $0x20] sm:$0xff] }
 0x725   :  { %3303 = vmatpush.msrb.mxu3 %v3228_v33  ;;  %v4199_v33 = vld [vmem:[#allocation4 + $0x2e8] sm:$0xff] }
 0x726   :  { %v3146_v62 = vadd.f32 %v3145_v42, %v2999_v55  ;;  %v3227_v42 = vld [vmem:[#allocation15 + $0x18] sm:$0xff] }
 0x727   :  { %2610 = vperm.xlu2 %3791, %v6511_v21   ;;  %2822 = vperm.xlu1 %3802, %v6519_v6   ;;  %v3370_v55 = vld [vmem:[#allocation16 + $0xd8] sm:$0xff] }
 0x728   :  { %3304 = vmatpush.msrb.mxu3 %v3227_v42  ;;  %v3241_v42 = vld [vmem:[#allocation16 + $0x8] sm:$0xff] }
 0x729   :  { %v2787_v44 = vpop.permute.xlu1 %2786 }
 0x72a   :  { %v3031_v2 = vmul.f32 %v4185_v49, %v2787_v44  ;;  %v3242_v44 = vld [vmem:[#allocation16 + $0x10] sm:$0xff]  ;;  %v4191_v49 = vld [vmem:[#allocation4 + $0x350] sm:$0xff] }
 0x72f   :  { %3793 = vset.pattern.permute.xlu2 %v6434_v13  ;;  %3804 = vset.pattern.permute.xlu1 %v6457_v60  ;;  %v3251_v13 = vld [vmem:[#allocation16 + $0x58] sm:$0xff] }
 0x730   :  { %3260 = vmatpush.msrb.mxu2 %v3251_v13 }
 0x731   :  { %v2872_v43 = vpop.permute.xlu2 %2871 }
 0x732   :  { %v3045_v51 = vmul.f32 %v4183_v39, %v2872_v43  ;;  %3261 = vmatpush.msrb.mxu2 %v3250_v7 }
 0x734   :  { %v3207_v36 = vadd.f32 %v3206_v4, %v3045_v51  ;;  %3262 = vmatpush.msrb.mxu2 %v3249_v1  ;;  %v3369_v51 = vld [vmem:[#allocation16 + $0xd0] sm:$0xff] }
 0x736   :  { %3263 = vmatpush.msrb.mxu2 %v3248_v22 }
 0x737   :  { %2895 = vperm.xlu2 %3793, %v6525_v23   ;;  %2828 = vperm.xlu1 %3804, %v6519_v6  }
 0x738   :  { %3264 = vmatpush.msrb.mxu2 %v3247_v30 }
 0x73a   :  { %3265 = vmatpush.msrb.mxu2 %v3246_v47 }
 0x73f   :  { %3795 = vset.pattern.permute.xlu2 %v6454_v24 }
 0x741   :  { %v2781_v34 = vpop.permute.xlu2 %2780 }
 0x742   :  { %v3030_v11 = vmul.f32 %v4184_v59, %v2781_v34  ;;  %v3368_v59 = vld [vmem:[#allocation16 + $0xc8] sm:$0xff] }
 0x744   :  { %v3187_v38 = vadd.f32 %v3186_v9, %v3030_v11  ;;  %v3244_v9 = vld [vmem:[#allocation16 + $0x20] sm:$0xff]  ;;  %v3226_v11 = vld [vmem:[#allocation15 + $0x10] sm:$0xff] }
 0x745   :  { %3305 = vmatpush.msrb.mxu3 %v3226_v11  ;;  %v2732_v11 = vpop.permute.xlu0 %2731 }
 0x746   :  { %v6720_v14 = vadd.f32 %v3187_v38, %v3031_v2  ;;  %v3367_v38 = vld [vmem:[#allocation16 + $0xc0] sm:$0xff] }
 0x747   :  { %2804 = vperm.xlu2 %3795, %v6519_v6   ;;  %v2605_v6 = vpop.permute.xlu1 %2604 }
 0x748   :  { %v3001_v45 = vmul.f32 %v4188_v0, %v2605_v6  ;;  %v4194_v6 = vld [vmem:[#allocation4 + $0x2d0] sm:$0xff] }
 0x74f   :  { %3796 = vset.pattern.permute.xlu2 %v6425_v26  ;;  %v3046_v26 = vmul.f32 %v4187_v52, %v6655_v19  ;;  %v6733_v19 = vpop.permute.xlu1 %2701 }
 0x750   :  { %v3017_v29 = vmul.f32 %v4194_v6, %v6733_v19  ;;  %v4197_v19 = vld [vmem:[#allocation4 + $0x2e0] sm:$0xff]  ;;  %v4204_v6 = vld [vmem:[#allocation4 + $0x2f8] sm:$0xff] }
 0x751   :  { %v2599_v17 = vpop.permute.xlu2 %2598  ;;  %v3208_v15 = vadd.f32 %v3207_v36, %v3046_v26  ;;  %v4190_v36 = vld [vmem:[#allocation4 + $0x348] sm:$0xff] }
 0x752   :  { %v3000_v24 = vmul.f32 %v4186_v40, %v2599_v17  ;;  %v4192_v17 = vld [vmem:[#allocation4 + $0x358] sm:$0xff] }
 0x754   :  { %v3147_v58 = vadd.f32 %v3146_v62, %v3000_v24  ;;  %v3365_v24 = vld [vmem:[#allocation16 + $0xb0] sm:$0xff] }
 0x756   :  { %v6725_v50 = vadd.f32 %v3147_v58, %v3001_v45  ;;  %v4193_v58 = vld [vmem:[#allocation4 + $0x2c8] sm:$0xff] }
 0x757   :  { %2622 = vperm.xlu2 %3796, %v6511_v21   ;;  %v2799_v8 = vpop.permute.xlu1 %2798  ;;  %v3016_v1 = vmul.f32 %v4193_v58, %v6659_v3  ;;  %v4196_v3 = vld [vmem:[#allocation4 + $0x2d8] sm:$0xff] }
 0x758   :  { %v3033_v2 = vmul.f32 %v4191_v49, %v2799_v8  ;;  %v3018_v30 = vmul.f32 %v4196_v3, %v6671_v53  ;;  %v3240_v53 = vld [vmem:[#allocation16] sm:$0xff]  ;;  %v4206_v3 = vld [vmem:[#allocation4 + $0x268] sm:$0xff] }
 0x759   :  { %v3168_v26 = vadd.f32 %v6708_v57, %v3016_v1  ;;  %v3361_v57 = vld [vmem:[#allocation16 + $0x90] sm:$0xff] }
 0x75a   :  { %v3478_v1 = vld [vmem:[#allocation16 + $0x170] sm:$0xff] }
 0x75f   :  { %2719 = vperm.xlu2 %3796, %v6534_v12   ;;  %v6737_v35 = vpop.permute.xlu1 %2616 }
 0x761   :  { %v2884_v63 = vpop.permute.xlu2 %2883 }
 0x762   :  { %v3047_v28 = vmul.f32 %v4189_v54, %v2884_v63  ;;  %v3363_v54 = vld [vmem:[#allocation16 + $0xa0] sm:$0xff] }
 0x764   :  { %v6727_v5 = vadd.f32 %v3208_v15, %v3047_v28  ;;  %v3169_v28 = vadd.f32 %v3168_v26, %v3017_v29  ;;  %v4195_v15 = vld [vmem:[#allocation4 + $0x360] sm:$0xff]  ;;  %v3022_v29 = vmul.f32 %v4204_v6, %v2732_v11  ;;  %v6768_v11 = vld [vmem:[#allocation9] sm:$0xff] }
 0x766   :  { %v3170_v8 = vadd.f32 %v3169_v28, %v3018_v30 }
 0x767   :  { %3798 = vset.pattern.permute.xlu2 %v6464_v46 }
 0x76f   :  { %2628 = vperm.xlu2 %3798, %v6511_v21  }
 0x771   :  { %v2793_v41 = vpop.permute.xlu2 %2792 }
 0x772   :  { %v3032_v13 = vmul.f32 %v4190_v36, %v2793_v41  ;;  %v4198_v41 = vld [vmem:[#allocation4 + $0x368] sm:$0xff]  ;;  %v4201_v36 = vld [vmem:[#allocation4 + $0x370] sm:$0xff] }
 0x774   :  { %v3189_v7 = vadd.f32 %v6720_v14, %v3032_v13  ;;  %v3364_v14 = vld [vmem:[#allocation16 + $0xa8] sm:$0xff] }
 0x776   :  { %v3190_v52 = vadd.f32 %v3189_v7, %v3033_v2  ;;  %v4202_v7 = vld [vmem:[#allocation4 + $0x378] sm:$0xff]  ;;  %v3461_v2 = vld [vmem:[#allocation15 + $0x170] sm:$0xff] }
 0x777   :  { %2725 = vperm.xlu2 %3798, %v6534_v12   ;;  %v3245_v12 = vld [vmem:[#allocation16 + $0x28] sm:$0xff] }
 0x778   :  { %3266 = vmatpush.msrb.mxu2 %v3245_v12 }
 0x77a   :  { %3267 = vmatpush.msrb.mxu2 %v3244_v9 }
 0x77c   :  { %3268 = vmatpush.msrb.mxu2 %v3243_v37 }
 0x77e   :  { %3269 = vmatpush.msrb.mxu2 %v3242_v44 }
 0x77f   :  { %3801 = vset.pattern.permute.xlu2 %v6457_v60  ;;  %v6740_v60 = vpop.permute.xlu1 %2713 }
 0x780   :  { %v3019_v61 = vmul.f32 %v4197_v19, %v6740_v60  ;;  %3270 = vmatpush.msrb.mxu2 %v3241_v42 }
 0x781   :  { %v6742_v56 = vpop.permute.xlu2 %2610 }
 0x782   :  { %3271 = vmatpush.msrb.mxu2 %v3240_v53  ;;  %v3349_v53 = vld [vmem:[#allocation15 + $0xb8] sm:$0xff] }
 0x783   :  { %3272 = vmatmul.f32.vlgmr.msrb.gmra.mxu2 %v6768_v11 }
 0x787   :  { %2634 = vperm.xlu2 %3801, %v6511_v21   ;;  %v3373_v21 = vld [vmem:[#allocation16 + $0xf0] sm:$0xff] }
 0x788   :  { %3376 = vmatpush.msra.mxu1 %v3373_v21  ;;  %v3225_v21 = vld [vmem:[#allocation15 + $0x8] sm:$0xff] }
 0x789   :  { %3306 = vmatpush.msrb.mxu3 %v3225_v21 }
 0x78f   :  { %3803 = vset.pattern.permute.xlu2 %v6464_v46  ;;  %v2811_v46 = vpop.permute.xlu1 %2810 }
 0x790   :  { %v3035_v22 = vmul.f32 %v4195_v15, %v2811_v46  ;;  %v3171_v46 = vadd.f32 %v3170_v8, %v3019_v61  ;;  %v3352_v15 = vld [vmem:[#allocation15 + $0xd0] sm:$0xff]  ;;  %v4207_v8 = vld [vmem:[#allocation4 + $0x270] sm:$0xff] }
 0x791   :  { %v6744_v25 = vpop.permute.xlu2 %2895 }
 0x797   :  { %2919 = vperm.xlu2 %3803, %v6525_v23   ;;  %v3372_v23 = vld [vmem:[#allocation16 + $0xe8] sm:$0xff]  ;;  %v6746_v39 = vpop.permute.xlu1 %2907 }
 0x798   :  { %3377 = vmatpush.msra.mxu1 %v3372_v23 }
 0x79a   :  { %3378 = vmatpush.msra.mxu1 %v3371_v18  ;;  %v3357_v18 = vld [vmem:[#allocation15 + $0xf8] sm:$0xff] }
 0x79b   :  { %3395 = vmatpush.msra.mxu2 %v3357_v18  ;;  %v4209_v18 = vld [vmem:[#allocation4 + $0x3d0] sm:$0xff] }
 0x79c   :  { %3379 = vmatpush.msra.mxu1 %v3370_v55  ;;  %v4200_v55 = vld [vmem:[#allocation4 + $0x2f0] sm:$0xff] }
 0x79e   :  { %3380 = vmatpush.msra.mxu1 %v3369_v51  ;;  %v3359_v51 = vld [vmem:[#allocation16 + $0x80] sm:$0xff] }
 0x79f   :  { %v2817_v62 = vpop.permute.xlu1 %2816 }
 0x7a0   :  { %3381 = vmatpush.msra.mxu1 %v3368_v59  ;;  %v3036_v12 = vmul.f32 %v4198_v41, %v2817_v62  ;;  %v3356_v59 = vld [vmem:[#allocation15 + $0xf0] sm:$0xff] }
 0x7a1   :  { %v2805_v43 = vpop.permute.xlu2 %2804  ;;  %3396 = vmatpush.msra.mxu2 %v3356_v59  ;;  %v3473_v59 = vld [vmem:[#allocation16 + $0x148] sm:$0xff] }
 0x7a2   :  { %v3034_v40 = vmul.f32 %v4192_v17, %v2805_v43  ;;  %3382 = vmatpush.msra.mxu1 %v3367_v38  ;;  %v3224_v38 = vld [vmem:[#allocation15] sm:$0xff]  ;;  %v3355_v17 = vld [vmem:[#allocation15 + $0xe8] sm:$0xff] }
 0x7a3   :  { %3307 = vmatpush.msrb.mxu3 %v3224_v38  ;;  %3397 = vmatpush.msra.mxu2 %v3355_v17  ;;  %v3346_v17 = vld [vmem:[#allocation15 + $0xa0] sm:$0xff] }
 0x7a4   :  { %3383 = vmatpush.msra.mxu1 %v3366_v48  ;;  %v3191_v0 = vadd.f32 %v3190_v52, %v3034_v40  ;;  %v3479_v40 = vld [vmem:[#allocation16 + $0x178] sm:$0xff]  ;;  %v3460_v52 = vld [vmem:[#allocation15 + $0x168] sm:$0xff] }
 0x7a5   :  { %3480 = vmatpush.msra.mxu3 %v3479_v40  ;;  %v4211_v40 = vld [vmem:[#allocation4 + $0x3d8] sm:$0xff] }
 0x7a6   :  { %3384 = vmatpush.msra.mxu1 %v3365_v24  ;;  %v3192_v47 = vadd.f32 %v3191_v0, %v3035_v22  ;;  %v4203_v24 = vld [vmem:[#allocation4 + $0x258] sm:$0xff]  ;;  %v4205_v22 = vld [vmem:[#allocation4 + $0x260] sm:$0xff] }
 0x7a7   :  { %v6750_v34 = vpop.permute.xlu1 %2913  ;;  %v3002_v58 = vmul.f32 %v4203_v24, %v6742_v56  ;;  %3481 = vmatpush.msra.mxu3 %v3478_v1  ;;  %v3458_v56 = vld [vmem:[#allocation15 + $0x158] sm:$0xff]  ;;  %v3050_v24 = vmul.f32 %v4211_v40, %v6676_v10 }
 0x7a8   :  { %3385 = vmatpush.msra.mxu1 %v3364_v14  ;;  %v3193_v23 = vadd.f32 %v3192_v47, %v3036_v12  ;;  %v3354_v14 = vld [vmem:[#allocation15 + $0xe0] sm:$0xff]  ;;  %v3457_v47 = vld [vmem:[#allocation15 + $0x150] sm:$0xff]  ;;  %v3477_v12 = vld [vmem:[#allocation16 + $0x168] sm:$0xff] }
 0x7a9   :  { %v3149_v28 = vadd.f32 %v6725_v50, %v3002_v58  ;;  %3398 = vmatpush.msra.mxu2 %v3354_v14  ;;  %v3351_v50 = vld [vmem:[#allocation15 + $0xc8] sm:$0xff]  ;;  %3482 = vmatpush.msra.mxu3 %v3477_v12  ;;  %v3471_v1 = vld [vmem:[#allocation16 + $0x138] sm:$0xff] }
 0x7aa   :  { %3386 = vmatpush.msra.mxu1 %v3363_v54  ;;  %v3353_v54 = vld [vmem:[#allocation15 + $0xd8] sm:$0xff] }
 0x7ab   :  { %3399 = vmatpush.msra.mxu2 %v3353_v54  ;;  %v3345_v14 = vld [vmem:[#allocation15 + $0x98] sm:$0xff] }
 0x7ac   :  { %3387 = vmatpush.msra.mxu1 %v3362_v27  ;;  %v3003_v27 = vmul.f32 %v4205_v22, %v6737_v35  ;;  %v3476_v35 = vld [vmem:[#allocation16 + $0x160] sm:$0xff]  ;;  %v3450_v54 = vld [vmem:[#allocation15 + $0x118] sm:$0xff]  ;;  %v3469_v22 = vld [vmem:[#allocation16 + $0x128] sm:$0xff] }
 0x7ad   :  { %3400 = vmatpush.msra.mxu2 %v3352_v15  ;;  %3483 = vmatpush.msra.mxu3 %v3476_v35 }
 0x7ae   :  { %3388 = vmatpush.msra.mxu1 %v3361_v57  ;;  %v3150_v57 = vadd.f32 %v3149_v28, %v3003_v27  ;;  %v3344_v28 = vld [vmem:[#allocation15 + $0x90] sm:$0xff] }
 0x7af   :  { %v2823_v63 = vpop.permute.xlu1 %2822  ;;  %3401 = vmatpush.msra.mxu2 %v3351_v50  ;;  %v4213_v50 = vld [vmem:[#allocation4 + $0x3e8] sm:$0xff] }
 0x7b0   :  { %v3037_v62 = vmul.f32 %v4201_v36, %v2823_v63  ;;  %3389 = vmatpush.msra.mxu1 %v3360_v20  ;;  %v3459_v63 = vld [vmem:[#allocation15 + $0x160] sm:$0xff]  ;;  %v4208_v20 = vld [vmem:[#allocation4 + $0x3c8] sm:$0xff] }
 0x7b1   :  { %v6748_v4 = vpop.permute.xlu2 %2622  ;;  %v3048_v21 = vmul.f32 %v4208_v20, %v6666_v32  ;;  %v3474_v36 = vld [vmem:[#allocation16 + $0x150] sm:$0xff]  ;;  %v3447_v20 = vld [vmem:[#allocation15 + $0x100] sm:$0xff] }
 0x7b2   :  { %v3194_v48 = vadd.f32 %v3193_v23, %v3037_v62  ;;  %3390 = vmatpush.msra.mxu1 %v3359_v51  ;;  %v3004_v30 = vmul.f32 %v4206_v3, %v6748_v4  ;;  %v3475_v4 = vld [vmem:[#allocation16 + $0x158] sm:$0xff] }
 0x7b3   :  { %3484 = vmatpush.msra.mxu3 %v3475_v4  ;;  %v3454_v62 = vld [vmem:[#allocation15 + $0x138] sm:$0xff]  ;;  %v3210_v32 = vadd.f32 %v6727_v5, %v3048_v21  ;;  %v3452_v5 = vld [vmem:[#allocation15 + $0x128] sm:$0xff]  ;;  %3391 = vmatmul.f32.vlgmr.msra.gmra.mxu1 %v6768_v11 }
 0x7b4   :  { %v3151_v42 = vadd.f32 %v3150_v57, %v3004_v30  ;;  %v3449_v30 = vld [vmem:[#allocation15 + $0x110] sm:$0xff]  ;;  %v3468_v57 = vld [vmem:[#allocation16 + $0x120] sm:$0xff] }
 0x7b5   :  { %3485 = vmatpush.msra.mxu3 %v3474_v36  ;;  %v4214_v21 = vld [vmem:[#allocation4 + $0x3f0] sm:$0xff] }
 0x7b6   :  { %v3464_v36 = vld [vmem:[#allocation16 + $0x100] sm:$0xff] }
 0x7b7   :  { %v2829_v60 = vpop.permute.xlu1 %2828  ;;  %3486 = vmatpush.msra.mxu3 %v3473_v59 }
 0x7b8   :  { %v3038_v44 = vmul.f32 %v4202_v7, %v2829_v60  ;;  %v3049_v60 = vmul.f32 %v4209_v18, %v6744_v25  ;;  %v3453_v25 = vld [vmem:[#allocation15 + $0x130] sm:$0xff] }
 0x7b9   :  { %v2720_v31 = vpop.permute.xlu2 %2719 }
 0x7ba   :  { %v3020_v9 = vmul.f32 %v4199_v33, %v2720_v31  ;;  %v3462_v31 = vld [vmem:[#allocation15 + $0x178] sm:$0xff]  ;;  %v3195_v26 = vadd.f32 %v3194_v48, %v3038_v44  ;;  %v3456_v33 = vld [vmem:[#allocation15 + $0x148] sm:$0xff]  ;;  %v3211_v48 = vadd.f32 %v3210_v32, %v3049_v60 }
 0x7bb   :  { %3500 = vmatpush.msrb.mxu1 %v3462_v31  ;;  %v3347_v44 = vld [vmem:[#allocation15 + $0xa8] sm:$0xff] }
 0x7bc   :  { %v3172_v13 = vadd.f32 %v3171_v46, %v3020_v9  ;;  %v3196_v19 = vrot.slane %v3195_v26, 4  ;;  %v3350_v9 = vld [vmem:[#allocation15 + $0xc0] sm:$0xff] }
 0x7bd   :  { %3501 = vmatpush.msrb.mxu1 %v3461_v2  ;;  %3402 = vmatpush.msra.mxu2 %v3350_v9  ;;  %v3472_v2 = vld [vmem:[#allocation16 + $0x140] sm:$0xff]  ;;  %v2926_v9 = vpop.permute.xlu0 %2925 }
 0x7be   :  { %v3197_v46 = vadd.f32 %v3196_v19, %v3195_v26  ;;  %3487 = vmatpush.msra.mxu3 %v3472_v2  ;;  %v3212_v26 = vadd.f32 %v3211_v48, %v3050_v24  ;;  %v3343_v19 = vld [vmem:[#allocation15 + $0x88] sm:$0xff] }
 0x7bf   :  { %3502 = vmatpush.msrb.mxu1 %v3460_v52  ;;  %3403 = vmatpush.msra.mxu2 %v3349_v53  ;;  %v3451_v52 = vld [vmem:[#allocation15 + $0x120] sm:$0xff]  ;;  %v3811_v48 = vld [vmem:[%s6822_s11 + $0x1] ss:$0 sm:$0xff] }
 0x7c0   :  { %v3198_v38 = vrot.slane %v3197_v46, 2  ;;  %3488 = vmatpush.msra.mxu3 %v3471_v1  ;;  %v4215_v53 = vld [vmem:[#allocation4 + $0x3f8] sm:$0xff] }
 0x7c1   :  { %3503 = vmatpush.msrb.mxu1 %v3459_v63  ;;  %v3470_v63 = vld [vmem:[#allocation16 + $0x130] sm:$0xff]  ;;  %v3054_v18 = vmul.f32 %v4215_v53, %v2926_v9 }
 0x7c2   :  { %v3199_v6 = vadd.f32 %v3198_v38, %v3197_v46  ;;  %3489 = vmatpush.msra.mxu3 %v3470_v63  ;;  %v3551_v63 = vld [vmem:[#allocation18 + $0x60] sm:$0xff] }
 0x7c3   :  { %3504 = vmatpush.msrb.mxu1 %v3458_v56  ;;  %v4212_v56 = vld [vmem:[#allocation4 + $0x3e0] sm:$0xff] }
 0x7c4   :  { %v3051_v10 = vmul.f32 %v4212_v56, %v6746_v39  ;;  %v3200_v27 = vrot.slane %v3199_v6, 1  ;;  %3490 = vmatpush.msra.mxu3 %v3469_v22  ;;  %v3052_v39 = vmul.f32 %v4213_v50, %v6750_v34  ;;  %v3549_v56 = vld [vmem:[#allocation18 + $0x50] sm:$0xff] }
 0x7c5   :  { %3505 = vmatpush.msrb.mxu1 %v3457_v47 }
 0x7c6   :  { %v3213_v47 = vadd.f32 %v3212_v26, %v3051_v10  ;;  %v3201_v35 = vadd.f32 %v3200_v27, %v3199_v6  ;;  %3491 = vmatpush.msra.mxu3 %v3468_v57  ;;  %v3553_v26 = vld [vmem:[#allocation18 + $0x70] sm:$0xff]  ;;  %v3548_v27 = vld [vmem:[#allocation18 + $0x48] sm:$0xff] }
 0x7c7   :  { %3506 = vmatpush.msrb.mxu1 %v3456_v33  ;;  %v3467_v33 = vld [vmem:[#allocation16 + $0x118] sm:$0xff] }
 0x7c8   :  { %3492 = vmatpush.msra.mxu3 %v3467_v33 }
 0x7c9   :  { %v6756_v45 = vpop.permute.xlu2 %2628 }
 0x7ca   :  { %v3005_v41 = vmul.f32 %v4207_v8, %v6756_v45  ;;  %v3455_v45 = vld [vmem:[#allocation15 + $0x140] sm:$0xff]  ;;  %v3448_v8 = vld [vmem:[#allocation15 + $0x108] sm:$0xff] }
 0x7cb   :  { %3507 = vmatpush.msrb.mxu1 %v3455_v45  ;;  %v3466_v45 = vld [vmem:[#allocation16 + $0x110] sm:$0xff] }
 0x7cc   :  { %3493 = vmatpush.msra.mxu3 %v3466_v45  ;;  %v3814_v45 = vld [vmem:[%s6823_s12 + $0x2] ss:$0 sm:$0xff] }
 0x7cd   :  { %3508 = vmatpush.msrb.mxu1 %v3454_v62 }
 0x7cf   :  { %3509 = vmatpush.msrb.mxu1 %v3453_v25 }
 0x7d1   :  { %v2726_v37 = vpop.permute.xlu2 %2725  ;;  %3510 = vmatpush.msrb.mxu1 %v3452_v5 }
 0x7d2   :  { %v3021_v43 = vmul.f32 %v4200_v55, %v2726_v37  ;;  %v3152_v55 = vadd.f32 %v3151_v42, %v3005_v41  ;;  %v3342_v41 = vld [vmem:[#allocation15 + $0x80] sm:$0xff] }
 0x7d3   :  { %3511 = vmatpush.msrb.mxu1 %v3451_v52 }
 0x7d4   :  { %v3173_v49 = vadd.f32 %v3172_v13, %v3021_v43  ;;  %v4210_v43 = vld [vmem:[#allocation4 + $0x278] sm:$0xff]  ;;  %v3348_v13 = vld [vmem:[#allocation15 + $0xb0] sm:$0xff] }
 0x7d5   :  { %3404 = vmatpush.msra.mxu2 %v3348_v13  ;;  %3512 = vmatpush.msrb.mxu1 %v3450_v54  ;;  %v3550_v54 = vld [vmem:[#allocation18 + $0x58] sm:$0xff] }
 0x7d6   :  { %v3174_v0 = vadd.f32 %v3173_v49, %v3022_v29 }
 0x7d7   :  { %3405 = vmatpush.msra.mxu2 %v3347_v44  ;;  %3513 = vmatpush.msrb.mxu1 %v3449_v30  ;;  %v3809_v44 = vld [vmem:[%s6822_s11] ss:$0 sm:$0xff]  ;;  %v3546_v30 = vld [vmem:[#allocation18 + $0x38] sm:$0xff] }
 0x7d8   :  { %v3175_v61 = vrot.slane %v3174_v0, 4 }
 0x7d9   :  { %3406 = vmatpush.msra.mxu2 %v3346_v17  ;;  %3514 = vmatpush.msrb.mxu1 %v3448_v8  ;;  %v3810_v17 = vld [vmem:[%s6823_s12] ss:$0 sm:$0xff] }
 0x7da   :  { %v3176_v23 = vadd.f32 %v3175_v61, %v3174_v0  ;;  %v3544_v8 = vld [vmem:[#allocation18 + $0x28] sm:$0xff] }
 0x7db   :  { %3407 = vmatpush.msra.mxu2 %v3345_v14  ;;  %3515 = vmatpush.msrb.mxu1 %v3447_v20  ;;  %v3554_v14 = vld [vmem:[#allocation18 + $0x78] sm:$0xff] }
 0x7dc   :  { %v3177_v7 = vrot.slane %v3176_v23, 2 }
 0x7dd   :  { %3408 = vmatpush.msra.mxu2 %v3344_v28 }
 0x7de   :  { %v3178_v29 = vadd.f32 %v3177_v7, %v3176_v23  ;;  %v3214_v23 = vadd.f32 %v3213_v47, %v3052_v39  ;;  %v3543_v39 = vld [vmem:[#allocation18 + $0x20] sm:$0xff] }
 0x7df   :  { %3409 = vmatpush.msra.mxu2 %v3343_v19  ;;  %v3545_v19 = vld [vmem:[#allocation18 + $0x30] sm:$0xff] }
 0x7e0   :  { %v3179_v3 = vrot.slane %v3178_v29, 1 }
 0x7e1   :  { %v2635_v37 = vpop.permute.xlu2 %2634  ;;  %3410 = vmatpush.msra.mxu2 %v3342_v41 }
 0x7e2   :  { %v3006_v51 = vmul.f32 %v4210_v43, %v2635_v37  ;;  %v3180_v42 = vadd.f32 %v3179_v3, %v3178_v29  ;;  %v3465_v43 = vld [vmem:[#allocation16 + $0x108] sm:$0xff]  ;;  %v3547_v3 = vld [vmem:[#allocation18 + $0x40] sm:$0xff] }
 0x7e3   :  { %3494 = vmatpush.msra.mxu3 %v3465_v43  ;;  %3559 = vmatpush.msrb.mxu2 %v3554_v14 }
 0x7e4   :  { %v3153_v31 = vadd.f32 %v3152_v55, %v3006_v51 }
 0x7e5   :  { %3495 = vmatpush.msra.mxu3 %v3464_v36  ;;  %3560 = vmatpush.msrb.mxu2 %v3553_v26 }
 0x7e6   :  { %v3154_v49 = vrot.slane %v3153_v31, 4 }
 0x7e8   :  { %v3155_v58 = vadd.f32 %v3154_v49, %v3153_v31 }
 0x7ea   :  { %v3156_v0 = vrot.slane %v3155_v58, 2 }
 0x7ec   :  { %v3157_v15 = vadd.f32 %v3156_v0, %v3155_v58  ;;  %v3552_v0 = vld [vmem:[#allocation18 + $0x68] sm:$0xff] }
 0x7ed   :  { %3561 = vmatpush.msrb.mxu2 %v3552_v0 }
 0x7ee   :  { %v3158_v61 = vrot.slane %v3157_v15, 1 }
 0x7ef   :  { %3562 = vmatpush.msrb.mxu2 %v3551_v63 }
 0x7f0   :  { %v3159_v12 = vadd.f32 %v3158_v61, %v3157_v15 }
 0x7f1   :  { %v2920_v4 = vpop.permute.xlu2 %2919  ;;  %3563 = vmatpush.msrb.mxu2 %v3550_v54 }
 0x7f2   :  { %v3053_v46 = vmul.f32 %v4214_v21, %v2920_v4  ;;  %v3287_v37 = vsel %vm2131_vm2, %v3159_v12, %v6695_v16  ;;  %v3542_v4 = vld [vmem:[#allocation18 + $0x18] sm:$0xff] }
 0x7f3   :  { %v3288_v34 = vsel %vm2133_vm3, %v3180_v42, %v3287_v37  ;;  %3564 = vmatpush.msrb.mxu2 %v3549_v56  ;;  %v3813_v37 = vld [vmem:[%s6822_s11 + $0x2] ss:$0 sm:$0xff] }
 0x7f4   :  { %v3215_v60 = vadd.f32 %v3214_v23, %v3053_v46  ;;  %v3289_v55 = vsel %vm2135_vm4, %v3201_v35, %v3288_v34  ;;  %v3541_v34 = vld [vmem:[#allocation18 + $0x10] sm:$0xff] }
 0x7f5   :  { %3565 = vmatpush.msrb.mxu2 %v3548_v27 }
 0x7f6   :  { %v3216_v51 = vadd.f32 %v3215_v60, %v3054_v18  ;;  %v3540_v60 = vld [vmem:[#allocation18 + $0x8] sm:$0xff] }
 0x7f7   :  { %3566 = vmatpush.msrb.mxu2 %v3547_v3 }
 0x7f8   :  { %v3217_v62 = vrot.slane %v3216_v51, 4 }
 0x7f9   :  { %3567 = vmatpush.msrb.mxu2 %v3546_v30 }
 0x7fa   :  { %v3218_v13 = vadd.f32 %v3217_v62, %v3216_v51  ;;  %v3539_v62 = vld [vmem:[#allocation18] sm:$0xff] }
 0x7fb   :  { %3568 = vmatpush.msrb.mxu2 %v3545_v19 }
 0x7fc   :  { %v3219_v32 = vrot.slane %v3218_v13, 2 }
 0x7fd   :  { %3569 = vmatpush.msrb.mxu2 %v3544_v8 }
 0x7fe   :  { %v3220_v16 = vadd.f32 %v3219_v32, %v3218_v13 }
 0x7ff   :  { %3570 = vmatpush.msrb.mxu2 %v3543_v39 }
 0x800   :  { %v3221_v31 = vrot.slane %v3220_v16, 1 }
 0x801   :  { %3571 = vmatpush.msrb.mxu2 %v3542_v4 }
 0x802   :  { %v3222_v59 = vadd.f32 %v3221_v31, %v3220_v16 }
 0x803   :  { %3572 = vmatpush.msrb.mxu2 %v3541_v34 }
 0x804   :  { %v3290_v38 = vsel %vm2137_vm5, %v3222_v59, %v3289_v55 }
 0x805   :  { %3308 = vmatmul.f32.vlgmr.msrb.gmra.mxu3 %v3290_v38  ;;  %3411 = vmatmul.f32.vlgmr.msra.gmra.mxu2 %v3290_v38 }
 0x806   :  { %3516 = vmatmul.f32.vlgmr.msrb.gmra.mxu1 %v3290_v38  ;;  %v3273_v7 = vpop.f32.mrf.mxu2  ;;  %3573 = vmatpush.msrb.mxu2 %v3540_v60 }
 0x808   :  { %3574 = vmatpush.msrb.mxu2 %v3539_v62 }
 0x80d   :  { %3496 = vmatmul.f32.vlgmr.msra.gmra.mxu3 %v6768_v11  ;;  %v3812_v11 = vld [vmem:[%s6823_s12 + $0x1] ss:$0 sm:$0xff] }
 0x830   :  { %v3392_v25 = vpop.f32.mrf.mxu1 }
 0x883   :  { %v3517_v20 = vpop.f32.mrf.mxu1 }
 0x888   :  { %v3309_v49 = vpop.f32.mrf.mxu3  ;;  %v3412_v2 = vpop.f32.mrf.mxu2 }
 0x889   :  { %v3310_v5 = vadd.f32 %v3309_v49, %v3273_v7  ;;  %v3413_v40 = vadd.f32 %v3412_v2, %v3392_v25 }
 0x88b   :  { %v3316_v24 = vadd.f32 %v3809_v44, %v3310_v5  ;;  %v3420_v58 = vadd.f32 %v3811_v48, %v3413_v40  ;;  %v3815_v48 = vld [vmem:[%s6825_s14] ss:$0 sm:$0xff] }
 0x88d   :  { %v3321_v1 = vadd.f32 %v3810_v17, %v3316_v24  ;;  %v3426_v6 = vadd.f32 %v3812_v11, %v3420_v58 }
 0x88f   :  { %v3632_v29 = vmul.f32 -1.442695, %v3321_v1  ;;  %v3635_v52 = vmul.f32 -1.442695, %v3426_v6 }
 0x890   :  { %v3497_v9 = vpop.f32.mrf.mxu3 }
 0x891   :  { %4076 = vpow2.f32 %v3632_v29  ;;  %v3518_v23 = vadd.f32 %v3517_v20, %v3497_v9 }
 0x892   :  { %4078 = vpow2.f32 %v3635_v52 }
 0x893   :  { %v3525_v51 = vadd.f32 %v3813_v37, %v3518_v23 }
 0x897   :  { %v4077_v28 = vpop.eup %4076 }
 0x898   :  { %v4079_v10 = vpop.eup %4078  ;;  %v3325_v15 = vadd.f32 1.0, %v4077_v28 }
 0x899   :  { %v3430_v22 = vadd.f32 1.0, %v4079_v10 }
 0x89a   :  { %4080 = vrcp.f32 %v3325_v15  ;;  %v3337_v33 = vand.u32 2147483648, %v3325_v15  ;;  %v3335_v42 = vand.u32 2147483647, %v3325_v15  ;;  %vm3331_vm8 = vweird.f32 %v3325_v15 }
 0x89b   :  { %4082 = vrcp.f32 %v3430_v22  ;;  %v3442_v13 = vand.u32 2147483648, %v3430_v22  ;;  %vm3436_vm12 = vweird.f32 %v3430_v22  ;;  %v3440_v32 = vand.u32 2147483647, %v3430_v22 }
 0x89c   :  { %v3338_v53 = vor.u32 1.1754944e-38, %v3337_v33  ;;  %vm3336_vm10 = vcmp.eq.f32.partialorder %v3335_v42, 8.507059e+37 }
 0x89d   :  { %v3443_v59 = vor.u32 1.1754944e-38, %v3442_v13  ;;  %vm3441_vm14 = vcmp.eq.f32.partialorder %v3440_v32, 8.507059e+37 }
 0x8a0   :  { %v4081_v61 = vpop.eup %4080 }
 0x8a1   :  { %v4083_v47 = vpop.eup %4082  ;;  %v3327_v57 = vmul.f32 %v4081_v61, %v3325_v15  ;;  %vm3332_vm7 = vweird.f32 %v4081_v61 }
 0x8a2   :  { %v3432_v41 = vmul.f32 %v4083_v47, %v3430_v22  ;;  %vm3333_vm9 = vmor %vm3331_vm8, %vm3332_vm7  ;;  %vm3437_vm11 = vweird.f32 %v4083_v47 }
 0x8a3   :  { %v3328_v50 = vsub.f32 1.0, %v3327_v57  ;;  %vm3438_vm13 = vmor %vm3436_vm12, %vm3437_vm11 }
 0x8a4   :  { %v3433_v12 = vsub.f32 1.0, %v3432_v41 }
 0x8a5   :  { %v3329_v35 = vmul.f32 %v4081_v61, %v3328_v50 }
 0x8a6   :  { %v3434_v21 = vmul.f32 %v4083_v47, %v3433_v12 }
 0x8a7   :  { %v3330_v46 = vadd.f32 %v4081_v61, %v3329_v35 }
 0x8a8   :  { %v3435_v43 = vadd.f32 %v4083_v47, %v3434_v21 }
 0x8a9   :  { %v3334_v18 = vsel %vm3333_vm9, %v4081_v61, %v3330_v46 }
 0x8aa   :  { %v3339_v55 = vsel %vm3336_vm10, %v3338_v53, %v3334_v18  ;;  %v3439_v31 = vsel %vm3438_vm13, %v4083_v47, %v3435_v43 }
 0x8ab   :  { %v3531_v36 = vmul.f32 %v3814_v45, %v3339_v55  ;;  %v3444_v38 = vsel %vm3441_vm14, %v3443_v59, %v3439_v31 }
 0x8ac   :  { %v3534_v7 = vsub.f32 1.0, %v3444_v38 }
 0x8ad   :  { %v3532_v16 = vadd.f32 %v3531_v36, %v3525_v51 }
 0x8af   :  { %4084 = vtanh.f32 %v3532_v16 }
 0x8b5   :  { %v4085_v25 = vpop.eup %4084 }
 0x8b6   :  { %v3535_v44 = vmul.f32 %v4085_v25, %v3534_v7 }
 0x8b8   :  { %3575 = vmatmul.f32.vlgmr.msrb.gmra.mxu2 %v3535_v44  ;;  %3537 = vst [vmem:[#allocation20] sm:$0xff] %v3535_v44 }
 0x8b9   :  { %3601 = dma.vmem_to_hbm [thread:$0]  %s3597_s1, 128, %s3599_s18, [#allocation21]  }
 0x8ba   :  { %3612 = dma.vmem_to_hbm [thread:$0]  %s3608_s9, 128, %s3610_s4, [#allocation21]  }
 0x93b   :  { %v3576_v49 = vpop.f32.mrf.mxu2 }
 0x93c   :  { %v3577_v2 = vadd.f32 %v3815_v48, %v3576_v49 }
 0x93e   :  { %3579 = vst [vmem:[#allocation19] sm:$0xff] %v3577_v2 }
 0x93f   :  { %3590 = dma.vmem_to_hbm [thread:$0]  %s3586_s16, 128, %s3588_s7, [#allocation6]  }
 0x940   :  { %4514 = dma.done.wait [#allocation6], 128  }
 0x941   :  { %4515 = vsyncadd [#allocation6], 4294967168 }
 0x942   :  { %4516 = dma.done.wait [#allocation21], 256  }
 0x943   :  { %4517 = vsyncadd [#allocation21], 4294967040 }
 0x944   :  { %3625 = vsyncpa [#allocation5], 1 }
 0x945   :  { %3626 = vsyncpa [#allocation8], 1 }
 0x946   :  { %3627 = vsyncpa [#allocation11], 1 }
 0x947   :  { %3628 = vsyncpa [#allocation14], 1 }
 0x948   :  { %3629 = vsyncpa [#allocation17], 1 }
 0x949   :  { %3630 = vsyncpa [#allocation6], 1 }
 0x94a   :  { %3631 = vsyncpa [#allocation21], 1 }

</bundles_post_ra>
